<compile_context>
chip_gen: v7x
topology: tpu7x:2x2x1
jax: 0.10.0
libtpu: 0.0.40
codegen_flags: <defaults>
</compile_context>

<pallas_src>
import numpy as np
import jax
import jax.numpy as jnp
from jax.experimental import pallas as pl
from jax.experimental.pallas import tpu as pltpu


# ---------------------------------------------------------------------------
# Single fused kernel: tropical conv1(+pool) -> tropical conv2(+pool) -> MLP head
# ---------------------------------------------------------------------------
def _tropical_lenet_kernel(pe_ref, po_ref, w1_ref, w2_ref, pmask_ref,
                           fc1w_ref, fc1b_ref, fc2w_ref, fc2b_ref,
                           fc3w_ref, fc3b_ref, out_ref):
    # pe/po : (C1, N, P1, K1) even/odd im2col patches (zero padding already folded in)
    # w1    : (C1, O1, K1)    conv1 weights, channel-major
    # w2    : (K2, O2, C2)    conv2 weights, tap-major
    # pmask : (T2, O2, F)     pool2 + PyTorch-flatten mask (0.5 at matching slots)
    C1, N, P1, K1 = pe_ref.shape
    O1 = w1_ref.shape[1]
    K2, O2, C2 = w2_ref.shape
    T2 = P1 - K2 + 1            # conv2 output length before pooling

    # ---- conv1: min-plus over the 80-tap window (lane reduce), sum over channels,
    #      fused with avg_pool1d(2,2) via the even/odd patch parity split ----------
    def minplus_sum(p_ref):
        acc = jnp.zeros((N, P1, O1), jnp.float32)
        for c in range(C1):                                   # tiny static loop
            pc = p_ref[c]                                     # (N, P1, K1)
            wc = w1_ref[c]                                    # (O1, K1)
            acc = acc + jnp.min(pc[:, :, None, :] + wc[None, None, :, :], axis=-1)
        return acc                                            # (N, P1, O1)

    p1 = 0.5 * (minplus_sum(pe_ref) + minplus_sum(po_ref))    # (N, P1, O1)=(n,pos,chan)

    # ---- conv2: max-plus over K2=3 taps, sum over channels -----------------------
    z = None                                                  # (N, T2, O2, C2)
    for k in range(K2):                                       # 3 static taps
        s_k = p1[:, k:k + T2, :]                              # (N, T2, C2)
        w2k = w2_ref[k]                                       # (O2, C2)
        cand = s_k[:, :, None, :] + w2k[None, None, :, :]     # (N, T2, O2, C2)
        z = cand if z is None else jnp.maximum(z, cand)
    y2 = jnp.sum(z, axis=-1)                                  # (N, T2, O2) = (n,t,o)

    # ---- avg_pool1d(2,2) + PyTorch-order flatten: one masked VPU sum --------------
    # feat[n, o*P2 + j] = 0.5 * (y2[n, 2j, o] + y2[n, 2j+1, o])
    tmp = y2[:, :, :, None] * pmask_ref[...][None, :, :, :]   # (N, T2, O2, F)
    feat = jnp.sum(jnp.sum(tmp, axis=1), axis=1)              # (N, F)

    # ---- fused MLP head: relu(fc1) -> relu(fc2) -> fc3 ----------------------------
    h = jnp.dot(feat, fc1w_ref[...], preferred_element_type=jnp.float32) + fc1b_ref[...]
    h = jnp.maximum(h, 0.0)
    h = jnp.dot(h, fc2w_ref[...], preferred_element_type=jnp.float32) + fc2b_ref[...]
    h = jnp.maximum(h, 0.0)
    out_ref[...] = (jnp.dot(h, fc3w_ref[...], preferred_element_type=jnp.float32)
                    + fc3b_ref[...])


# ---------------------------------------------------------------------------
# Wrapper helpers
# ---------------------------------------------------------------------------
def _conv1_patches(x, K, padding):
    """Even/odd im2col patches for conv1 fused with avg_pool1d(2,2).

    Returns (patches_even, patches_odd), each of shape (C, N, P, K) with
      patches_even[c, n, j, k] = x_pad[n, c, 2*j + k]
      patches_odd [c, n, j, k] = x_pad[n, c, 2*j + 1 + k]
    """
    N, C, L = x.shape
    xp = jnp.pad(x, ((0, 0), (0, 0), (padding, padding)))      # zero padding (see TODO)
    L_out = L + 2 * padding - K + 1
    P = L_out // 2                                              # floor, like F.avg_pool1d
    base = 2 * np.arange(P)[:, None] + np.arange(K)[None, :]    # (P, K) static indices

    def gather(offset):
        g = xp[:, :, base + offset]                             # (N, C, P, K)
        return g.transpose(1, 0, 2, 3)                          # (C, N, P, K)

    return gather(0), gather(1)


def _pool_flatten_mask(T2, O2):
    """Compile-time constant mask: pmask[t, o, o*P2 + t//2] = 0.5 (avg_pool + flatten)."""
    P2 = T2 // 2
    F = O2 * P2
    m = np.zeros((T2, O2, F), np.float32)
    for t in range(2 * P2):                                     # drop trailing odd pos
        for o in range(O2):
            m[t, o, o * P2 + t // 2] = 0.5
    return m


@jax.jit
def tropical_lenet1_forward(params, x):
    k1 = params["conv1_w"].shape[-1]
    k2 = params["conv2_w"].shape[-1]
    pe, po = _conv1_patches(x, k1, padding=2)
    _, N, P1, _ = pe.shape
    O2 = params["conv2_w"].shape[0]
    T2 = P1 - k2 + 1
    pmask = _pool_flatten_mask(T2, O2)                          # numpy -> baked constant

    w1_t = jnp.transpose(params["conv1_w"], (1, 0, 2))          # (C1, O1, K1)
    w2_t = jnp.transpose(params["conv2_w"], (2, 0, 1))          # (K2, O2, C2)
    num_classes = params["fc3_w"].shape[0]

    vmem = pl.BlockSpec(memory_space=pltpu.MemorySpace.VMEM)
    return pl.pallas_call(
        _tropical_lenet_kernel,
        out_shape=jax.ShapeDtypeStruct((N, num_classes), jnp.float32),
        in_specs=[vmem] * 11,
        out_specs=vmem,
    )(pe, po, w1_t, w2_t, pmask,
      params["fc1_w"].T, params["fc1_b"].reshape(1, -1),
      params["fc2_w"].T, params["fc2_b"].reshape(1, -1),
      params["fc3_w"].T, params["fc3_b"].reshape(1, -1))


# ---------------------------------------------------------------------------
# Deterministic parameter init
# ---------------------------------------------------------------------------
def init_params(key, input_channels, num_classes, linear_size, k1, k2):
    keys = jax.random.split(key, 8)

    def linear(kw, kb, fan_in, fan_out):
        bound = fan_in ** -0.5
        w = jax.random.uniform(kw, (fan_out, fan_in), jnp.float32, -bound, bound)
        b = jax.random.uniform(kb, (fan_out,), jnp.float32, -bound, bound)
        return w, b

    p = {}
    p["conv1_w"] = 0.1 * jax.random.normal(keys[0], (6, input_channels, k1), jnp.float32)
    p["conv2_w"] = 0.1 * jax.random.normal(keys[1], (16, 6, k2), jnp.float32)
    p["fc1_w"], p["fc1_b"] = linear(keys[2], keys[3], linear_size, 120)
    p["fc2_w"], p["fc2_b"] = linear(keys[4], keys[5], 120, 84)
    p["fc3_w"], p["fc3_b"] = linear(keys[6], keys[7], 84, num_classes)
    return p


if __name__ == "__main__":
    input_channels, num_classes = 2, 10
    L = 96
    k1, k2, pad1 = 80, 3, 2

    # derive linear_size exactly as the forward pass implies
    l1 = (L + 2 * pad1 - k1 + 1) // 2    # after conv1 + pool -> 10
    l2 = (l1 - k2 + 1) // 2              # after conv2 + pool -> 4
    linear_size = 16 * l2                # 64

    key = jax.random.PRNGKey(0)
    kx, kp = jax.random.split(key)
    x = jax.random.normal(kx, (2, input_channels, L), jnp.float32)
    params = init_params(kp, input_channels, num_classes, linear_size, k1, k2)

    out = tropical_lenet1_forward(params, x)
    out = jax.block_until_ready(out)
    assert out.shape == (2, num_classes), out.shape
    assert bool(jnp.all(jnp.isfinite(out)))
    print("KERNEL_OK")
</pallas_src>

<mosaic_0001>
module attributes {stable_mosaic.version = 11 : i64} {
  func.func @_tropical_lenet_kernel(%arg0: memref<2x2x10x80xf32, #tpu.memory_space<vmem>>, %arg1: memref<2x2x10x80xf32, #tpu.memory_space<vmem>>, %arg2: memref<2x6x80xf32, #tpu.memory_space<vmem>>, %arg3: memref<3x16x6xf32, #tpu.memory_space<vmem>>, %arg4: memref<8x16x64xf32, #tpu.memory_space<vmem>>, %arg5: memref<64x120xf32, #tpu.memory_space<vmem>>, %arg6: memref<1x120xf32, #tpu.memory_space<vmem>>, %arg7: memref<120x84xf32, #tpu.memory_space<vmem>>, %arg8: memref<1x84xf32, #tpu.memory_space<vmem>>, %arg9: memref<84x10xf32, #tpu.memory_space<vmem>>, %arg10: memref<1x10xf32, #tpu.memory_space<vmem>>, %arg11: memref<2x10xf32, #tpu.memory_space<vmem>>) attributes {dimension_semantics = [], scalar_prefetch = 0 : i64, scratch_operands = 0 : i64, tpu.core_type = #tpu.core_type<tc>} {
    %cst = arith.constant 0.000000e+00 : f32
    %0 = vector.broadcast %cst : f32 to vector<2x10x6xf32>
    %c0 = arith.constant 0 : index
    %c0_0 = arith.constant 0 : index
    %c0_1 = arith.constant 0 : index
    %c0_2 = arith.constant 0 : index
    %1 = vector.load %arg0[%c0, %c0_0, %c0_1, %c0_2] : memref<2x2x10x80xf32, #tpu.memory_space<vmem>>, vector<1x2x10x80xf32>
    %2 = vector.shape_cast %1 : vector<1x2x10x80xf32> to vector<2x10x80xf32>
    %c0_3 = arith.constant 0 : index
    %c0_4 = arith.constant 0 : index
    %c0_5 = arith.constant 0 : index
    %3 = vector.load %arg2[%c0_3, %c0_4, %c0_5] : memref<2x6x80xf32, #tpu.memory_space<vmem>>, vector<1x6x80xf32>
    %4 = vector.shape_cast %3 : vector<1x6x80xf32> to vector<6x80xf32>
    %5 = vector.shape_cast %2 : vector<2x10x80xf32> to vector<2x10x1x80xf32>
    %6 = vector.shape_cast %4 : vector<6x80xf32> to vector<1x1x6x80xf32>
    %7 = vector.broadcast %5 : vector<2x10x1x80xf32> to vector<2x10x6x80xf32>
    %8 = vector.broadcast %6 : vector<1x1x6x80xf32> to vector<2x10x6x80xf32>
    %9 = arith.addf %7, %8 : vector<2x10x6x80xf32>
    %cst_6 = arith.constant dense<0x7F800000> : vector<2x10x6xf32>
    %10 = vector.multi_reduction <minimumf>, %9, %cst_6 [3] : vector<2x10x6x80xf32> to vector<2x10x6xf32>
    %11 = arith.addf %0, %10 : vector<2x10x6xf32>
    %c1 = arith.constant 1 : index
    %c0_7 = arith.constant 0 : index
    %c0_8 = arith.constant 0 : index
    %c0_9 = arith.constant 0 : index
    %12 = vector.load %arg0[%c1, %c0_7, %c0_8, %c0_9] : memref<2x2x10x80xf32, #tpu.memory_space<vmem>>, vector<1x2x10x80xf32>
    %13 = vector.shape_cast %12 : vector<1x2x10x80xf32> to vector<2x10x80xf32>
    %c1_10 = arith.constant 1 : index
    %c0_11 = arith.constant 0 : index
    %c0_12 = arith.constant 0 : index
    %14 = vector.load %arg2[%c1_10, %c0_11, %c0_12] : memref<2x6x80xf32, #tpu.memory_space<vmem>>, vector<1x6x80xf32>
    %15 = vector.shape_cast %14 : vector<1x6x80xf32> to vector<6x80xf32>
    %16 = vector.shape_cast %13 : vector<2x10x80xf32> to vector<2x10x1x80xf32>
    %17 = vector.shape_cast %15 : vector<6x80xf32> to vector<1x1x6x80xf32>
    %18 = vector.broadcast %16 : vector<2x10x1x80xf32> to vector<2x10x6x80xf32>
    %19 = vector.broadcast %17 : vector<1x1x6x80xf32> to vector<2x10x6x80xf32>
    %20 = arith.addf %18, %19 : vector<2x10x6x80xf32>
    %cst_13 = arith.constant dense<0x7F800000> : vector<2x10x6xf32>
    %21 = vector.multi_reduction <minimumf>, %20, %cst_13 [3] : vector<2x10x6x80xf32> to vector<2x10x6xf32>
    %22 = arith.addf %11, %21 : vector<2x10x6xf32>
    %cst_14 = arith.constant 0.000000e+00 : f32
    %23 = vector.broadcast %cst_14 : f32 to vector<2x10x6xf32>
    %c0_15 = arith.constant 0 : index
    %c0_16 = arith.constant 0 : index
    %c0_17 = arith.constant 0 : index
    %c0_18 = arith.constant 0 : index
    %24 = vector.load %arg1[%c0_15, %c0_16, %c0_17, %c0_18] : memref<2x2x10x80xf32, #tpu.memory_space<vmem>>, vector<1x2x10x80xf32>
    %25 = vector.shape_cast %24 : vector<1x2x10x80xf32> to vector<2x10x80xf32>
    %c0_19 = arith.constant 0 : index
    %c0_20 = arith.constant 0 : index
    %c0_21 = arith.constant 0 : index
    %26 = vector.load %arg2[%c0_19, %c0_20, %c0_21] : memref<2x6x80xf32, #tpu.memory_space<vmem>>, vector<1x6x80xf32>
    %27 = vector.shape_cast %26 : vector<1x6x80xf32> to vector<6x80xf32>
    %28 = vector.shape_cast %25 : vector<2x10x80xf32> to vector<2x10x1x80xf32>
    %29 = vector.shape_cast %27 : vector<6x80xf32> to vector<1x1x6x80xf32>
    %30 = vector.broadcast %28 : vector<2x10x1x80xf32> to vector<2x10x6x80xf32>
    %31 = vector.broadcast %29 : vector<1x1x6x80xf32> to vector<2x10x6x80xf32>
    %32 = arith.addf %30, %31 : vector<2x10x6x80xf32>
    %cst_22 = arith.constant dense<0x7F800000> : vector<2x10x6xf32>
    %33 = vector.multi_reduction <minimumf>, %32, %cst_22 [3] : vector<2x10x6x80xf32> to vector<2x10x6xf32>
    %34 = arith.addf %23, %33 : vector<2x10x6xf32>
    %c1_23 = arith.constant 1 : index
    %c0_24 = arith.constant 0 : index
    %c0_25 = arith.constant 0 : index
    %c0_26 = arith.constant 0 : index
    %35 = vector.load %arg1[%c1_23, %c0_24, %c0_25, %c0_26] : memref<2x2x10x80xf32, #tpu.memory_space<vmem>>, vector<1x2x10x80xf32>
    %36 = vector.shape_cast %35 : vector<1x2x10x80xf32> to vector<2x10x80xf32>
    %c1_27 = arith.constant 1 : index
    %c0_28 = arith.constant 0 : index
    %c0_29 = arith.constant 0 : index
    %37 = vector.load %arg2[%c1_27, %c0_28, %c0_29] : memref<2x6x80xf32, #tpu.memory_space<vmem>>, vector<1x6x80xf32>
    %38 = vector.shape_cast %37 : vector<1x6x80xf32> to vector<6x80xf32>
    %39 = vector.shape_cast %36 : vector<2x10x80xf32> to vector<2x10x1x80xf32>
    %40 = vector.shape_cast %38 : vector<6x80xf32> to vector<1x1x6x80xf32>
    %41 = vector.broadcast %39 : vector<2x10x1x80xf32> to vector<2x10x6x80xf32>
    %42 = vector.broadcast %40 : vector<1x1x6x80xf32> to vector<2x10x6x80xf32>
    %43 = arith.addf %41, %42 : vector<2x10x6x80xf32>
    %cst_30 = arith.constant dense<0x7F800000> : vector<2x10x6xf32>
    %44 = vector.multi_reduction <minimumf>, %43, %cst_30 [3] : vector<2x10x6x80xf32> to vector<2x10x6xf32>
    %45 = arith.addf %34, %44 : vector<2x10x6xf32>
    %46 = arith.addf %22, %45 : vector<2x10x6xf32>
    %cst_31 = arith.constant 5.000000e-01 : f32
    %47 = vector.broadcast %cst_31 : f32 to vector<2x10x6xf32>
    %48 = arith.mulf %47, %46 : vector<2x10x6xf32>
    %49 = vector.extract_strided_slice %48 {offsets = [0, 0, 0], sizes = [2, 8, 6], strides = [1, 1, 1]} : vector<2x10x6xf32> to vector<2x8x6xf32>
    %c0_32 = arith.constant 0 : index
    %c0_33 = arith.constant 0 : index
    %c0_34 = arith.constant 0 : index
    %50 = vector.load %arg3[%c0_32, %c0_33, %c0_34] : memref<3x16x6xf32, #tpu.memory_space<vmem>>, vector<1x16x6xf32>
    %51 = vector.shape_cast %50 : vector<1x16x6xf32> to vector<16x6xf32>
    %52 = vector.shape_cast %49 : vector<2x8x6xf32> to vector<2x8x1x6xf32>
    %53 = vector.shape_cast %51 : vector<16x6xf32> to vector<1x1x16x6xf32>
    %54 = vector.broadcast %52 : vector<2x8x1x6xf32> to vector<2x8x16x6xf32>
    %55 = vector.broadcast %53 : vector<1x1x16x6xf32> to vector<2x8x16x6xf32>
    %56 = arith.addf %54, %55 : vector<2x8x16x6xf32>
    %57 = vector.extract_strided_slice %48 {offsets = [0, 1, 0], sizes = [2, 8, 6], strides = [1, 1, 1]} : vector<2x10x6xf32> to vector<2x8x6xf32>
    %c1_35 = arith.constant 1 : index
    %c0_36 = arith.constant 0 : index
    %c0_37 = arith.constant 0 : index
    %58 = vector.load %arg3[%c1_35, %c0_36, %c0_37] : memref<3x16x6xf32, #tpu.memory_space<vmem>>, vector<1x16x6xf32>
    %59 = vector.shape_cast %58 : vector<1x16x6xf32> to vector<16x6xf32>
    %60 = vector.shape_cast %57 : vector<2x8x6xf32> to vector<2x8x1x6xf32>
    %61 = vector.shape_cast %59 : vector<16x6xf32> to vector<1x1x16x6xf32>
    %62 = vector.broadcast %60 : vector<2x8x1x6xf32> to vector<2x8x16x6xf32>
    %63 = vector.broadcast %61 : vector<1x1x16x6xf32> to vector<2x8x16x6xf32>
    %64 = arith.addf %62, %63 : vector<2x8x16x6xf32>
    %65 = arith.maximumf %56, %64 : vector<2x8x16x6xf32>
    %66 = vector.extract_strided_slice %48 {offsets = [0, 2, 0], sizes = [2, 8, 6], strides = [1, 1, 1]} : vector<2x10x6xf32> to vector<2x8x6xf32>
    %c2 = arith.constant 2 : index
    %c0_38 = arith.constant 0 : index
    %c0_39 = arith.constant 0 : index
    %67 = vector.load %arg3[%c2, %c0_38, %c0_39] : memref<3x16x6xf32, #tpu.memory_space<vmem>>, vector<1x16x6xf32>
    %68 = vector.shape_cast %67 : vector<1x16x6xf32> to vector<16x6xf32>
    %69 = vector.shape_cast %66 : vector<2x8x6xf32> to vector<2x8x1x6xf32>
    %70 = vector.shape_cast %68 : vector<16x6xf32> to vector<1x1x16x6xf32>
    %71 = vector.broadcast %69 : vector<2x8x1x6xf32> to vector<2x8x16x6xf32>
    %72 = vector.broadcast %70 : vector<1x1x16x6xf32> to vector<2x8x16x6xf32>
    %73 = arith.addf %71, %72 : vector<2x8x16x6xf32>
    %74 = arith.maximumf %65, %73 : vector<2x8x16x6xf32>
    %cst_40 = arith.constant dense<0.000000e+00> : vector<2x8x16xf32>
    %75 = vector.multi_reduction <add>, %74, %cst_40 [3] : vector<2x8x16x6xf32> to vector<2x8x16xf32>
    %76 = vector.shape_cast %75 : vector<2x8x16xf32> to vector<2x8x16x1xf32>
    %c0_41 = arith.constant 0 : index
    %c0_42 = arith.constant 0 : index
    %c0_43 = arith.constant 0 : index
    %77 = vector.load %arg4[%c0_41, %c0_42, %c0_43] : memref<8x16x64xf32, #tpu.memory_space<vmem>>, vector<8x16x64xf32>
    %78 = vector.shape_cast %77 : vector<8x16x64xf32> to vector<1x8x16x64xf32>
    %79 = vector.broadcast %76 : vector<2x8x16x1xf32> to vector<2x8x16x64xf32>
    %80 = vector.broadcast %78 : vector<1x8x16x64xf32> to vector<2x8x16x64xf32>
    %81 = arith.mulf %79, %80 : vector<2x8x16x64xf32>
    %cst_44 = arith.constant dense<0.000000e+00> : vector<2x16x64xf32>
    %82 = vector.multi_reduction <add>, %81, %cst_44 [1] : vector<2x8x16x64xf32> to vector<2x16x64xf32>
    %cst_45 = arith.constant dense<0.000000e+00> : vector<2x64xf32>
    %83 = vector.multi_reduction <add>, %82, %cst_45 [1] : vector<2x16x64xf32> to vector<2x64xf32>
    %c0_46 = arith.constant 0 : index
    %c0_47 = arith.constant 0 : index
    %84 = vector.load %arg5[%c0_46, %c0_47] : memref<64x120xf32, #tpu.memory_space<vmem>>, vector<64x120xf32>
    %cst_48 = arith.constant dense<0.000000e+00> : vector<2x120xf32>
    %85 = tpu.matmul %83, %84, %cst_48 {dimension_numbers = #tpu.dot_dimension_numbers<[1], [0], [0], [1], [0, 0, 1, 1], [], []>} : vector<2x64xf32>, vector<64x120xf32>, vector<2x120xf32> -> vector<2x120xf32>
    %c0_49 = arith.constant 0 : index
    %c0_50 = arith.constant 0 : index
    %86 = vector.load %arg6[%c0_49, %c0_50] : memref<1x120xf32, #tpu.memory_space<vmem>>, vector<1x120xf32>
    %87 = vector.broadcast %86 : vector<1x120xf32> to vector<2x120xf32>
    %88 = arith.addf %85, %87 : vector<2x120xf32>
    %cst_51 = arith.constant 0.000000e+00 : f32
    %89 = vector.broadcast %cst_51 : f32 to vector<2x120xf32>
    %90 = arith.maximumf %88, %89 : vector<2x120xf32>
    %c0_52 = arith.constant 0 : index
    %c0_53 = arith.constant 0 : index
    %91 = vector.load %arg7[%c0_52, %c0_53] : memref<120x84xf32, #tpu.memory_space<vmem>>, vector<120x84xf32>
    %cst_54 = arith.constant dense<0.000000e+00> : vector<2x84xf32>
    %92 = tpu.matmul %90, %91, %cst_54 {dimension_numbers = #tpu.dot_dimension_numbers<[1], [0], [0], [1], [0, 0, 1, 1], [], []>} : vector<2x120xf32>, vector<120x84xf32>, vector<2x84xf32> -> vector<2x84xf32>
    %c0_55 = arith.constant 0 : index
    %c0_56 = arith.constant 0 : index
    %93 = vector.load %arg8[%c0_55, %c0_56] : memref<1x84xf32, #tpu.memory_space<vmem>>, vector<1x84xf32>
    %94 = vector.broadcast %93 : vector<1x84xf32> to vector<2x84xf32>
    %95 = arith.addf %92, %94 : vector<2x84xf32>
    %cst_57 = arith.constant 0.000000e+00 : f32
    %96 = vector.broadcast %cst_57 : f32 to vector<2x84xf32>
    %97 = arith.maximumf %95, %96 : vector<2x84xf32>
    %c0_58 = arith.constant 0 : index
    %c0_59 = arith.constant 0 : index
    %98 = vector.load %arg9[%c0_58, %c0_59] : memref<84x10xf32, #tpu.memory_space<vmem>>, vector<84x10xf32>
    %cst_60 = arith.constant dense<0.000000e+00> : vector<2x10xf32>
    %99 = tpu.matmul %97, %98, %cst_60 {dimension_numbers = #tpu.dot_dimension_numbers<[1], [0], [0], [1], [0, 0, 1, 1], [], []>} : vector<2x84xf32>, vector<84x10xf32>, vector<2x10xf32> -> vector<2x10xf32>
    %c0_61 = arith.constant 0 : index
    %c0_62 = arith.constant 0 : index
    %100 = vector.load %arg10[%c0_61, %c0_62] : memref<1x10xf32, #tpu.memory_space<vmem>>, vector<1x10xf32>
    %101 = vector.broadcast %100 : vector<1x10xf32> to vector<2x10xf32>
    %102 = arith.addf %99, %101 : vector<2x10xf32>
    %c0_63 = arith.constant 0 : index
    %c0_64 = arith.constant 0 : index
    %103 = vector.load %arg11[%c0_63, %c0_64] : memref<2x10xf32, #tpu.memory_space<vmem>>, vector<2x10xf32>
    tpu.vector_store %arg11[%c0_63, %c0_64], %102 {strides = array<i32>} : memref<2x10xf32, #tpu.memory_space<vmem>>, vector<2x10xf32>,
    return
  }
}

</mosaic_0001>

<bundles_post_ra>
// kernel: tropical_lenet1_forward.1
= control target key start
LH: loop header
LB: loop body
LE: loop exit
PB: predicated region body
PF: predicated region fallthrough
CT: control target
= control target key end

     0   :  { %v10288_v0 = vlaneseq  ;;  %v6230_v2 = vmov 1966171168   ;;  %s10276_s0 = inlined_call_operand.vmem [shape: f32[2,2,10,80], index: 0, kind: input, shape index: {}]   ;;  %s10277_s1 = inlined_call_operand.vmem [shape: f32[2,2,10,80], index: 1, kind: input, shape index: {}]   ;;  %s10278_s2 = inlined_call_operand.vmem [shape: f32[2,6,80], index: 2, kind: input, shape index: {}]   ;;  %s10279_s3 = inlined_call_operand.vmem [shape: f32[3,16,6], index: 3, kind: input, shape index: {}]   ;;  %s10280_s4 = inlined_call_operand.vmem [shape: f32[8,16,64], index: 4, kind: input, shape index: {}]   ;;  %s10281_s5 = inlined_call_operand.vmem [shape: f32[64,120], index: 5, kind: input, shape index: {}]   ;;  %s10282_s6 = inlined_call_operand.vmem [shape: f32[1,120], index: 6, kind: input, shape index: {}]   ;;  %s10283_s7 = inlined_call_operand.vmem [shape: f32[120,84], index: 7, kind: input, shape index: {}]   ;;  %s10284_s8 = inlined_call_operand.vmem [shape: f32[1,84], index: 8, kind: input, shape index: {}]   ;;  %s10285_s9 = inlined_call_operand.vmem [shape: f32[84,10], index: 9, kind: input, shape index: {}]   ;;  %s10286_s10 = inlined_call_operand.vmem [shape: f32[1,10], index: 10, kind: input, shape index: {}]   ;;  %s10287_s11 = inlined_call_operand.hbm [shape: f32[2,10], index: 11, kind: output, shape index: {}]  }
   0x1   :  { %v6000_v1 = vld.sshfl [vmem:[%s10276_s0 + $0x8] sm:$0x11 pattern:$0x75316420]  ;;  %v50_v3 = vunpack.c.l.s4 %v6230_v2  ;;  %v39_v5 = vld [vmem:[%s10276_s0] sm:$0xff]  ;;  %v41_v11 = vld [vmem:[%s10276_s0 + $0x10] sm:$0xff] }
   0x2   :  { %v6300_v4 = vshrl.u32 %v10288_v0, 7  ;;  %v104_v7 = vcombine.high %v6000_v1, %v6000_v1  ;;  %v48_v8 = vcombine.high %v39_v5, %v39_v5 }
   0x3   :  { %v51_v6 = vunpack.c.0.s8 %v50_v3 }
   0x4   :  { %10445 = vst [vmem:[#allocation5_spill] sm:$0xff] %v6300_v4  ;;  %v6309_v10 = vsub.s32 0, %v6300_v4 }
   0x5   :  { %v6306_v9 = vsub.s32 %v51_v6, %v6300_v4 }
   0x6   :  { %16 = vsyncpa [#allocation3], 0  ;;  %v6321_v16 = vld [vmem:[%s10278_s2] sm:$0x3f]  ;;  %vm310_vm0 = vcmask 652288   ;;  %v119_v25 = vcombine.high %v41_v11, %v41_v11  ;;  %vm5213_vm1 = vcmask 1041409  }
   0x7   :  { %v111_v12 = vrot.slane %v6000_v1, %v6306_v9  ;;  %v118_v13 = vrot.slane %v104_v7, %v6306_v9  ;;  %v55_v14 = vrot.slane %v39_v5, %v6306_v9  ;;  %v62_v15 = vrot.slane %v48_v8, %v6306_v9  ;;  %v6001_v8 = vld.sshfl [vmem:[%s10276_s0 + $0x18] sm:$0x11 pattern:$0x75316420]  ;;  %s6235_s27 = smov [#allocation2]  }
   0x8   :  { %v126_v17 = vrot.slane %v41_v11, %v6306_v9  ;;  %v133_v49 = vrot.slane %v119_v25, %v6306_v9  ;;  %vm5215_vm2 = vcmask 1042434   ;;  %vm5217_vm3 = vcmask 1043459   ;;  %s5992_s28 = sshll.u32 %s6235_s27, 4  ;;  %s5993_s28 = int_to_ptr.vmem [resolvable:$true] %s5992_s28 }
   0x9   :  { %v225_v18 = vrot.slane %v111_v12, %v6309_v10  ;;  %v229_v19 = vrot.slane %v118_v13, %v6309_v10  ;;  %v71_v20 = vrot.slane %v55_v14, %v6306_v9  ;;  %v78_v21 = vrot.slane %v62_v15, %v6306_v9  ;;  %p6211_p1 = scmp.lt.s32.totalorder %s5993_s28, %s5993_s28 }
   0xa   :  { %v64_v22 = vcombine.high %v62_v15, %v62_v15  ;;  %v63_v23 = vcombine.high %v55_v14, %v55_v14  ;;  %v134_v24 = vcombine.high %v126_v17, %v126_v17  ;;  %v142_v48 = vrot.slane %v126_v17, %v6306_v9  ;;  %v6002_v15 = vld [vmem:[%s10276_s0 + $0x20] sm:$0xff] }
   0xb   :  { %v298_v26 = vadd.f32 %v225_v18, %v6321_v16  ;;  %v299_v27 = vadd.f32 %v229_v19, %v6321_v16  ;;  %v193_v28 = vrot.slane %v71_v20, %v6309_v10  ;;  %v93_v29 = vcombine.high %v71_v20, %v71_v20 }
   0xc   :  { %v209_v30 = vrot.slane %v78_v21, %v6309_v10  ;;  %v92_v31 = vrot.slane %v64_v22, %v6306_v9  ;;  %v85_v32 = vrot.slane %v63_v23, %v6306_v9  ;;  %v156_v33 = vrot.slane %v134_v24, %v6306_v9 }
   0xd   :  { %v335_v34 = vsel %vm310_vm0, %v298_v26, inf  ;;  %v338_v35 = vsel %vm310_vm0, %v299_v27, inf  ;;  %v290_v36 = vadd.f32 %v193_v28, %v6321_v16  ;;  %v201_v37 = vrot.slane %v93_v29, %v6309_v10 }
   0xe   :  { %336 = vmin.xlane.f32.xlu0 %v335_v34  ;;  %339 = vmin.xlane.f32.xlu1 %v338_v35  ;;  %v294_v38 = vadd.f32 %v209_v30, %v6321_v16  ;;  %v213_v39 = vrot.slane %v92_v31, %v6309_v10  ;;  %v197_v40 = vrot.slane %v85_v32, %v6309_v10  ;;  %vm5219_vm4 = vcmask 1044484  }
   0xf   :  { %v311_v41 = vsel %vm310_vm0, %v290_v36, inf  ;;  %v292_v42 = vadd.f32 %v201_v37, %v6321_v16  ;;  %v237_v43 = vrot.slane %v156_v33, %v6309_v10  ;;  %v94_v44 = vcombine.high %v78_v21, %v78_v21 }
  0x10   :  { %v295_v45 = vadd.f32 %v213_v39, %v6321_v16  ;;  %v95_v46 = vcombine.high %v85_v32, %v85_v32  ;;  %v291_v50 = vadd.f32 %v197_v40, %v6321_v16  ;;  %v96_v52 = vcombine.high %v92_v31, %v92_v31 }
  0x11   :  { %v317_v47 = vsel %vm310_vm0, %v292_v42, inf  ;;  %v301_v51 = vadd.f32 %v237_v43, %v6321_v16  ;;  %v323_v53 = vsel %vm310_vm0, %v294_v38, inf  ;;  %v217_v55 = vrot.slane %v94_v44, %v6309_v10 }
  0x12   :  { %312 = vmin.xlane.f32.xlu0 %v311_v41  ;;  %318 = vmin.xlane.f32.xlu1 %v317_v47  ;;  %v326_v54 = vsel %vm310_vm0, %v295_v45, inf  ;;  %v205_v56 = vrot.slane %v95_v46, %v6309_v10  ;;  %v233_v57 = vrot.slane %v142_v48, %v6309_v10  ;;  %v314_v58 = vsel %vm310_vm0, %v291_v50, inf }
  0x13   :  { %v344_v59 = vsel %vm310_vm0, %v301_v51, inf  ;;  %v221_v60 = vrot.slane %v96_v52, %v6309_v10  ;;  %v164_v61 = vcombine.high %v142_v48, %v142_v48  ;;  %v296_v62 = vadd.f32 %v217_v55, %v6321_v16 }
  0x14   :  { %v293_v63 = vadd.f32 %v205_v56, %v6321_v16  ;;  %v166_v1 = vcombine.high %v156_v33, %v156_v33  ;;  %v135_v2 = vcombine.high %v133_v49, %v133_v49  ;;  %v300_v3 = vadd.f32 %v233_v57, %v6321_v16 }
  0x15   :  { %v297_v5 = vadd.f32 %v221_v60, %v6321_v16  ;;  %v241_v6 = vrot.slane %v164_v61, %v6309_v10  ;;  %v149_v7 = vrot.slane %v133_v49, %v6306_v9  ;;  %v329_v11 = vsel %vm310_vm0, %v296_v62, inf  ;;  %v6007_v60 = vld.sshfl [vmem:[%s10276_s0 + $0x28] sm:$0x11 pattern:$0x75316420] }
  0x16   :  { %324 = vmin.xlane.f32.xlu0 %v323_v53  ;;  %327 = vmin.xlane.f32.xlu1 %v326_v54  ;;  %v320_v12 = vsel %vm310_vm0, %v293_v63, inf  ;;  %v245_v13 = vrot.slane %v166_v1, %v6309_v10  ;;  %v163_v14 = vrot.slane %v135_v2, %v6306_v9  ;;  %v341_v17 = vsel %vm310_vm0, %v300_v3, inf  ;;  %v6407_v53 = vld [vmem:[%s10278_s2 + $0x8] sm:$0x3f]  ;;  %v6004_v2 = vld [vmem:[%s10276_s0 + $0x30] sm:$0xff] }
  0x17   :  { %v175_v18 = vcombine.high %v6001_v8, %v6001_v8  ;;  %v332_v19 = vsel %vm310_vm0, %v297_v5, inf  ;;  %v302_v20 = vadd.f32 %v241_v6, %v6321_v16  ;;  %v249_v21 = vrot.slane %v149_v7, %v6309_v10 }
  0x18   :  { %v165_v22 = vcombine.high %v149_v7, %v149_v7  ;;  %v303_v23 = vadd.f32 %v245_v13, %v6321_v16  ;;  %v253_v24 = vrot.slane %v163_v14, %v6309_v10  ;;  %v167_v25 = vcombine.high %v163_v14, %v163_v14 }
  0x19   :  { %v409_v26 = vrot.slane %v6002_v15, %v6306_v9  ;;  %v182_v27 = vrot.slane %v6001_v8, %v6306_v9  ;;  %v189_v28 = vrot.slane %v175_v18, %v6306_v9  ;;  %v347_v29 = vsel %vm310_vm0, %v302_v20, inf }
  0x1a   :  { %315 = vmin.xlane.f32.xlu0 %v314_v58  ;;  %345 = vmin.xlane.f32.xlu1 %v344_v59  ;;  %v304_v30 = vadd.f32 %v249_v21, %v6321_v16  ;;  %v257_v31 = vrot.slane %v165_v22, %v6309_v10  ;;  %v402_v32 = vcombine.high %v6002_v15, %v6002_v15  ;;  %v350_v33 = vsel %vm310_vm0, %v303_v23, inf }
  0x1b   :  { %v305_v34 = vadd.f32 %v253_v24, %v6321_v16  ;;  %v261_v35 = vrot.slane %v167_v25, %v6309_v10  ;;  %v417_v36 = vcombine.high %v409_v26, %v409_v26  ;;  %v265_v37 = vrot.slane %v182_v27, %v6309_v10 }
  0x1c   :  { %v269_v38 = vrot.slane %v189_v28, %v6309_v10  ;;  %v353_v39 = vsel %vm310_vm0, %v304_v30, inf  ;;  %v425_v40 = vrot.slane %v409_v26, %v6306_v9  ;;  %v416_v41 = vrot.slane %v402_v32, %v6306_v9 }
  0x1d   :  { %v356_v42 = vsel %vm310_vm0, %v305_v34, inf  ;;  %v306_v43 = vadd.f32 %v257_v31, %v6321_v16  ;;  %v307_v44 = vadd.f32 %v261_v35, %v6321_v16  ;;  %v439_v45 = vrot.slane %v417_v36, %v6306_v9 }
  0x1e   :  { %330 = vmin.xlane.f32.xlu0 %v329_v11  ;;  %321 = vmin.xlane.f32.xlu1 %v320_v12  ;;  %v308_v46 = vadd.f32 %v265_v37, %v6321_v16  ;;  %v309_v47 = vadd.f32 %v269_v38, %v6321_v16  ;;  %v547_v48 = vrot.slane %v425_v40, %v6309_v10  ;;  %vm5221_vm5 = vcmask 1045509  }
  0x1f   :  { %v447_v49 = vcombine.high %v425_v40, %v425_v40  ;;  %v418_v50 = vcombine.high %v416_v41, %v416_v41  ;;  %v359_v51 = vsel %vm310_vm0, %v306_v43, inf  ;;  %v362_v52 = vsel %vm310_vm0, %v307_v44, inf }
  0x20   :  { %v551_v54 = vrot.slane %v439_v45, %v6309_v10  ;;  %v449_v55 = vcombine.high %v439_v45, %v439_v45  ;;  %v432_v56 = vrot.slane %v416_v41, %v6306_v9  ;;  %v644_v57 = vadd.f32 %v6407_v53, %v547_v48 }
  0x21   :  { %v555_v58 = vrot.slane %v447_v49, %v6309_v10  ;;  %v446_v59 = vrot.slane %v418_v50, %v6306_v9  ;;  %v365_v61 = vsel %vm310_vm0, %v308_v46, inf  ;;  %v368_v62 = vsel %vm310_vm0, %v309_v47, inf  ;;  %v6008_v49 = vld.sshfl [vmem:[%s10276_s0 + $0x38] sm:$0x11 pattern:$0x75316420] }
  0x22   :  { %342 = vmin.xlane.f32.xlu0 %v341_v17  ;;  %333 = vmin.xlane.f32.xlu1 %v332_v19  ;;  %v645_v63 = vadd.f32 %v6407_v53, %v551_v54  ;;  %v559_v1 = vrot.slane %v449_v55, %v6309_v10  ;;  %v448_v3 = vcombine.high %v432_v56, %v432_v56  ;;  %v664_v6 = vsel %vm310_vm0, %v644_v57, inf  ;;  %v744_v55 = vld [vmem:[%s10277_s1] sm:$0xff] }
  0x23   :  { %v458_v5 = vcombine.high %v6007_v60, %v6007_v60  ;;  %v646_v7 = vadd.f32 %v6407_v53, %v555_v58  ;;  %v563_v8 = vrot.slane %v432_v56, %v6309_v10  ;;  %v567_v11 = vrot.slane %v446_v59, %v6309_v10 }
  0x24   :  { %v667_v12 = vsel %vm310_vm0, %v645_v63, inf  ;;  %v647_v13 = vadd.f32 %v6407_v53, %v559_v1  ;;  %v450_v14 = vcombine.high %v446_v59, %v446_v59  ;;  %v480_v15 = vrot.slane %v6004_v2, %v6306_v9 }
  0x25   :  { %v571_v17 = vrot.slane %v448_v3, %v6309_v10  ;;  %v465_v18 = vrot.slane %v6007_v60, %v6306_v9  ;;  %v670_v19 = vsel %vm310_vm0, %v646_v7, inf  ;;  %v648_v20 = vadd.f32 %v6407_v53, %v563_v8 }
  0x26   :  { %348 = vmin.xlane.f32.xlu0 %v347_v29  ;;  %351 = vmin.xlane.f32.xlu1 %v350_v33  ;;  %v472_v21 = vrot.slane %v458_v5, %v6306_v9  ;;  %v473_v22 = vcombine.high %v6004_v2, %v6004_v2  ;;  %v673_v23 = vsel %vm310_vm0, %v647_v13, inf  ;;  %v649_v24 = vadd.f32 %v6407_v53, %v567_v11 }
  0x27   :  { %v575_v25 = vrot.slane %v450_v14, %v6309_v10  ;;  %v488_v26 = vcombine.high %v480_v15, %v480_v15  ;;  %v650_v27 = vadd.f32 %v6407_v53, %v571_v17  ;;  %v579_v28 = vrot.slane %v465_v18, %v6309_v10 }
  0x28   :  { %v583_v29 = vrot.slane %v472_v21, %v6309_v10  ;;  %v496_v30 = vrot.slane %v480_v15, %v6306_v9  ;;  %v487_v31 = vrot.slane %v473_v22, %v6306_v9  ;;  %v676_v32 = vsel %vm310_vm0, %v648_v20, inf }
  0x29   :  { %v679_v33 = vsel %vm310_vm0, %v649_v24, inf  ;;  %v651_v34 = vadd.f32 %v6407_v53, %v575_v25  ;;  %v510_v35 = vrot.slane %v488_v26, %v6306_v9  ;;  %v652_v36 = vadd.f32 %v6407_v53, %v579_v28 }
  0x2a   :  { %354 = vmin.xlane.f32.xlu0 %v353_v39  ;;  %357 = vmin.xlane.f32.xlu1 %v356_v42  ;;  %v682_v37 = vsel %vm310_vm0, %v650_v27, inf  ;;  %v653_v38 = vadd.f32 %v6407_v53, %v583_v29  ;;  %v587_v39 = vrot.slane %v496_v30, %v6309_v10  ;;  %v489_v40 = vcombine.high %v487_v31, %v487_v31 }
  0x2b   :  { %v685_v41 = vsel %vm310_vm0, %v651_v34, inf  ;;  %v591_v42 = vrot.slane %v510_v35, %v6309_v10  ;;  %v518_v43 = vcombine.high %v496_v30, %v496_v30  ;;  %v520_v44 = vcombine.high %v510_v35, %v510_v35 }
  0x2c   :  { %v503_v45 = vrot.slane %v487_v31, %v6306_v9  ;;  %v688_v46 = vsel %vm310_vm0, %v652_v36, inf  ;;  %v654_v47 = vadd.f32 %v6407_v53, %v587_v39  ;;  %v517_v48 = vrot.slane %v489_v40, %v6306_v9  ;;  %v6009_v36 = vld.sshfl [vmem:[%s10277_s1 + $0x8] sm:$0x11 pattern:$0x75316420]  ;;  %v746_v40 = vld [vmem:[%s10277_s1 + $0x10] sm:$0xff] }
  0x2d   :  { %v691_v50 = vsel %vm310_vm0, %v653_v38, inf  ;;  %v599_v54 = vrot.slane %v520_v44, %v6309_v10  ;;  %v529_v57 = vcombine.high %v6008_v49, %v6008_v49  ;;  %v759_v2 = vrot.slane %v744_v55, %v6306_v9 }
  0x2e   :  { %360 = vmin.xlane.f32.xlu0 %v359_v51  ;;  %363 = vmin.xlane.f32.xlu1 %v362_v52  ;;  %v655_v51 = vadd.f32 %v6407_v53, %v591_v42  ;;  %v595_v52 = vrot.slane %v518_v43, %v6309_v10  ;;  %v603_v56 = vrot.slane %v503_v45, %v6309_v10  ;;  %v694_v58 = vsel %vm310_vm0, %v654_v47, inf }
  0x2f   :  { %v607_v59 = vrot.slane %v517_v48, %v6309_v10  ;;  %v519_v60 = vcombine.high %v503_v45, %v503_v45  ;;  %v657_v1 = vadd.f32 %v6407_v53, %v599_v54  ;;  %v536_v3 = vrot.slane %v6008_v49, %v6306_v9 }
  0x30   :  { %v656_v63 = vadd.f32 %v6407_v53, %v595_v52  ;;  %v543_v5 = vrot.slane %v529_v57, %v6306_v9  ;;  %v658_v7 = vadd.f32 %v6407_v53, %v603_v56  ;;  %v767_v15 = vcombine.high %v759_v2, %v759_v2 }
  0x31   :  { %v611_v8 = vrot.slane %v519_v60, %v6309_v10  ;;  %v703_v13 = vsel %vm310_vm0, %v657_v1, inf  ;;  %v659_v14 = vadd.f32 %v6407_v53, %v607_v59  ;;  %v619_v17 = vrot.slane %v536_v3, %v6309_v10 }
  0x32   :  { %366 = vmin.xlane.f32.xlu0 %v365_v61  ;;  %369 = vmin.xlane.f32.xlu1 %v368_v62  ;;  %v521_v61 = vcombine.high %v517_v48, %v517_v48  ;;  %v697_v62 = vsel %vm310_vm0, %v655_v51, inf  ;;  %v623_v18 = vrot.slane %v543_v5, %v6309_v10  ;;  %v706_v22 = vsel %vm310_vm0, %v658_v7, inf }
  0x33   :  { %v775_v24 = vrot.slane %v759_v2, %v6306_v9  ;;  %v789_v25 = vrot.slane %v767_v15, %v6306_v9  ;;  %v662_v26 = vadd.f32 %v6407_v53, %v619_v17  ;;  %v830_v47 = vrot.slane %v746_v40, %v6306_v9 }
  0x34   :  { %v615_v11 = vrot.slane %v521_v61, %v6309_v10  ;;  %v663_v29 = vadd.f32 %v6407_v53, %v623_v18  ;;  %v815_v56 = vrot.slane %v6009_v36, %v6306_v9  ;;  %vm5223_vm6 = vcmask 1046534  }
  0x35   :  { %v897_v31 = vrot.slane %v775_v24, %v6309_v10  ;;  %v799_v34 = vcombine.high %v789_v25, %v789_v25  ;;  %v838_v2 = vcombine.high %v830_v47, %v830_v47  ;;  %v846_v7 = vrot.slane %v830_v47, %v6306_v9 }
  0x36   :  { %665 = vmin.xlane.f32.xlu0 %v664_v6  ;;  %668 = vmin.xlane.f32.xlu1 %v667_v12  ;;  %v752_v6 = vcombine.high %v744_v55, %v744_v55  ;;  %v700_v12 = vsel %vm310_vm0, %v656_v63, inf  ;;  %v661_v20 = vadd.f32 %v6407_v53, %v615_v11  ;;  %v721_v38 = vsel %vm310_vm0, %v663_v29, inf  ;;  %v6010_v29 = vld.sshfl [vmem:[%s10277_s1 + $0x18] sm:$0x11 pattern:$0x75316420] }
  0x37   :  { %v909_v44 = vrot.slane %v799_v34, %v6309_v10  ;;  %v929_v3 = vrot.slane %v815_v56, %v6309_v10  ;;  %v937_v18 = vrot.slane %v846_v7, %v6309_v10  ;;  %v6011_v34 = vld [vmem:[%s10277_s1 + $0x20] sm:$0xff]  ;;  %vm5225_vm7 = vcmask 1047559  }
  0x38   :  { %v766_v21 = vrot.slane %v752_v6, %v6306_v9  ;;  %v715_v28 = vsel %vm310_vm0, %v661_v20, inf  ;;  %vm5476_vm8 = vcmask 48128   ;;  %vm6233_vm9 = vmmov 0  }
  0x39   :  { %v997_v55 = vadd.f32 %v909_v44, %v6321_v16  ;;  %v1002_v15 = vadd.f32 %v929_v3, %v6321_v16  ;;  %v1110_v44 = vrot.slane %v6011_v34, %v6306_v9  ;;  %vm5621_vm10 = vcmask 523264  }
  0x3a   :  { %671 = vmin.xlane.f32.xlu0 %v670_v19  ;;  %674 = vmin.xlane.f32.xlu1 %v673_v23  ;;  %v660_v19 = vadd.f32 %v6407_v53, %v611_v8  ;;  %v709_v23 = vsel %vm310_vm0, %v659_v14, inf  ;;  %v768_v30 = vcombine.high %v766_v21, %v766_v21  ;;  %v782_v35 = vrot.slane %v766_v21, %v6306_v9 }
  0x3b   :  { %v1023_v63 = vsel %vm310_vm0, %v997_v55, inf  ;;  %v860_v14 = vrot.slane %v838_v2, %v6306_v9  ;;  %v1118_v55 = vcombine.high %v1110_v44, %v1110_v44  ;;  %vm5813_vm11 = vcmask 982016  }
  0x3c   :  { %v712_v27 = vsel %vm310_vm0, %v660_v19, inf  ;;  %v796_v39 = vrot.slane %v768_v30, %v6306_v9  ;;  %v913_v45 = vrot.slane %v782_v35, %v6309_v10  ;;  %v798_v49 = vcombine.high %v782_v35, %v782_v35 }
  0x3d   :  { %v868_v19 = vcombine.high %v846_v7, %v846_v7  ;;  %v1038_v30 = vsel %vm310_vm0, %v1002_v15, inf  ;;  %vm5910_vm12 = vcmask 1043456   ;;  %vm5906_vm13 = vcmask 687104  }
  0x3e   :  { %677 = vmin.xlane.f32.xlu0 %v676_v32  ;;  %680 = vmin.xlane.f32.xlu1 %v679_v33  ;;  %v901_v32 = vrot.slane %v789_v25, %v6309_v10  ;;  %v797_v33 = vcombine.high %v775_v24, %v775_v24  ;;  %v917_v48 = vrot.slane %v796_v39, %v6309_v10  ;;  %vm5984_vm14 = vcmask 74752  }
  0x3f   :  { %v998_v59 = vadd.f32 %v913_v45, %v6321_v16  ;;  %v921_v61 = vrot.slane %v798_v49, %v6309_v10  ;;  %v870_v24 = vcombine.high %v860_v14, %v860_v14  ;;  %v886_v45 = vrot.slane %v6010_v29, %v6306_v9 }
  0x40   :  { %v995_v42 = vadd.f32 %v901_v32, %v6321_v16  ;;  %v905_v43 = vrot.slane %v797_v33, %v6309_v10  ;;  %v999_v60 = vadd.f32 %v917_v48, %v6321_v16 }
  0x41   :  { %v1026_v5 = vsel %vm310_vm0, %v998_v59, inf  ;;  %v1000_v6 = vadd.f32 %v921_v61, %v6321_v16  ;;  %v949_v33 = vrot.slane %v870_v24, %v6309_v10  ;;  %v969_v56 = vrot.slane %v886_v45, %v6309_v10 }
  0x42   :  { %683 = vmin.xlane.f32.xlu0 %v682_v37  ;;  %686 = vmin.xlane.f32.xlu1 %v685_v41  ;;  %v718_v37 = vsel %vm310_vm0, %v662_v26, inf  ;;  %v994_v41 = vadd.f32 %v897_v31, %v6321_v16  ;;  %v1017_v52 = vsel %vm310_vm0, %v995_v42, inf  ;;  %v996_v54 = vadd.f32 %v905_v43, %v6321_v16 }
  0x43   :  { %v1029_v11 = vsel %vm310_vm0, %v999_v60, inf  ;;  %v1032_v17 = vsel %vm310_vm0, %v1000_v6, inf  ;;  %v1004_v26 = vadd.f32 %v937_v18, %v6321_v16  ;;  %v1007_v42 = vadd.f32 %v949_v33, %v6321_v16 }
  0x44   :  { %v1014_v51 = vsel %vm310_vm0, %v994_v41, inf  ;;  %v1012_v2 = vadd.f32 %v969_v56, %v6321_v16 }
  0x46   :  { %689 = vmin.xlane.f32.xlu0 %v688_v46  ;;  %692 = vmin.xlane.f32.xlu1 %v691_v50  ;;  %v808_v46 = vcombine.high %v6009_v36, %v6009_v36  ;;  %v800_v50 = vcombine.high %v796_v39, %v796_v39  ;;  %v879_v36 = vcombine.high %v6010_v29, %v6010_v29  ;;  %v1068_v15 = vsel %vm310_vm0, %v1012_v2, inf }
  0x48   :  { %v822_v57 = vrot.slane %v808_v46, %v6306_v9  ;;  %v925_v1 = vrot.slane %v800_v50, %v6309_v10  ;;  %v1103_v46 = vcombine.high %v6011_v34, %v6011_v34  ;;  %v893_v50 = vrot.slane %v879_v36, %v6306_v9 }
  0x4a   :  { %695 = vmin.xlane.f32.xlu0 %v694_v58  ;;  %698 = vmin.xlane.f32.xlu1 %v697_v62  ;;  %v823_v58 = vcombine.high %v746_v40, %v746_v40  ;;  %v1020_v62 = vsel %vm310_vm0, %v996_v54, inf  ;;  %v973_v59 = vrot.slane %v893_v50, %v6309_v10  ;;  %v1117_v60 = vrot.slane %v1103_v46, %v6306_v9 }
  0x4c   :  { %v837_v8 = vrot.slane %v823_v58, %v6306_v9  ;;  %v1119_v7 = vcombine.high %v1117_v60, %v1117_v60 }
  0x4e   :  { %701 = vmin.xlane.f32.xlu0 %v700_v12  ;;  %704 = vmin.xlane.f32.xlu1 %v703_v13  ;;  %v1001_v12 = vadd.f32 %v925_v1, %v6321_v16  ;;  %v933_v13 = vrot.slane %v822_v57, %v6309_v10  ;;  %v839_v20 = vcombine.high %v837_v8, %v837_v8 }
  0x4f   :  { %v853_v25 = vrot.slane %v837_v8, %v6306_v9  ;;  %v1140_v1 = vrot.slane %v1118_v55, %v6306_v9  ;;  %v1147_v18 = vrot.slane %v1119_v7, %v6306_v9 }
  0x50   :  { %v1035_v21 = vsel %vm310_vm0, %v1001_v12, inf }
  0x51   :  { %v953_v35 = vrot.slane %v853_v25, %v6309_v10  ;;  %v869_v40 = vcombine.high %v853_v25, %v853_v25  ;;  %v1252_v12 = vrot.slane %v1140_v1, %v6309_v10  ;;  %v1151_v29 = vcombine.high %v1147_v18, %v1147_v18 }
  0x52   :  { %707 = vmin.xlane.f32.xlu0 %v706_v22  ;;  %710 = vmin.xlane.f32.xlu1 %v709_v23  ;;  %v1003_v22 = vadd.f32 %v933_v13, %v6321_v16  ;;  %v941_v23 = vrot.slane %v860_v14, %v6309_v10  ;;  %v1150_v13 = vcombine.high %v1140_v1, %v1140_v1 }
  0x53   :  { %v1008_v48 = vadd.f32 %v953_v35, %v6321_v16  ;;  %v961_v49 = vrot.slane %v869_v40, %v6309_v10  ;;  %v1133_v14 = vrot.slane %v1117_v60, %v6306_v9 }
  0x54   :  { %v1041_v31 = vsel %vm310_vm0, %v1003_v22, inf  ;;  %v1005_v32 = vadd.f32 %v941_v23, %v6321_v16  ;;  %v1260_v22 = vrot.slane %v1150_v13, %v6309_v10  ;;  %v6013_v23 = vld [vmem:[%s10277_s1 + $0x30] sm:$0xff] }
  0x55   :  { %v1056_v57 = vsel %vm310_vm0, %v1008_v48, inf  ;;  %v1010_v58 = vadd.f32 %v961_v49, %v6321_v16  ;;  %v1264_v24 = vrot.slane %v1133_v14, %v6309_v10  ;;  %v1149_v25 = vcombine.high %v1133_v14, %v1133_v14 }
  0x56   :  { %713 = vmin.xlane.f32.xlu0 %v712_v27  ;;  %716 = vmin.xlane.f32.xlu1 %v715_v28  ;;  %v945_v27 = vrot.slane %v868_v19, %v6309_v10  ;;  %v867_v28 = vrot.slane %v839_v20, %v6306_v9  ;;  %v1047_v41 = vsel %vm310_vm0, %v1005_v32, inf  ;;  %v1348_v32 = vadd.f32 %v6407_v53, %v1260_v22 }
  0x57   :  { %v1062_v3 = vsel %vm310_vm0, %v1010_v58, inf  ;;  %v1181_v33 = vrot.slane %v6013_v23, %v6306_v9  ;;  %v1349_v34 = vadd.f32 %v6407_v53, %v1264_v24 }
  0x58   :  { %v957_v39 = vrot.slane %v867_v28, %v6309_v10  ;;  %v871_v43 = vcombine.high %v867_v28, %v867_v28  ;;  %v1268_v28 = vrot.slane %v1147_v18, %v6309_v10  ;;  %v1374_v40 = vsel %vm310_vm0, %v1348_v32, inf }
  0x59   :  { %v1377_v45 = vsel %vm310_vm0, %v1349_v34, inf  ;;  %v1197_v48 = vrot.slane %v1181_v33, %v6306_v9 }
  0x5a   :  { %719 = vmin.xlane.f32.xlu0 %v718_v37  ;;  %722 = vmin.xlane.f32.xlu1 %v721_v38  ;;  %v1044_v37 = vsel %vm310_vm0, %v1004_v26, inf  ;;  %v1006_v38 = vadd.f32 %v945_v27, %v6321_v16  ;;  %v965_v54 = vrot.slane %v871_v43, %v6309_v10  ;;  %v1174_v43 = vcombine.high %v6013_v23, %v6013_v23 }
  0x5b   :  { %v1219_v58 = vcombine.high %v1197_v48, %v1197_v48 }
  0x5c   :  { %v1050_v47 = vsel %vm310_vm0, %v1006_v38, inf  ;;  %v1272_v38 = vrot.slane %v1149_v25, %v6309_v10 }
  0x5d   :  { %v1296_v2 = vrot.slane %v1219_v58, %v6309_v10 }
  0x5e   :  { %1015 = vmin.xlane.f32.xlu0 %v1014_v51  ;;  %1018 = vmin.xlane.f32.xlu1 %v1017_v52  ;;  %v1053_v51 = vsel %vm310_vm0, %v1007_v42, inf  ;;  %v1009_v52 = vadd.f32 %v957_v39, %v6321_v16  ;;  %v1276_v39 = vrot.slane %v1151_v29, %v6309_v10  ;;  %v1189_v42 = vcombine.high %v1181_v33, %v1181_v33 }
  0x5f   :  { %v1351_v46 = vadd.f32 %v6407_v53, %v1272_v38  ;;  %v1357_v14 = vadd.f32 %v6407_v53, %v1296_v2  ;;  %v6719_v2 = vsub.s32 4, %v6300_v4 }
  0x60   :  { %v1059_v61 = vsel %vm310_vm0, %v1009_v52, inf  ;;  %v1188_v52 = vrot.slane %v1174_v43, %v6306_v9 }
  0x61   :  { %v1383_v55 = vsel %vm310_vm0, %v1351_v46, inf }
  0x62   :  { %1021 = vmin.xlane.f32.xlu0 %v1020_v62  ;;  %1024 = vmin.xlane.f32.xlu1 %v1023_v63  ;;  %v1011_v62 = vadd.f32 %v965_v54, %v6321_v16  ;;  %v1126_v63 = vrot.slane %v1110_v44, %v6306_v9 }
  0x64   :  { %v1148_v6 = vcombine.high %v1126_v63, %v1126_v63  ;;  %v1065_v8 = vsel %vm310_vm0, %v1011_v62, inf  ;;  %v1190_v62 = vcombine.high %v1188_v52, %v1188_v52 }
  0x66   :  { %1027 = vmin.xlane.f32.xlu0 %v1026_v5  ;;  %1030 = vmin.xlane.f32.xlu1 %v1029_v11  ;;  %v1013_v5 = vadd.f32 %v973_v59, %v6321_v16  ;;  %v1248_v11 = vrot.slane %v1126_v63, %v6309_v10  ;;  %v6015_v16 = vld.sshfl [vmem:[%s10277_s1 + $0x28] sm:$0x11 pattern:$0x75316420] }
  0x67   :  { %v1159_v26 = vcombine.high %v6015_v16, %v6015_v16  ;;  %v1166_v35 = vrot.slane %v6015_v16, %v6306_v9 }
  0x68   :  { %v1071_v19 = vsel %vm310_vm0, %v1013_v5, inf  ;;  %v1345_v20 = vadd.f32 %v6407_v53, %v1248_v11  ;;  %v6016_v5 = vld.sshfl [vmem:[%s10277_s1 + $0x38] sm:$0x11 pattern:$0x75316420]  ;;  %v1218_v11 = vrot.slane %v1190_v62, %v6306_v9 }
  0x69   :  { %v1280_v44 = vrot.slane %v1166_v35, %v6309_v10 }
  0x6a   :  { %1033 = vmin.xlane.f32.xlu0 %v1032_v17  ;;  %1036 = vmin.xlane.f32.xlu1 %v1035_v21  ;;  %v1256_v17 = vrot.slane %v1148_v6, %v6309_v10  ;;  %v1346_v21 = vadd.f32 %v6407_v53, %v1252_v12  ;;  %v1230_v12 = vcombine.high %v6016_v5, %v6016_v5 }
  0x6b   :  { %v1353_v54 = vadd.f32 %v6407_v53, %v1280_v44 }
  0x6c   :  { %v1347_v27 = vadd.f32 %v6407_v53, %v1256_v17  ;;  %v1244_v24 = vrot.slane %v1230_v12, %v6306_v9 }
  0x6d   :  { %v1389_v63 = vsel %vm310_vm0, %v1353_v54, inf  ;;  %v6696_v54 = vsub.s32 1, %v6300_v4 }
  0x6e   :  { %1039 = vmin.xlane.f32.xlu0 %v1038_v30  ;;  %1042 = vmin.xlane.f32.xlu1 %v1041_v31  ;;  %v1365_v30 = vsel %vm310_vm0, %v1345_v20, inf  ;;  %v1368_v31 = vsel %vm310_vm0, %v1346_v21, inf  ;;  %v1371_v36 = vsel %vm310_vm0, %v1347_v27, inf  ;;  %v1222_v20 = vcombine.high %v1218_v11, %v1218_v11 }
  0x6f   :  { %v1237_v21 = vrot.slane %v6016_v5, %v6306_v9  ;;  %v1401_v27 = vsel %vm310_vm0, %v1357_v14, inf  ;;  %v1324_v32 = vrot.slane %v1244_v24, %v6309_v10 }
  0x71   :  { %v1364_v43 = vadd.f32 %v6407_v53, %v1324_v32 }
  0x72   :  { %1045 = vmin.xlane.f32.xlu0 %v1044_v37  ;;  %1048 = vmin.xlane.f32.xlu1 %v1047_v41  ;;  %v1350_v37 = vadd.f32 %v6407_v53, %v1268_v28  ;;  %v1173_v41 = vrot.slane %v1159_v26, %v6306_v9 }
  0x74   :  { %v1380_v49 = vsel %vm310_vm0, %v1350_v37, inf  ;;  %v1284_v50 = vrot.slane %v1173_v41, %v6309_v10 }
  0x76   :  { %1051 = vmin.xlane.f32.xlu0 %v1050_v47  ;;  %1054 = vmin.xlane.f32.xlu1 %v1053_v51  ;;  %v1352_v47 = vadd.f32 %v6407_v53, %v1276_v39  ;;  %v1211_v51 = vrot.slane %v1189_v42, %v6306_v9  ;;  %v1354_v59 = vadd.f32 %v6407_v53, %v1284_v50 }
  0x78   :  { %v1386_v56 = vsel %vm310_vm0, %v1352_v47, inf  ;;  %v1292_v60 = vrot.slane %v1211_v51, %v6309_v10  ;;  %v1392_v6 = vsel %vm310_vm0, %v1354_v59, inf  ;;  %v1422_v47 = vsel %vm310_vm0, %v1364_v43, inf }
  0x79   :  { %v6707_v59 = vsub.s32 2, %v6300_v4 }
  0x7a   :  { %1057 = vmin.xlane.f32.xlu0 %v1056_v57  ;;  %1060 = vmin.xlane.f32.xlu1 %v1059_v61  ;;  %v1288_v57 = vrot.slane %v1197_v48, %v6309_v10  ;;  %v1221_v61 = vcombine.high %v1211_v51, %v1211_v51  ;;  %v1356_v7 = vadd.f32 %v6407_v53, %v1292_v60 }
  0x7c   :  { %v1355_v1 = vadd.f32 %v6407_v53, %v1288_v57  ;;  %v1398_v18 = vsel %vm310_vm0, %v1356_v7, inf  ;;  %v6727_v7 = vsub.s32 5, %v6300_v4 }
  0x7e   :  { %1063 = vmin.xlane.f32.xlu0 %v1062_v3  ;;  %1066 = vmin.xlane.f32.xlu1 %v1065_v8  ;;  %v1204_v3 = vrot.slane %v1188_v52, %v6306_v9  ;;  %v1300_v8 = vrot.slane %v1221_v61, %v6309_v10  ;;  %v1395_v13 = vsel %vm310_vm0, %v1355_v1, inf }
  0x80   :  { %v1220_v17 = vcombine.high %v1204_v3, %v1204_v3  ;;  %v1358_v16 = vadd.f32 %v6407_v53, %v1300_v8 }
  0x82   :  { %1069 = vmin.xlane.f32.xlu0 %v1068_v15  ;;  %1072 = vmin.xlane.f32.xlu1 %v1071_v19  ;;  %v1304_v15 = vrot.slane %v1204_v3, %v6309_v10  ;;  %v1308_v19 = vrot.slane %v1218_v11, %v6309_v10  ;;  %v1312_v23 = vrot.slane %v1220_v17, %v6309_v10  ;;  %v1404_v28 = vsel %vm310_vm0, %v1358_v16, inf }
  0x83   :  { %v6731_v11 = vsub.s32 6, %v6300_v4 }
  0x84   :  { %v1359_v22 = vadd.f32 %v6407_v53, %v1304_v15  ;;  %v1360_v29 = vadd.f32 %v6407_v53, %v1308_v19  ;;  %v6739_v15 = vsub.s32 7, %v6300_v4 }
  0x86   :  { %1366 = vmin.xlane.f32.xlu0 %v1365_v30  ;;  %1369 = vmin.xlane.f32.xlu1 %v1368_v31  ;;  %v1316_v30 = vrot.slane %v1222_v20, %v6309_v10  ;;  %v1320_v31 = vrot.slane %v1237_v21, %v6309_v10  ;;  %v1407_v34 = vsel %vm310_vm0, %v1359_v22, inf  ;;  %v1410_v35 = vsel %vm310_vm0, %v1360_v29, inf }
  0x88   :  { %v1362_v37 = vadd.f32 %v6407_v53, %v1316_v30  ;;  %v1363_v42 = vadd.f32 %v6407_v53, %v1320_v31 }
  0x8a   :  { %1372 = vmin.xlane.f32.xlu0 %v1371_v36  ;;  %1375 = vmin.xlane.f32.xlu1 %v1374_v40  ;;  %v1361_v36 = vadd.f32 %v6407_v53, %v1312_v23  ;;  %v1416_v41 = vsel %vm310_vm0, %v1362_v37, inf  ;;  %v1419_v46 = vsel %vm310_vm0, %v1363_v42, inf  ;;  %v6017_v37 = vld [vmem:[%s10279_s3 + $0x10] sm:$0xff] }
  0x8b   :  { %v1881_v43 = vrot.slane %v6017_v37, %v6309_v10 }
  0x8c   :  { %v1413_v40 = vsel %vm310_vm0, %v1361_v36, inf }
  0x8e   :  { %1378 = vmin.xlane.f32.xlu0 %v1377_v45  ;;  %1381 = vmin.xlane.f32.xlu1 %v1380_v49 }
  0x92   :  { %1384 = vmin.xlane.f32.xlu0 %v1383_v55  ;;  %1387 = vmin.xlane.f32.xlu1 %v1386_v56  ;;  %v1485_v55 = vld [vmem:[%s10279_s3] sm:$0xff] }
  0x93   :  { %v1499_v58 = vrot.slane %v1485_v55, %v6696_v54  ;;  %v1506_v62 = vrot.slane %v1485_v55, %v6707_v59  ;;  %v1492_v1 = vrot.slane %v1485_v55, %v6309_v10  ;;  %v1520_v8 = vrot.slane %v1485_v55, %v6719_v2 }
  0x94   :  { %v1527_v14 = vrot.slane %v1485_v55, %v6727_v7  ;;  %v1534_v17 = vrot.slane %v1485_v55, %v6731_v11  ;;  %v1541_v20 = vrot.slane %v1485_v55, %v6739_v15 }
  0x96   :  { %1390 = vmin.xlane.f32.xlu0 %v1389_v63  ;;  %1393 = vmin.xlane.f32.xlu1 %v1392_v6  ;;  %v6715_v63 = vsub.s32 3, %v6300_v4 }
  0x98   :  { %v1513_v6 = vrot.slane %v1485_v55, %v6715_v63  ;;  %v1888_v55 = vrot.slane %v6017_v37, %v6696_v54 }
  0x9a   :  { %1396 = vmin.xlane.f32.xlu0 %v1395_v13  ;;  %1399 = vmin.xlane.f32.xlu1 %v1398_v18  ;;  %v1486_v18 = vld [vmem:[%s10279_s3 + $0x8] sm:$0xff] }
  0x9b   :  { %v6651_v25 = vpop.xlane.xlu0 %336  ;;  %v6653_v26 = vpop.xlane.xlu1 %339  ;;  %v1548_v21 = vrot.slane %v1486_v18, %v6309_v10  ;;  %v1555_v24 = vrot.slane %v1486_v18, %v6696_v54  ;;  %v1569_v30 = vrot.slane %v1486_v18, %v6715_v63  ;;  %v1576_v31 = vrot.slane %v1486_v18, %v6719_v2 }
  0x9c   :  { %10446 = vst [vmem:[#allocation6_spill] sm:$0xff] %v6651_v25  ;;  %10447 = vst [vmem:[#allocation7_spill] sm:$0xff] %v6653_v26  ;;  %v1590_v36 = vrot.slane %v1486_v18, %v6731_v11  ;;  %v1597_v42 = vrot.slane %v1486_v18, %v6739_v15 }
  0x9e   :  { %1402 = vmin.xlane.f32.xlu0 %v1401_v27  ;;  %1405 = vmin.xlane.f32.xlu1 %v1404_v28  ;;  %v1562_v27 = vrot.slane %v1486_v18, %v6707_v59 }
  0x9f   :  { %v6661_v33 = vpop.xlane.xlu0 %312  ;;  %v6663_v9 = vpop.xlane.xlu1 %318 }
  0xa2   :  { %1408 = vmin.xlane.f32.xlu0 %v1407_v34  ;;  %1411 = vmin.xlane.f32.xlu1 %v1410_v35  ;;  %v1583_v35 = vrot.slane %v1486_v18, %v6727_v7  ;;  %v1916_v18 = vrot.slane %v6017_v37, %v6727_v7 }
  0xa3   :  { %v6669_v38 = vpop.xlane.xlu0 %324  ;;  %v6671_v39 = vpop.xlane.xlu1 %327 }
  0xa4   :  { %10448 = vst [vmem:[#allocation8_spill] sm:$0xff] %v6669_v38  ;;  %10449 = vst [vmem:[#allocation9_spill] sm:$0xff] %v6671_v39 }
  0xa6   :  { %1414 = vmin.xlane.f32.xlu0 %v1413_v40  ;;  %1417 = vmin.xlane.f32.xlu1 %v1416_v41 }
  0xa7   :  { %v6677_v44 = vpop.xlane.xlu0 %315  ;;  %v6679_v45 = vpop.xlane.xlu1 %345 }
  0xa8   :  { %10450 = vst [vmem:[#allocation10_spill] sm:$0xff] %v6679_v45 }
  0xaa   :  { %1420 = vmin.xlane.f32.xlu0 %v1419_v46  ;;  %1423 = vmin.xlane.f32.xlu1 %v1422_v47 }
  0xab   :  { %v6683_v48 = vpop.xlane.xlu0 %330  ;;  %v6685_v49 = vpop.xlane.xlu1 %321 }
  0xac   :  { %10451 = vst [vmem:[#allocation11_spill] sm:$0xff] %v6683_v48 }
  0xaf   :  { %v6687_v50 = vpop.xlane.xlu0 %342  ;;  %v6689_v51 = vpop.xlane.xlu1 %333 }
  0xb0   :  { %10452 = vst [vmem:[#allocation12_spill] sm:$0xff] %v6687_v50  ;;  %10453 = vst [vmem:[#allocation13_spill] sm:$0xff] %v6689_v51 }
  0xb3   :  { %v6691_v53 = vpop.xlane.xlu0 %348  ;;  %v6693_v52 = vpop.xlane.xlu1 %351 }
  0xb4   :  { %10454 = vst [vmem:[#allocation14_spill] sm:$0xff] %v6691_v53  ;;  %10455 = vst [vmem:[#allocation15_spill] sm:$0xff] %v6693_v52 }
  0xb7   :  { %v6701_v56 = vpop.xlane.xlu0 %354  ;;  %v6703_v57 = vpop.xlane.xlu1 %357 }
  0xb8   :  { %10456 = vst [vmem:[#allocation16_spill] sm:$0xff] %v6701_v56  ;;  %10457 = vst [vmem:[#allocation17_spill] sm:$0xff] %v6703_v57 }
  0xbb   :  { %v6709_v60 = vpop.xlane.xlu0 %360  ;;  %v6711_v61 = vpop.xlane.xlu1 %363  ;;  %1501 = vbcast.lane.b32.xlu1 %v1499_v58, 256  ;;  %v1895_v58 = vrot.slane %v6017_v37, %v6707_v59 }
  0xbc   :  { %10458 = vst [vmem:[#allocation18_spill] sm:$0xff] %v6709_v60  ;;  %10459 = vst [vmem:[#allocation19_spill] sm:$0xff] %v6711_v61 }
  0xbf   :  { %v6721_v3 = vpop.xlane.xlu0 %366  ;;  %v6723_v5 = vpop.xlane.xlu1 %369  ;;  %1508 = vbcast.lane.b32.xlu1 %v1506_v62, 256 }
  0xc0   :  { %10460 = vst [vmem:[#allocation20_spill] sm:$0xff] %v6721_v3  ;;  %10461 = vst [vmem:[#allocation21_spill] sm:$0xff] %v6723_v5  ;;  %1494 = vbcast.lane.b32.xlu0 %v1492_v1, 256 }
  0xc3   :  { %v6733_v12 = vpop.xlane.xlu0 %665  ;;  %v6735_v13 = vpop.xlane.xlu1 %668  ;;  %1515 = vbcast.lane.b32.xlu1 %v1513_v6, 256  ;;  %v1902_v6 = vrot.slane %v6017_v37, %v6715_v63 }
  0xc4   :  { %1522 = vbcast.lane.b32.xlu0 %v1520_v8, 256  ;;  %v1909_v8 = vrot.slane %v6017_v37, %v6719_v2 }
  0xc7   :  { %v6745_v16 = vpop.xlane.xlu0 %671  ;;  %v6747_v19 = vpop.xlane.xlu1 %674  ;;  %1529 = vbcast.lane.b32.xlu1 %v1527_v14, 256 }
  0xc8   :  { %1536 = vbcast.lane.b32.xlu0 %v1534_v17, 256 }
  0xcb   :  { %v6751_v22 = vpop.xlane.xlu0 %677  ;;  %v6753_v23 = vpop.xlane.xlu1 %680  ;;  %1543 = vbcast.lane.b32.xlu1 %v1541_v20, 256  ;;  %v1923_v20 = vrot.slane %v6017_v37, %v6731_v11 }
  0xcc   :  { %10462 = vst [vmem:[#allocation22_spill] sm:$0xff] %v6751_v22  ;;  %10463 = vst [vmem:[#allocation23_spill] sm:$0xff] %v6753_v23  ;;  %1550 = vbcast.lane.b32.xlu0 %v1548_v21, 256  ;;  %v6018_v21 = vld [vmem:[%s10279_s3 + $0x18] sm:$0xff] }
  0xcf   :  { %v6757_v28 = vpop.xlane.xlu0 %683  ;;  %v6759_v29 = vpop.xlane.xlu1 %686  ;;  %1557 = vbcast.lane.b32.xlu1 %v1555_v24, 256 }
  0xd0   :  { %10464 = vst [vmem:[#allocation24_spill] sm:$0xff] %v6757_v28  ;;  %10465 = vst [vmem:[#allocation25_spill] sm:$0xff] %v6759_v29  ;;  %1564 = vbcast.lane.b32.xlu0 %v1562_v27, 256 }
  0xd3   :  { %v6763_v32 = vpop.xlane.xlu0 %689  ;;  %v6765_v34 = vpop.xlane.xlu1 %692  ;;  %1571 = vbcast.lane.b32.xlu1 %v1569_v30, 256  ;;  %v1930_v30 = vrot.slane %v6017_v37, %v6739_v15  ;;  %v1958_v37 = vrot.slane %v6018_v21, %v6715_v63 }
  0xd4   :  { %10466 = vst [vmem:[#allocation26_spill] sm:$0xff] %v6763_v32  ;;  %10467 = vst [vmem:[#allocation27_spill] sm:$0xff] %v6765_v34  ;;  %1578 = vbcast.lane.b32.xlu0 %v1576_v31, 256  ;;  %v1937_v31 = vrot.slane %v6018_v21, %v6309_v10 }
  0xd7   :  { %v6772_v40 = vpop.xlane.xlu0 %695  ;;  %v6774_v41 = vpop.xlane.xlu1 %698  ;;  %1585 = vbcast.lane.b32.xlu1 %v1583_v35, 256 }
  0xd8   :  { %10468 = vst [vmem:[#allocation28_spill] sm:$0xff] %v6772_v40  ;;  %10469 = vst [vmem:[#allocation29_spill] sm:$0xff] %v6774_v41  ;;  %1592 = vbcast.lane.b32.xlu0 %v1590_v36, 256 }
  0xdb   :  { %v6778_v46 = vpop.xlane.xlu0 %701  ;;  %v6780_v47 = vpop.xlane.xlu1 %704  ;;  %1599 = vbcast.lane.b32.xlu1 %v1597_v42, 256  ;;  %v1944_v42 = vrot.slane %v6018_v21, %v6696_v54 }
  0xdc   :  { %10470 = vst [vmem:[#allocation30_spill] sm:$0xff] %v6778_v46  ;;  %10471 = vst [vmem:[#allocation31_spill] sm:$0xff] %v6780_v47  ;;  %1883 = vbcast.lane.b32.xlu0 %v1881_v43, 256  ;;  %v1951_v43 = vrot.slane %v6018_v21, %v6707_v59 }
  0xdf   :  { %v6784_v62 = vpop.xlane.xlu0 %707  ;;  %v6786_v1 = vpop.xlane.xlu1 %710  ;;  %1890 = vbcast.lane.b32.xlu1 %v1888_v55, 256 }
  0xe0   :  { %10472 = vst [vmem:[#allocation32_spill] sm:$0xff] %v6784_v62  ;;  %10473 = vst [vmem:[#allocation33_spill] sm:$0xff] %v6786_v1  ;;  %1897 = vbcast.lane.b32.xlu0 %v1895_v58, 256 }
  0xe3   :  { %v6790_v14 = vpop.xlane.xlu0 %713  ;;  %v6792_v17 = vpop.xlane.xlu1 %716  ;;  %1904 = vbcast.lane.b32.xlu1 %v1902_v6, 256  ;;  %v1965_v6 = vrot.slane %v6018_v21, %v6719_v2 }
  0xe4   :  { %10474 = vst [vmem:[#allocation34_spill] sm:$0xff] %v6790_v14  ;;  %10475 = vst [vmem:[#allocation35_spill] sm:$0xff] %v6792_v17  ;;  %1911 = vbcast.lane.b32.xlu0 %v1909_v8, 256 }
  0xe7   :  { %v6799_v24 = vpop.xlane.xlu0 %719  ;;  %v6801_v27 = vpop.xlane.xlu1 %722  ;;  %1918 = vbcast.lane.b32.xlu1 %v1916_v18, 256 }
  0xe8   :  { %10476 = vst [vmem:[#allocation36_spill] sm:$0xff] %v6799_v24  ;;  %10477 = vst [vmem:[#allocation37_spill] sm:$0xff] %v6801_v27  ;;  %1925 = vbcast.lane.b32.xlu0 %v1923_v20, 256  ;;  %v1972_v20 = vrot.slane %v6018_v21, %v6727_v7 }
  0xeb   :  { %v6805_v35 = vpop.xlane.xlu0 %1015  ;;  %v6807_v36 = vpop.xlane.xlu1 %1018  ;;  %1932 = vbcast.lane.b32.xlu1 %v1930_v30, 256  ;;  %v1979_v30 = vrot.slane %v6018_v21, %v6731_v11 }
  0xec   :  { %1939 = vbcast.lane.b32.xlu0 %v1937_v31, 256  ;;  %v6019_v31 = vld [vmem:[%s10279_s3 + $0x20] sm:$0xff] }
  0xed   :  { %v2526_v4 = vrot.slane %v6019_v31, %v6309_v10  ;;  %v2533_v5 = vrot.slane %v6019_v31, %v6696_v54  ;;  %v2540_v34 = vrot.slane %v6019_v31, %v6707_v59 }
  0xef   :  { %v6811_v55 = vpop.xlane.xlu0 %1021  ;;  %v6813_v58 = vpop.xlane.xlu1 %1024  ;;  %1946 = vbcast.lane.b32.xlu1 %v1944_v42, 256 }
  0xf0   :  { %1953 = vbcast.lane.b32.xlu0 %v1951_v43, 256  ;;  %v1986_v43 = vrot.slane %v6018_v21, %v6739_v15  ;;  %v2547_v21 = vrot.slane %v6019_v31, %v6715_v63 }
  0xf3   :  { %v6817_v8 = vpop.xlane.xlu0 %1027  ;;  %v6819_v18 = vpop.xlane.xlu1 %1030  ;;  %1960 = vbcast.lane.b32.xlu1 %v1958_v37, 256  ;;  %v6231_v37 = vmov 0  }
  0xf4   :  { %10478 = vst [vmem:[#allocation38_spill] sm:$0xff] %v6817_v8  ;;  %10479 = vst [vmem:[#allocation39_spill] sm:$0xff] %v6819_v18  ;;  %1967 = vbcast.lane.b32.xlu0 %v1965_v6, 256  ;;  %6197 = vset.pattern.permute.xlu1 %v6231_v37 }
  0xf5   :  { %6196 = vset.pattern.permute.xlu0 %v6231_v37 }
  0xf7   :  { %v6826_v42 = vpop.xlane.xlu0 %1033  ;;  %v6828_v0 = vpop.xlane.xlu1 %1036  ;;  %1974 = vbcast.lane.b32.xlu1 %v1972_v20, 256 }
  0xf8   :  { %10480 = vst [vmem:[#allocation40_spill] sm:$0xff] %v6826_v42  ;;  %10481 = vst [vmem:[#allocation41_spill] sm:$0xff] %v6828_v0  ;;  %1981 = vbcast.lane.b32.xlu0 %v1979_v30, 256  ;;  %v2554_v30 = vrot.slane %v6019_v31, %v6719_v2 }
  0xfb   :  { %v6832_v6 = vpop.xlane.xlu0 %1039  ;;  %v6834_v27 = vpop.xlane.xlu1 %1042  ;;  %1988 = vbcast.lane.b32.xlu1 %v1986_v43, 256  ;;  %v2561_v43 = vrot.slane %v6019_v31, %v6727_v7 }
  0xfc   :  { %10482 = vst [vmem:[#allocation42_spill] sm:$0xff] %v6832_v6  ;;  %10483 = vst [vmem:[#allocation43_spill] sm:$0xff] %v6834_v27  ;;  %2528 = vbcast.lane.b32.xlu0 %v2526_v4, 256  ;;  %v2568_v4 = vrot.slane %v6019_v31, %v6731_v11  ;;  %v6020_v27 = vld [vmem:[%s10279_s3 + $0x28] sm:$0xff] }
  0xfd   :  { %v2582_v32 = vrot.slane %v6020_v27, %v6309_v10  ;;  %v2596_v6 = vrot.slane %v6020_v27, %v6707_v59  ;;  %v2610_v10 = vrot.slane %v6020_v27, %v6719_v2 }
  0xff   :  { %v6838_v26 = vpop.xlane.xlu0 %1045  ;;  %v6840_v20 = vpop.xlane.xlu1 %1048  ;;  %2535 = vbcast.lane.b32.xlu1 %v2533_v5, 256 }
 0x100   :  { %10484 = vst [vmem:[#allocation44_spill] sm:$0xff] %v6838_v26  ;;  %10485 = vst [vmem:[#allocation45_spill] sm:$0xff] %v6840_v20  ;;  %2542 = vbcast.lane.b32.xlu0 %v2540_v34, 256  ;;  %v2575_v34 = vrot.slane %v6019_v31, %v6739_v15  ;;  %v2603_v31 = vrot.slane %v6020_v27, %v6715_v63  ;;  %v724_v26 = vadd.f32 %v6733_v12, %v6661_v33 }
 0x103   :  { %v6844_v37 = vpop.xlane.xlu0 %1051  ;;  %v6846_v24 = vpop.xlane.xlu1 %1054  ;;  %2549 = vbcast.lane.b32.xlu1 %v2547_v21, 256 }
 0x104   :  { %10486 = vst [vmem:[#allocation46_spill] sm:$0xff] %v6844_v37  ;;  %10487 = vst [vmem:[#allocation47_spill] sm:$0xff] %v6846_v24  ;;  %2556 = vbcast.lane.b32.xlu0 %v2554_v30, 256  ;;  %v2589_v30 = vrot.slane %v6020_v27, %v6696_v54  ;;  %v2624_v54 = vrot.slane %v6020_v27, %v6731_v11  ;;  %v725_v37 = vadd.f32 %v6735_v13, %v6677_v44 }
 0x107   :  { %v6853_v5 = vpop.xlane.xlu0 %1057  ;;  %v6855_v3 = vpop.xlane.xlu1 %1060  ;;  %2563 = vbcast.lane.b32.xlu1 %v2561_v43, 256 }
 0x108   :  { %10488 = vst [vmem:[#allocation48_spill] sm:$0xff] %v6853_v5  ;;  %10489 = vst [vmem:[#allocation49_spill] sm:$0xff] %v6855_v3  ;;  %2570 = vbcast.lane.b32.xlu0 %v2568_v4, 256 }
 0x10b   :  { %v6859_v21 = vpop.xlane.xlu0 %1063  ;;  %v6861_v25 = vpop.xlane.xlu1 %1066  ;;  %2577 = vbcast.lane.b32.xlu1 %v2575_v34, 256  ;;  %v2617_v34 = vrot.slane %v6020_v27, %v6727_v7 }
 0x10c   :  { %10490 = vst [vmem:[#allocation50_spill] sm:$0xff] %v6859_v21  ;;  %10491 = vst [vmem:[#allocation51_spill] sm:$0xff] %v6861_v25  ;;  %2584 = vbcast.lane.b32.xlu0 %v2582_v32, 256 }
 0x10f   :  { %v6865_v17 = vpop.xlane.xlu0 %1069  ;;  %v6867_v61 = vpop.xlane.xlu1 %1072  ;;  %2591 = vbcast.lane.b32.xlu1 %v2589_v30, 256 }
 0x110   :  { %10492 = vst [vmem:[#allocation52_spill] sm:$0xff] %v6865_v17  ;;  %10493 = vst [vmem:[#allocation53_spill] sm:$0xff] %v6867_v61  ;;  %2598 = vbcast.lane.b32.xlu0 %v2596_v6, 256  ;;  %v2631_v61 = vrot.slane %v6020_v27, %v6739_v15 }
 0x113   :  { %v1367_v43 = vpop.xlane.xlu0 %1366  ;;  %v1370_v4 = vpop.xlane.xlu1 %1369  ;;  %2605 = vbcast.lane.b32.xlu1 %v2603_v31, 256 }
 0x114   :  { %2612 = vbcast.lane.b32.xlu0 %v2610_v10, 256  ;;  %v1426_v46 = vadd.f32 %v1370_v4, %v6807_v36  ;;  %v726_v36 = vadd.f32 %v6745_v16, %v6663_v9 }
 0x116   :  { %v1446_v41 = vadd.f32 %v1426_v46, %v725_v37 }
 0x117   :  { %v1373_v32 = vpop.xlane.xlu0 %1372  ;;  %v6873_v59 = vpop.xlane.xlu1 %1375  ;;  %2619 = vbcast.lane.b32.xlu1 %v2617_v34, 256 }
 0x118   :  { %2626 = vbcast.lane.b32.xlu0 %v2624_v54, 256  ;;  %v1427_v45 = vadd.f32 %v1373_v32, %v6811_v55  ;;  %v6973_v40 = vmul.f32 0.5, %v1446_v41 }
 0x11a   :  { %v1447_v50 = vadd.f32 %v1427_v45, %v726_v36 }
 0x11b   :  { %v6876_v30 = vpop.xlane.xlu0 %1378  ;;  %v6878_v63 = vpop.xlane.xlu1 %1381  ;;  %2633 = vbcast.lane.b32.xlu1 %v2631_v61, 256 }
 0x11c   :  { %10494 = vst [vmem:[#allocation54_spill] sm:$0xff] %v6876_v30  ;;  %10495 = vst [vmem:[#allocation55_spill] sm:$0xff] %v6878_v63  ;;  %v6983_v12 = vmul.f32 0.5, %v1447_v50 }
 0x11f   :  { %v6880_v2 = vpop.xlane.xlu0 %1384  ;;  %v6882_v6 = vpop.xlane.xlu1 %1387 }
 0x120   :  { %10496 = vst [vmem:[#allocation56_spill] sm:$0xff] %v6880_v2  ;;  %10497 = vst [vmem:[#allocation57_spill] sm:$0xff] %v6882_v6 }
 0x123   :  { %v6884_v7 = vpop.xlane.xlu0 %1390  ;;  %v6886_v31 = vpop.xlane.xlu1 %1393 }
 0x124   :  { %10498 = vst [vmem:[#allocation58_spill] sm:$0xff] %v6884_v7  ;;  %10499 = vst [vmem:[#allocation59_spill] sm:$0xff] %v6886_v31 }
 0x127   :  { %v6888_v11 = vpop.xlane.xlu0 %1396  ;;  %v6890_v10 = vpop.xlane.xlu1 %1399 }
 0x128   :  { %10500 = vst [vmem:[#allocation60_spill] sm:$0xff] %v6888_v11  ;;  %10501 = vst [vmem:[#allocation61_spill] sm:$0xff] %v6890_v10  ;;  %v1425_v11 = vadd.f32 %v1367_v43, %v6805_v35 }
 0x12a   :  { %v1445_v4 = vadd.f32 %v1425_v11, %v724_v26 }
 0x12b   :  { %v6892_v34 = vpop.xlane.xlu0 %1402  ;;  %v6894_v15 = vpop.xlane.xlu1 %1405 }
 0x12c   :  { %10502 = vst [vmem:[#allocation62_spill] sm:$0xff] %v6892_v34  ;;  %10503 = vst [vmem:[#allocation63_spill] sm:$0xff] %v6894_v15  ;;  %v6979_v35 = vmul.f32 0.5, %v1445_v4 }
 0x12f   :  { %v6896_v27 = vpop.xlane.xlu0 %1408  ;;  %v6898_v54 = vpop.xlane.xlu1 %1411 }
 0x130   :  { %10504 = vst [vmem:[#allocation64_spill] sm:$0xff] %v6896_v27  ;;  %10505 = vst [vmem:[#allocation65_spill] sm:$0xff] %v6898_v54 }
 0x133   :  { %v6900_v61 = vpop.xlane.xlu0 %1414  ;;  %v6902_v17 = vpop.xlane.xlu1 %1417 }
 0x134   :  { %10506 = vst [vmem:[#allocation66_spill] sm:$0xff] %v6900_v61  ;;  %10507 = vst [vmem:[#allocation67_spill] sm:$0xff] %v6902_v17 }
 0x137   :  { %v6904_v25 = vpop.xlane.xlu0 %1420  ;;  %v6906_v7 = vpop.xlane.xlu1 %1423 }
 0x138   :  { %10508 = vst [vmem:[#allocation68_spill] sm:$0xff] %v6904_v25  ;;  %10509 = vst [vmem:[#allocation69_spill] sm:$0xff] %v6906_v7 }
 0x13b   :  { %v6908_v31 = vpop.permute.xlu0 %1494  ;;  %v6910_v29 = vpop.permute.xlu1 %1501 }
 0x13c   :  { %10510 = vst [vmem:[#allocation70_spill] sm:$0xff] %v6910_v29  ;;  %v1617_v46 = vadd.f32 %v6908_v31, %v6979_v35  ;;  %v1618_v43 = vadd.f32 %v6910_v29, %v6979_v35 }
 0x13f   :  { %v6912_v51 = vpop.permute.xlu0 %1522  ;;  %v6914_v6 = vpop.permute.xlu1 %1508 }
 0x140   :  { %10511 = vst [vmem:[#allocation71_spill] sm:$0xff] %v6912_v51  ;;  %10512 = vst [vmem:[#allocation72_spill] sm:$0xff] %v6914_v6  ;;  %v1621_v23 = vadd.f32 %v6912_v51, %v6979_v35 }
 0x143   :  { %v6916_v0 = vpop.permute.xlu0 %1536  ;;  %v6918_v14 = vpop.permute.xlu1 %1515 }
 0x144   :  { %10513 = vst [vmem:[#allocation73_spill] sm:$0xff] %v6916_v0  ;;  %v1620_v28 = vadd.f32 %v6918_v14, %v6979_v35 }
 0x147   :  { %v6920_v60 = vpop.permute.xlu0 %1550  ;;  %v6922_v61 = vpop.permute.xlu1 %1529 }
 0x148   :  { %10514 = vst [vmem:[#allocation74_spill] sm:$0xff] %v6920_v60  ;;  %v1622_v22 = vadd.f32 %v6922_v61, %v6979_v35 }
 0x14b   :  { %v6924_v17 = vpop.permute.xlu0 %1564  ;;  %v6926_v25 = vpop.permute.xlu1 %1543 }
 0x14c   :  { %10515 = vst [vmem:[#allocation75_spill] sm:$0xff] %v6924_v17  ;;  %10516 = vst [vmem:[#allocation76_spill] sm:$0xff] %v6926_v25 }
 0x14f   :  { %v6928_v7 = vpop.permute.xlu0 %1578  ;;  %v6930_v21 = vpop.permute.xlu1 %1557 }
 0x150   :  { %10517 = vst [vmem:[#allocation77_spill] sm:$0xff] %v6928_v7  ;;  %10518 = vst [vmem:[#allocation78_spill] sm:$0xff] %v6930_v21 }
 0x153   :  { %v6932_v1 = vpop.permute.xlu0 %1592  ;;  %v6934_v57 = vpop.permute.xlu1 %1571 }
 0x154   :  { %10519 = vst [vmem:[#allocation79_spill] sm:$0xff] %v6932_v1 }
 0x157   :  { %v6936_v54 = vpop.permute.xlu0 %1883  ;;  %v6938_v3 = vpop.permute.xlu1 %1585 }
 0x158   :  { %10520 = vst [vmem:[#allocation80_spill] sm:$0xff] %v6936_v54  ;;  %10521 = vst [vmem:[#allocation81_spill] sm:$0xff] %v6938_v3  ;;  %v2006_v33 = vadd.f32 %v6936_v54, %v6973_v40 }
 0x15a   :  { %v2262_v9 = vmax.f32 %v1617_v46, %v2006_v33 }
 0x15b   :  { %v6940_v62 = vpop.permute.xlu0 %1897  ;;  %v6942_v56 = vpop.permute.xlu1 %1599 }
 0x15c   :  { %10522 = vst [vmem:[#allocation82_spill] sm:$0xff] %v6940_v62  ;;  %10523 = vst [vmem:[#allocation83_spill] sm:$0xff] %v6942_v56  ;;  %v2008_v33 = vadd.f32 %v6940_v62, %v6973_v40 }
 0x15f   :  { %v6944_v27 = vpop.permute.xlu0 %1911  ;;  %v6946_v5 = vpop.permute.xlu1 %1890 }
 0x160   :  { %10524 = vst [vmem:[#allocation84_spill] sm:$0xff] %v6944_v27  ;;  %10525 = vst [vmem:[#allocation85_spill] sm:$0xff] %v6946_v5  ;;  %v2007_v50 = vadd.f32 %v6946_v5, %v6973_v40  ;;  %v2010_v48 = vadd.f32 %v6944_v27, %v6973_v40 }
 0x162   :  { %v2263_v36 = vmax.f32 %v1618_v43, %v2007_v50 }
 0x163   :  { %v6948_v47 = vpop.permute.xlu0 %1925  ;;  %v6950_v52 = vpop.permute.xlu1 %1904 }
 0x164   :  { %10526 = vst [vmem:[#allocation86_spill] sm:$0xff] %v6948_v47  ;;  %v2009_v46 = vadd.f32 %v6950_v52, %v6973_v40 }
 0x166   :  { %v2265_v42 = vmax.f32 %v1620_v28, %v2009_v46  ;;  %v2012_v46 = vadd.f32 %v6948_v47, %v6973_v40 }
 0x167   :  { %v6952_v15 = vpop.permute.xlu0 %1939  ;;  %v6954_v24 = vpop.permute.xlu1 %1918 }
 0x168   :  { %10527 = vst [vmem:[#allocation87_spill] sm:$0xff] %v6952_v15  ;;  %10528 = vst [vmem:[#allocation88_spill] sm:$0xff] %v6954_v24 }
 0x16b   :  { %v6957_v53 = vpop.permute.xlu0 %1953  ;;  %v6959_v34 = vpop.permute.xlu1 %1932 }
 0x16c   :  { %10529 = vst [vmem:[#allocation89_spill] sm:$0xff] %v6957_v53  ;;  %10530 = vst [vmem:[#allocation90_spill] sm:$0xff] %v6959_v34 }
 0x16f   :  { %v6967_v10 = vpop.permute.xlu0 %1967  ;;  %v6969_v20 = vpop.permute.xlu1 %1946 }
 0x170   :  { %10531 = vst [vmem:[#allocation91_spill] sm:$0xff] %v6967_v10  ;;  %10532 = vst [vmem:[#allocation92_spill] sm:$0xff] %v6969_v20 }
 0x173   :  { %v6975_v44 = vpop.permute.xlu0 %1981  ;;  %v6977_v13 = vpop.permute.xlu1 %1960 }
 0x174   :  { %10533 = vst [vmem:[#allocation93_spill] sm:$0xff] %v6975_v44  ;;  %10534 = vst [vmem:[#allocation94_spill] sm:$0xff] %v6977_v13 }
 0x177   :  { %v6987_v55 = vpop.permute.xlu0 %2528  ;;  %v6989_v26 = vpop.permute.xlu1 %1974 }
 0x178   :  { %10535 = vst [vmem:[#allocation95_spill] sm:$0xff] %v6987_v55  ;;  %v2651_v45 = vadd.f32 %v6987_v55, %v6983_v12 }
 0x17a   :  { %v2907_v16 = vmax.f32 %v2262_v9, %v2651_v45  ;;  %v1619_v45 = vadd.f32 %v6914_v6, %v6979_v35 }
 0x17b   :  { %v6993_v41 = vpop.permute.xlu0 %2542  ;;  %v6995_v37 = vpop.permute.xlu1 %1988 }
 0x17c   :  { %10536 = vst [vmem:[#allocation96_spill] sm:$0xff] %v6993_v41  ;;  %10537 = vst [vmem:[#allocation97_spill] sm:$0xff] %v6995_v37  ;;  %3420 = vperm.xlu0 %6196, %v2907_v16   ;;  %v2653_v16 = vadd.f32 %v6993_v41, %v6983_v12  ;;  %v2264_v2 = vmax.f32 %v1619_v45, %v2008_v33  ;;  %v2266_v33 = vmax.f32 %v1621_v23, %v2010_v48 }
 0x17d   :  { %v1624_v23 = vadd.f32 %v6926_v25, %v6979_v35 }
 0x17e   :  { %v2909_v39 = vmax.f32 %v2264_v2, %v2653_v16  ;;  %v2013_v2 = vadd.f32 %v6959_v34, %v6973_v40  ;;  %v1623_v16 = vadd.f32 %v6916_v0, %v6979_v35 }
 0x17f   :  { %v7001_v32 = vpop.permute.xlu0 %2556  ;;  %v7003_v11 = vpop.permute.xlu1 %2535 }
 0x180   :  { %10538 = vst [vmem:[#allocation98_spill] sm:$0xff] %v7001_v32  ;;  %10539 = vst [vmem:[#allocation99_spill] sm:$0xff] %v7003_v11  ;;  %v2652_v4 = vadd.f32 %v7003_v11, %v6983_v12  ;;  %v2655_v18 = vadd.f32 %v7001_v32, %v6983_v12  ;;  %v2269_v30 = vmax.f32 %v1624_v23, %v2013_v2 }
 0x181   :  { %v2016_v2 = vadd.f32 %v6957_v53, %v6973_v40 }
 0x182   :  { %v2908_v9 = vmax.f32 %v2263_v36, %v2652_v4  ;;  %v2011_v4 = vadd.f32 %v6954_v24, %v6973_v40 }
 0x183   :  { %v7017_v50 = vpop.permute.xlu0 %2570  ;;  %v7019_v43 = vpop.permute.xlu1 %2549 }
 0x184   :  { %10540 = vst [vmem:[#allocation100_spill] sm:$0xff] %v7017_v50  ;;  %3423 = vperm.xlu1 %6197, %v2908_v9   ;;  %v2654_v36 = vadd.f32 %v7019_v43, %v6983_v12  ;;  %v2267_v45 = vmax.f32 %v1622_v22, %v2011_v4  ;;  %v2657_v48 = vadd.f32 %v7017_v50, %v6983_v12 }
 0x185   :  { %v2014_v4 = vadd.f32 %v6952_v15, %v6973_v40 }
 0x186   :  { %v2910_v63 = vmax.f32 %v2265_v42, %v2654_v36  ;;  %v2911_v36 = vmax.f32 %v2266_v33, %v2655_v18  ;;  %v2015_v33 = vadd.f32 %v6969_v20, %v6973_v40 }
 0x187   :  { %v7033_v9 = vpop.permute.xlu0 %2584  ;;  %v7035_v28 = vpop.permute.xlu1 %2563 }
 0x188   :  { %10541 = vst [vmem:[#allocation101_spill] sm:$0xff] %v7033_v9  ;;  %10542 = vst [vmem:[#allocation102_spill] sm:$0xff] %v7035_v28  ;;  %3426 = vperm.xlu1 %6197, %v2909_v39   ;;  %3429 = vperm.xlu0 %6196, %v2910_v63   ;;  %v2656_v42 = vadd.f32 %v7035_v28, %v6983_v12  ;;  %v2268_v63 = vmax.f32 %v1623_v16, %v2012_v46 }
 0x189   :  { %v2659_v46 = vadd.f32 %v7033_v9, %v6983_v12  ;;  %v1626_v16 = vadd.f32 %v6930_v21, %v6979_v35 }
 0x18a   :  { %v2912_v38 = vmax.f32 %v2267_v45, %v2656_v42  ;;  %v1625_v45 = vadd.f32 %v6920_v60, %v6979_v35  ;;  %v2913_v42 = vmax.f32 %v2268_v63, %v2657_v48  ;;  %v1627_v63 = vadd.f32 %v6924_v17, %v6979_v35 }
 0x18b   :  { %v7049_v39 = vpop.permute.xlu0 %2598  ;;  %v7051_v22 = vpop.permute.xlu1 %2577  ;;  %v2271_v23 = vmax.f32 %v1626_v16, %v2015_v33  ;;  %v1428_v33 = vadd.f32 %v6873_v59, %v6813_v58  ;;  %v2018_v16 = vadd.f32 %v6967_v10, %v6973_v40  ;;  %v1629_v58 = vadd.f32 %v6928_v7, %v6979_v35 }
 0x18c   :  { %10543 = vst [vmem:[#allocation103_spill] sm:$0xff] %v7049_v39  ;;  %10544 = vst [vmem:[#allocation104_spill] sm:$0xff] %v7051_v22  ;;  %3432 = vperm.xlu1 %6197, %v2911_v36   ;;  %3435 = vperm.xlu0 %6196, %v2912_v38   ;;  %v2658_v18 = vadd.f32 %v7051_v22, %v6983_v12  ;;  %v2270_v38 = vmax.f32 %v1625_v45, %v2014_v4 }
 0x18d   :  { %v2661_v4 = vadd.f32 %v7049_v39, %v6983_v12 }
 0x18e   :  { %v2914_v8 = vmax.f32 %v2269_v30, %v2658_v18  ;;  %v2017_v30 = vadd.f32 %v6977_v13, %v6973_v40  ;;  %v2915_v18 = vmax.f32 %v2270_v38, %v2659_v46  ;;  %v2019_v46 = vadd.f32 %v6989_v26, %v6973_v40 }
 0x18f   :  { %v7065_v36 = vpop.permute.xlu1 %2591  ;;  %v7073_v48 = vpop.permute.xlu0 %2612  ;;  %v727_v38 = vadd.f32 %v6747_v19, %v6685_v49  ;;  %v2020_v49 = vadd.f32 %v6975_v44, %v6973_v40 }
 0x190   :  { %10545 = vst [vmem:[#allocation105_spill] sm:$0xff] %v7065_v36  ;;  %3438 = vperm.xlu1 %6197, %v2913_v42   ;;  %3441 = vperm.xlu0 %6196, %v2914_v8   ;;  %v2660_v60 = vadd.f32 %v7065_v36, %v6983_v12  ;;  %10546 = vst [vmem:[#allocation106_spill] sm:$0xff] %v7073_v48  ;;  %v1628_v8 = vadd.f32 %v6934_v57, %v6979_v35 }
 0x191   :  { %v2272_v42 = vmax.f32 %v1627_v63, %v2016_v2 }
 0x192   :  { %v2916_v9 = vmax.f32 %v2271_v23, %v2660_v60  ;;  %v2273_v17 = vmax.f32 %v1628_v8, %v2017_v30  ;;  %v2663_v23 = vadd.f32 %v7073_v48, %v6983_v12  ;;  %v1448_v30 = vadd.f32 %v1428_v33, %v727_v38 }
 0x193   :  { %v7083_v45 = vpop.permute.xlu1 %2605  ;;  %v2917_v59 = vmax.f32 %v2272_v42, %v2661_v4  ;;  %v7099_v63 = vpop.permute.xlu0 %2626  ;;  %v2274_v8 = vmax.f32 %v1629_v58, %v2018_v16  ;;  %v2021_v4 = vadd.f32 %v6995_v37, %v6973_v40  ;;  %v1631_v33 = vadd.f32 %v6932_v1, %v6979_v35 }
 0x194   :  { %10547 = vst [vmem:[#allocation107_spill] sm:$0xff] %v7083_v45  ;;  %3444 = vperm.xlu1 %6197, %v2915_v18   ;;  %3447 = vperm.xlu0 %6196, %v2916_v9   ;;  %v2662_v60 = vadd.f32 %v7083_v45, %v6983_v12  ;;  %v1630_v9 = vadd.f32 %v6938_v3, %v6979_v35  ;;  %10548 = vst [vmem:[#allocation108_spill] sm:$0xff] %v7099_v63 }
 0x195   :  { %v2919_v42 = vmax.f32 %v2274_v8, %v2663_v23  ;;  %v2665_v16 = vadd.f32 %v7099_v63, %v6983_v12  ;;  %v1632_v38 = vadd.f32 %v6942_v56, %v6979_v35  ;;  %v2276_v23 = vmax.f32 %v1631_v33, %v2020_v49 }
 0x196   :  { %v2918_v2 = vmax.f32 %v2273_v17, %v2662_v60  ;;  %v2275_v19 = vmax.f32 %v1630_v9, %v2019_v46  ;;  %v2022_v46 = vadd.f32 %v6936_v54, %v6983_v12  ;;  %v1633_v35 = vadd.f32 %v6908_v31, %v6973_v40 }
 0x197   :  { %v7101_v18 = vpop.permute.xlu1 %2619  ;;  %v2277_v9 = vmax.f32 %v1632_v38, %v2021_v4  ;;  %v2024_v4 = vadd.f32 %v6940_v62, %v6983_v12  ;;  %v2025_v33 = vadd.f32 %v6950_v52, %v6983_v12 }
 0x198   :  { %10549 = vst [vmem:[#allocation109_spill] sm:$0xff] %v7101_v18  ;;  %3450 = vperm.xlu1 %6197, %v2917_v59   ;;  %3453 = vperm.xlu0 %6196, %v2918_v2   ;;  %v2664_v17 = vadd.f32 %v7101_v18, %v6983_v12  ;;  %v2023_v59 = vadd.f32 %v6946_v5, %v6983_v12  ;;  %v7121_v2 = vmul.f32 0.5, %v1448_v30 }
 0x19a   :  { %v2920_v60 = vmax.f32 %v2275_v19, %v2664_v17  ;;  %v1634_v19 = vadd.f32 %v6910_v29, %v6973_v40  ;;  %v2921_v17 = vmax.f32 %v2276_v23, %v2665_v16  ;;  %v2667_v5 = vadd.f32 %v6987_v55, %v7121_v2 }
 0x19b   :  { %v7115_v58 = vpop.permute.xlu1 %2633  ;;  %v2668_v30 = vadd.f32 %v7003_v11, %v7121_v2  ;;  %v1636_v16 = vadd.f32 %v6918_v14, %v6973_v40 }
 0x19c   :  { %10550 = vst [vmem:[#allocation110_spill] sm:$0xff] %v7115_v58  ;;  %3456 = vperm.xlu1 %6197, %v2919_v42   ;;  %3459 = vperm.xlu0 %6196, %v2920_v60   ;;  %v2666_v8 = vadd.f32 %v7115_v58, %v6983_v12  ;;  %v2278_v42 = vmax.f32 %v1633_v35, %v2022_v46 }
 0x19d   :  { %v2279_v49 = vmax.f32 %v1634_v19, %v2023_v59  ;;  %v1635_v60 = vadd.f32 %v6914_v6, %v6973_v40  ;;  %v2669_v46 = vadd.f32 %v6993_v41, %v7121_v2  ;;  %v2026_v59 = vadd.f32 %v6944_v27, %v6983_v12 }
 0x19e   :  { %v2922_v54 = vmax.f32 %v2277_v9, %v2666_v8  ;;  %v2923_v38 = vmax.f32 %v2278_v42, %v2667_v5  ;;  %v2281_v8 = vmax.f32 %v1636_v16, %v2025_v33  ;;  %v2027_v35 = vadd.f32 %v6954_v24, %v6983_v12 }
 0x19f   :  { %v2924_v23 = vmax.f32 %v2279_v49, %v2668_v30  ;;  %v2280_v9 = vmax.f32 %v1635_v60, %v2024_v4  ;;  %v1637_v5 = vadd.f32 %v6912_v51, %v6973_v40  ;;  %v1638_v19 = vadd.f32 %v6922_v61, %v6973_v40 }
 0x1a0   :  { %3462 = vperm.xlu1 %6197, %v2921_v17   ;;  %3465 = vperm.xlu0 %6196, %v2922_v54   ;;  %v2670_v54 = vadd.f32 %v7019_v43, %v7121_v2  ;;  %v2671_v42 = vadd.f32 %v7001_v32, %v7121_v2  ;;  %v2672_v49 = vadd.f32 %v7035_v28, %v7121_v2 }
 0x1a1   :  { %v2925_v17 = vmax.f32 %v2280_v9, %v2669_v46  ;;  %v2283_v4 = vmax.f32 %v1638_v19, %v2027_v35  ;;  %v2028_v33 = vadd.f32 %v6948_v47, %v6983_v12  ;;  %v2029_v60 = vadd.f32 %v6959_v34, %v6983_v12 }
 0x1a2   :  { %v2926_v30 = vmax.f32 %v2281_v8, %v2670_v54  ;;  %v1639_v16 = vadd.f32 %v6916_v0, %v6973_v40  ;;  %v2674_v9 = vadd.f32 %v7051_v22, %v7121_v2  ;;  %v2030_v8 = vadd.f32 %v6952_v15, %v6983_v12 }
 0x1a3   :  { %v2928_v54 = vmax.f32 %v2283_v4, %v2672_v49  ;;  %v2031_v19 = vadd.f32 %v6969_v20, %v6983_v12  ;;  %v10552_v4 = vld [vmem:[#allocation101_spill] sm:$0xff] }
 0x1a4   :  { %3468 = vperm.xlu1 %6197, %v2923_v38   ;;  %3471 = vperm.xlu0 %6196, %v2924_v23   ;;  %v2282_v38 = vmax.f32 %v1637_v5, %v2026_v59  ;;  %v1640_v23 = vadd.f32 %v6926_v25, %v6973_v40  ;;  %v2673_v59 = vadd.f32 %v7017_v50, %v7121_v2 }
 0x1a5   :  { %v2284_v35 = vmax.f32 %v1639_v16, %v2028_v33  ;;  %v2675_v22 = vadd.f32 %v10552_v4, %v7121_v2  ;;  %v2033_v16 = vadd.f32 %v6977_v13, %v6983_v12 }
 0x1a6   :  { %v2927_v46 = vmax.f32 %v2282_v38, %v2671_v42  ;;  %v2285_v5 = vmax.f32 %v1640_v23, %v2029_v60  ;;  %v1642_v42 = vadd.f32 %v6930_v21, %v6973_v40  ;;  %v2032_v60 = vadd.f32 %v6957_v53, %v6983_v12  ;;  %v10553_v23 = vld [vmem:[#allocation75_spill] sm:$0xff] }
 0x1a7   :  { %v2929_v49 = vmax.f32 %v2284_v35, %v2673_v59  ;;  %v1643_v59 = vadd.f32 %v10553_v23, %v6973_v40 }
 0x1a8   :  { %3474 = vperm.xlu1 %6197, %v2925_v17   ;;  %3477 = vperm.xlu0 %6196, %v2926_v30   ;;  %v10551_v17 = vld [vmem:[#allocation74_spill] sm:$0xff]  ;;  %v2930_v38 = vmax.f32 %v2285_v5, %v2674_v9  ;;  %v2287_v33 = vmax.f32 %v1642_v42, %v2031_v19  ;;  %v1644_v9 = vadd.f32 %v6934_v57, %v6973_v40 }
 0x1a9   :  { %v1641_v30 = vadd.f32 %v10551_v17, %v6973_v40  ;;  %v2678_v19 = vadd.f32 %v7083_v45, %v7121_v2  ;;  %v10555_v42 = vld [vmem:[#allocation54_spill] sm:$0xff]  ;;  %v2288_v23 = vmax.f32 %v1643_v59, %v2032_v60  ;;  %v1646_v45 = vadd.f32 %v6938_v3, %v6973_v40 }
 0x1aa   :  { %v2289_v13 = vmax.f32 %v1644_v9, %v2033_v16  ;;  %v2680_v60 = vadd.f32 %v7101_v18, %v7121_v2 }
 0x1ac   :  { %3480 = vperm.xlu1 %6197, %v2927_v46   ;;  %3483 = vperm.xlu0 %6196, %v2928_v54   ;;  %v2676_v46 = vadd.f32 %v7065_v36, %v7121_v2  ;;  %v2286_v54 = vmax.f32 %v1641_v30, %v2030_v8  ;;  %v2677_v8 = vadd.f32 %v7049_v39, %v7121_v2  ;;  %v10554_v30 = vld [vmem:[#allocation38_spill] sm:$0xff] }
 0x1ad   :  { %v1645_v39 = vadd.f32 %v6928_v7, %v6973_v40 }
 0x1ae   :  { %v2931_v35 = vmax.f32 %v2286_v54, %v2675_v22  ;;  %v2932_v5 = vmax.f32 %v2287_v33, %v2676_v46  ;;  %v2035_v22 = vadd.f32 %v6989_v26, %v6983_v12  ;;  %v10556_v46 = vld [vmem:[#allocation8_spill] sm:$0xff]  ;;  %v10557_v54 = vld [vmem:[#allocation22_spill] sm:$0xff] }
 0x1af   :  { %v728_v33 = vadd.f32 %v10557_v54, %v10556_v46  ;;  %v2037_v46 = vadd.f32 %v6995_v37, %v6983_v12 }
 0x1b0   :  { %3486 = vperm.xlu1 %6197, %v2929_v49   ;;  %3489 = vperm.xlu0 %6196, %v2930_v38   ;;  %v1429_v49 = vadd.f32 %v10555_v42, %v10554_v30  ;;  %v2034_v38 = vadd.f32 %v6967_v10, %v6983_v12  ;;  %v2933_v30 = vmax.f32 %v2288_v23, %v2677_v8 }
 0x1b1   :  { %v2934_v42 = vmax.f32 %v2289_v13, %v2678_v19  ;;  %v2291_v9 = vmax.f32 %v1646_v45, %v2035_v22  ;;  %v1647_v13 = vadd.f32 %v6932_v1, %v6973_v40  ;;  %v1648_v23 = vadd.f32 %v6942_v56, %v6973_v40 }
 0x1b2   :  { %v1449_v16 = vadd.f32 %v1429_v49, %v728_v33  ;;  %v2290_v59 = vmax.f32 %v1645_v39, %v2034_v38  ;;  %v2681_v39 = vadd.f32 %v7099_v63, %v7121_v2  ;;  %v2682_v45 = vadd.f32 %v7115_v58, %v7121_v2  ;;  %v10558_v49 = vld [vmem:[#allocation80_spill] sm:$0xff] }
 0x1b3   :  { %v2936_v19 = vmax.f32 %v2291_v9, %v2680_v60  ;;  %v2038_v38 = vadd.f32 %v10558_v49, %v7121_v2  ;;  %v2293_v33 = vmax.f32 %v1648_v23, %v2037_v46  ;;  %v2040_v46 = vadd.f32 %v6940_v62, %v7121_v2 }
 0x1b4   :  { %3492 = vperm.xlu1 %6197, %v2931_v35   ;;  %3495 = vperm.xlu0 %6196, %v2932_v5   ;;  %v2679_v35 = vadd.f32 %v7073_v48, %v7121_v2  ;;  %v2036_v5 = vadd.f32 %v6975_v44, %v6983_v12  ;;  %v7223_v22 = vmul.f32 0.5, %v1449_v16  ;;  %v1651_v23 = vadd.f32 %v6914_v6, %v6983_v12 }
 0x1b6   :  { %v2935_v8 = vmax.f32 %v2290_v59, %v2679_v35  ;;  %v2292_v54 = vmax.f32 %v1647_v13, %v2036_v5  ;;  %v1650_v35 = vadd.f32 %v6910_v29, %v6983_v12  ;;  %v2938_v59 = vmax.f32 %v2293_v33, %v2682_v45 }
 0x1b7   :  { %v2683_v9 = vadd.f32 %v6987_v55, %v7223_v22  ;;  %v2684_v16 = vadd.f32 %v7003_v11, %v7223_v22  ;;  %v2041_v13 = vadd.f32 %v6950_v52, %v7121_v2  ;;  %v2042_v33 = vadd.f32 %v6944_v27, %v7121_v2 }
 0x1b8   :  { %3498 = vperm.xlu1 %6197, %v2933_v30   ;;  %3501 = vperm.xlu0 %6196, %v2934_v42   ;;  %v10559_v30 = vld [vmem:[#allocation85_spill] sm:$0xff]  ;;  %v1649_v42 = vadd.f32 %v6908_v31, %v6983_v12  ;;  %v2937_v60 = vmax.f32 %v2292_v54, %v2681_v39  ;;  %v2686_v54 = vadd.f32 %v7019_v43, %v7223_v22 }
 0x1b9   :  { %v2039_v40 = vadd.f32 %v10559_v30, %v7121_v2 }
 0x1bb   :  { %v2295_v5 = vmax.f32 %v1650_v35, %v2039_v40  ;;  %v2296_v40 = vmax.f32 %v1651_v23, %v2040_v46  ;;  %v2043_v35 = vadd.f32 %v6954_v24, %v7121_v2  ;;  %v2045_v23 = vadd.f32 %v6959_v34, %v7121_v2 }
 0x1bc   :  { %3504 = vperm.xlu1 %6197, %v2935_v8   ;;  %3507 = vperm.xlu0 %6196, %v2936_v19   ;;  %v2294_v8 = vmax.f32 %v1649_v42, %v2038_v38  ;;  %v1652_v19 = vadd.f32 %v6918_v14, %v6983_v12  ;;  %v2685_v38 = vadd.f32 %v6993_v41, %v7223_v22 }
 0x1bd   :  { %v2940_v45 = vmax.f32 %v2295_v5, %v2684_v16  ;;  %v2688_v5 = vadd.f32 %v7035_v28, %v7223_v22 }
 0x1be   :  { %v2939_v39 = vmax.f32 %v2294_v8, %v2683_v9  ;;  %v2297_v42 = vmax.f32 %v1652_v19, %v2041_v13  ;;  %v2941_v9 = vmax.f32 %v2296_v40, %v2685_v38  ;;  %v2687_v8 = vadd.f32 %v7001_v32, %v7223_v22  ;;  %v10560_v40 = vld [vmem:[#allocation104_spill] sm:$0xff] }
 0x1bf   :  { %v2044_v13 = vadd.f32 %v6948_v47, %v7121_v2  ;;  %v1655_v19 = vadd.f32 %v6916_v0, %v6983_v12 }
 0x1c0   :  { %3510 = vperm.xlu1 %6197, %v2937_v60   ;;  %3513 = vperm.xlu0 %6196, %v2938_v59   ;;  %v1653_v60 = vadd.f32 %v6912_v51, %v6983_v12  ;;  %v1654_v59 = vadd.f32 %v6922_v61, %v6983_v12  ;;  %v2942_v16 = vmax.f32 %v2297_v42, %v2686_v54 }
 0x1c1   :  { %v2690_v42 = vadd.f32 %v10560_v40, %v7223_v22 }
 0x1c2   :  { %v2299_v46 = vmax.f32 %v1654_v59, %v2043_v35  ;;  %v2046_v35 = vadd.f32 %v6952_v15, %v7121_v2 }
 0x1c4   :  { %3516 = vperm.xlu1 %6197, %v2939_v39   ;;  %3519 = vperm.xlu0 %6196, %v2940_v45   ;;  %v2298_v39 = vmax.f32 %v1653_v60, %v2042_v33  ;;  %v1656_v45 = vadd.f32 %v6926_v25, %v6983_v12  ;;  %v2944_v54 = vmax.f32 %v2299_v46, %v2688_v5 }
 0x1c5   :  { %v2689_v33 = vadd.f32 %v7017_v50, %v7223_v22  ;;  %v2300_v60 = vmax.f32 %v1655_v19, %v2044_v13  ;;  %v2691_v46 = vadd.f32 %v10552_v4, %v7223_v22  ;;  %v10561_v19 = vld [vmem:[#allocation94_spill] sm:$0xff] }
 0x1c6   :  { %v2943_v38 = vmax.f32 %v2298_v39, %v2687_v8  ;;  %v2301_v59 = vmax.f32 %v1656_v45, %v2045_v23  ;;  %v1658_v8 = vadd.f32 %v6930_v21, %v6983_v12  ;;  %v2048_v23 = vadd.f32 %v6957_v53, %v7121_v2  ;;  %v10562_v21 = vld [vmem:[#allocation75_spill] sm:$0xff] }
 0x1c7   :  { %v2945_v5 = vmax.f32 %v2300_v60, %v2689_v33  ;;  %v2049_v45 = vadd.f32 %v10561_v19, %v7121_v2  ;;  %v1659_v33 = vadd.f32 %v10562_v21, %v6983_v12  ;;  %v2050_v19 = vadd.f32 %v6967_v10, %v7121_v2 }
 0x1c8   :  { %3522 = vperm.xlu1 %6197, %v2941_v9   ;;  %3525 = vperm.xlu0 %6196, %v2942_v16   ;;  %v2047_v9 = vadd.f32 %v6969_v20, %v7121_v2  ;;  %v1657_v16 = vadd.f32 %v10551_v17, %v6983_v12  ;;  %v2946_v39 = vmax.f32 %v2301_v59, %v2690_v42 }
 0x1c9   :  { %v1660_v42 = vadd.f32 %v6934_v57, %v6983_v12  ;;  %v2304_v21 = vmax.f32 %v1659_v33, %v2048_v23  ;;  %v2696_v23 = vadd.f32 %v7101_v18, %v7223_v22 }
 0x1ca   :  { %v2303_v13 = vmax.f32 %v1658_v8, %v2047_v9  ;;  %v10565_v8 = vld [vmem:[#allocation39_spill] sm:$0xff] }
 0x1cb   :  { %v2305_v53 = vmax.f32 %v1660_v42, %v2049_v45 }
 0x1cc   :  { %3528 = vperm.xlu1 %6197, %v2943_v38   ;;  %3531 = vperm.xlu0 %6196, %v2944_v54   ;;  %v2692_v38 = vadd.f32 %v7065_v36, %v7223_v22  ;;  %v2302_v54 = vmax.f32 %v1657_v16, %v2046_v35  ;;  %v10563_v36 = vld [vmem:[#allocation103_spill] sm:$0xff] }
 0x1cd   :  { %v2693_v35 = vadd.f32 %v10563_v36, %v7223_v22  ;;  %v10564_v16 = vld [vmem:[#allocation107_spill] sm:$0xff]  ;;  %v1661_v36 = vadd.f32 %v6928_v7, %v6983_v12 }
 0x1ce   :  { %v2947_v60 = vmax.f32 %v2302_v54, %v2691_v46  ;;  %v2948_v59 = vmax.f32 %v2303_v13, %v2692_v38  ;;  %v2694_v9 = vadd.f32 %v10564_v16, %v7223_v22  ;;  %v2051_v46 = vadd.f32 %v6989_v26, %v7121_v2  ;;  %v10567_v38 = vld [vmem:[#allocation9_spill] sm:$0xff]  ;;  %v10568_v54 = vld [vmem:[#allocation23_spill] sm:$0xff] }
 0x1cf   :  { %v729_v13 = vadd.f32 %v10568_v54, %v10567_v38  ;;  %v1662_v16 = vadd.f32 %v6938_v3, %v6983_v12  ;;  %v2306_v33 = vmax.f32 %v1661_v36, %v2050_v19  ;;  %v2053_v38 = vadd.f32 %v6995_v37, %v7121_v2 }
 0x1d0   :  { %3534 = vperm.xlu1 %6197, %v2945_v5   ;;  %3537 = vperm.xlu0 %6196, %v2946_v39   ;;  %v10566_v5 = vld [vmem:[#allocation55_spill] sm:$0xff]  ;;  %v2697_v36 = vadd.f32 %v7099_v63, %v7223_v22  ;;  %v2698_v19 = vadd.f32 %v7115_v58, %v7223_v22 }
 0x1d1   :  { %v1430_v39 = vadd.f32 %v10566_v5, %v10565_v8  ;;  %v2949_v8 = vmax.f32 %v2304_v21, %v2693_v35  ;;  %v2950_v5 = vmax.f32 %v2305_v53, %v2694_v9  ;;  %v2307_v42 = vmax.f32 %v1662_v16, %v2051_v46 }
 0x1d2   :  { %v1663_v53 = vadd.f32 %v6932_v1, %v6983_v12  ;;  %v1664_v21 = vadd.f32 %v6942_v56, %v6983_v12  ;;  %v2054_v16 = vadd.f32 %v10558_v49, %v7223_v22  ;;  %v2055_v12 = vadd.f32 %v10559_v30, %v7223_v22 }
 0x1d3   :  { %v1450_v45 = vadd.f32 %v1430_v39, %v729_v13  ;;  %v2952_v9 = vmax.f32 %v2307_v42, %v2696_v23  ;;  %v1665_v13 = vadd.f32 %v6908_v31, %v7121_v2 }
 0x1d4   :  { %3540 = vperm.xlu1 %6197, %v2947_v60   ;;  %3543 = vperm.xlu0 %6196, %v2948_v59   ;;  %v2695_v60 = vadd.f32 %v7073_v48, %v7223_v22  ;;  %v2052_v59 = vadd.f32 %v6975_v44, %v7121_v2  ;;  %v2309_v54 = vmax.f32 %v1664_v21, %v2053_v38 }
 0x1d5   :  { %v7325_v39 = vmul.f32 0.5, %v1450_v45  ;;  %v2057_v38 = vadd.f32 %v6950_v52, %v7223_v22  ;;  %v1668_v21 = vadd.f32 %v6918_v14, %v7121_v2 }
 0x1d6   :  { %v2951_v35 = vmax.f32 %v2306_v33, %v2695_v60  ;;  %v2308_v46 = vmax.f32 %v1663_v53, %v2052_v59  ;;  %v2954_v60 = vmax.f32 %v2309_v54, %v2698_v19  ;;  %v2310_v33 = vmax.f32 %v1665_v13, %v2054_v16 }
 0x1d7   :  { %v2699_v23 = vadd.f32 %v6987_v55, %v7325_v39  ;;  %v2700_v45 = vadd.f32 %v7003_v11, %v7325_v39  ;;  %v2056_v59 = vadd.f32 %v6940_v62, %v7223_v22  ;;  %v1667_v53 = vadd.f32 %v6914_v6, %v7121_v2 }
 0x1d8   :  { %3546 = vperm.xlu1 %6197, %v2949_v8   ;;  %3549 = vperm.xlu0 %6196, %v2950_v5   ;;  %v1666_v8 = vadd.f32 %v6910_v29, %v7121_v2  ;;  %v2953_v5 = vmax.f32 %v2308_v46, %v2697_v36  ;;  %v2701_v36 = vadd.f32 %v6993_v41, %v7325_v39 }
 0x1d9   :  { %v2702_v19 = vadd.f32 %v7019_v43, %v7325_v39  ;;  %v2058_v16 = vadd.f32 %v6944_v27, %v7223_v22  ;;  %v2312_v46 = vmax.f32 %v1667_v53, %v2056_v59  ;;  %v2313_v54 = vmax.f32 %v1668_v21, %v2057_v38 }
 0x1da   :  { %v2311_v42 = vmax.f32 %v1666_v8, %v2055_v12  ;;  %v2059_v12 = vadd.f32 %v6954_v24, %v7223_v22  ;;  %v1669_v13 = vadd.f32 %v6912_v51, %v7121_v2  ;;  %v1670_v8 = vadd.f32 %v6922_v61, %v7121_v2 }
 0x1db   :  { %v2060_v59 = vadd.f32 %v6948_v47, %v7223_v22  ;;  %v2061_v38 = vadd.f32 %v6959_v34, %v7223_v22  ;;  %v1671_v53 = vadd.f32 %v6916_v0, %v7121_v2  ;;  %v1672_v21 = vadd.f32 %v6926_v25, %v7121_v2  ;;  %v10574_v25 = vld [vmem:[#allocation103_spill] sm:$0xff] }
 0x1dc   :  { %3552 = vperm.xlu1 %6197, %v2951_v35   ;;  %3555 = vperm.xlu0 %6196, %v2952_v9   ;;  %v2955_v35 = vmax.f32 %v2310_v33, %v2699_v23  ;;  %v2956_v9 = vmax.f32 %v2311_v42, %v2700_v45  ;;  %v2703_v23 = vadd.f32 %v7001_v32, %v7325_v39 }
 0x1dd   :  { %v2704_v45 = vadd.f32 %v7035_v28, %v7325_v39  ;;  %v2314_v33 = vmax.f32 %v1669_v13, %v2058_v16  ;;  %v2315_v42 = vmax.f32 %v1670_v8, %v2059_v12  ;;  %v2062_v16 = vadd.f32 %v6952_v15, %v7223_v22  ;;  %v10569_v8 = vld [vmem:[#allocation78_spill] sm:$0xff] }
 0x1de   :  { %v2063_v12 = vadd.f32 %v6969_v20, %v7223_v22  ;;  %v1673_v13 = vadd.f32 %v10551_v17, %v7121_v2  ;;  %v2066_v34 = vadd.f32 %v6967_v10, %v7223_v22  ;;  %v1677_v47 = vadd.f32 %v6928_v7, %v7121_v2 }
 0x1df   :  { %v1678_v28 = vadd.f32 %v6938_v3, %v7121_v2 }
 0x1e0   :  { %3558 = vperm.xlu1 %6197, %v2953_v5   ;;  %3561 = vperm.xlu0 %6196, %v2954_v60   ;;  %v2957_v5 = vmax.f32 %v2312_v46, %v2701_v36  ;;  %v2958_v60 = vmax.f32 %v2313_v54, %v2702_v19  ;;  %v2705_v36 = vadd.f32 %v7017_v50, %v7325_v39 }
 0x1e1   :  { %v2706_v19 = vadd.f32 %v10560_v40, %v7325_v39  ;;  %v2316_v46 = vmax.f32 %v1671_v53, %v2060_v59  ;;  %v2317_v54 = vmax.f32 %v1672_v21, %v2061_v38  ;;  %v10571_v38 = vld [vmem:[#allocation89_spill] sm:$0xff]  ;;  %v10572_v21 = vld [vmem:[#allocation94_spill] sm:$0xff]  ;;  %v10573_v40 = vld [vmem:[#allocation75_spill] sm:$0xff] }
 0x1e2   :  { %v2064_v53 = vadd.f32 %v10571_v38, %v7223_v22 }
 0x1e4   :  { %3564 = vperm.xlu1 %6197, %v2955_v35   ;;  %3567 = vperm.xlu0 %6196, %v2956_v9   ;;  %v2959_v35 = vmax.f32 %v2314_v33, %v2703_v23  ;;  %v2960_v9 = vmax.f32 %v2315_v42, %v2704_v45  ;;  %v2962_v23 = vmax.f32 %v2317_v54, %v2706_v19  ;;  %v10570_v33 = vld [vmem:[#allocation105_spill] sm:$0xff] }
 0x1e5   :  { %v2707_v45 = vadd.f32 %v10552_v4, %v7325_v39  ;;  %v2708_v42 = vadd.f32 %v10570_v33, %v7325_v39  ;;  %v1676_v19 = vadd.f32 %v6934_v57, %v7121_v2 }
 0x1e8   :  { %3570 = vperm.xlu1 %6197, %v2957_v5   ;;  %3573 = vperm.xlu0 %6196, %v2958_v60   ;;  %v1674_v5 = vadd.f32 %v10569_v8, %v7121_v2  ;;  %v2961_v60 = vmax.f32 %v2316_v46, %v2705_v36  ;;  %v1675_v36 = vadd.f32 %v10573_v40, %v7121_v2 }
 0x1ea   :  { %v2319_v59 = vmax.f32 %v1674_v5, %v2063_v12  ;;  %v10576_v5 = vld [vmem:[#allocation40_spill] sm:$0xff]  ;;  %v2320_v50 = vmax.f32 %v1675_v36, %v2064_v53  ;;  %v2712_v53 = vadd.f32 %v7101_v18, %v7325_v39  ;;  %v2322_v36 = vmax.f32 %v1677_v47, %v2066_v34 }
 0x1eb   :  { %v1679_v18 = vadd.f32 %v6932_v1, %v7121_v2  ;;  %v1680_v47 = vadd.f32 %v6942_v56, %v7121_v2  ;;  %v2070_v2 = vadd.f32 %v10558_v49, %v7325_v39 }
 0x1ec   :  { %3576 = vperm.xlu1 %6197, %v2959_v35   ;;  %3579 = vperm.xlu0 %6196, %v2960_v9   ;;  %v2318_v35 = vmax.f32 %v1673_v13, %v2062_v16  ;;  %v2065_v9 = vadd.f32 %v10572_v21, %v7223_v22  ;;  %v2964_v54 = vmax.f32 %v2319_v59, %v2708_v42  ;;  %v10575_v13 = vld [vmem:[#allocation107_spill] sm:$0xff] }
 0x1ed   :  { %v2709_v16 = vadd.f32 %v10574_v25, %v7325_v39  ;;  %v2710_v12 = vadd.f32 %v10575_v13, %v7325_v39  ;;  %v10578_v42 = vld [vmem:[#allocation11_spill] sm:$0xff] }
 0x1ee   :  { %v2963_v46 = vmax.f32 %v2318_v35, %v2707_v45  ;;  %v2321_v0 = vmax.f32 %v1676_v19, %v2065_v9  ;;  %v2067_v45 = vadd.f32 %v6989_v26, %v7223_v22  ;;  %v10579_v35 = vld [vmem:[#allocation24_spill] sm:$0xff] }
 0x1ef   :  { %v730_v59 = vadd.f32 %v10579_v35, %v10578_v42  ;;  %v2069_v42 = vadd.f32 %v6995_v37, %v7223_v22  ;;  %v10580_v35 = vld [vmem:[#allocation12_spill] sm:$0xff]  ;;  %v10589_v37 = vld [vmem:[#allocation62_spill] sm:$0xff] }
 0x1f0   :  { %3582 = vperm.xlu1 %6197, %v2961_v60   ;;  %3585 = vperm.xlu0 %6196, %v2962_v23   ;;  %v10577_v60 = vld [vmem:[#allocation56_spill] sm:$0xff]  ;;  %v2323_v19 = vmax.f32 %v1678_v28, %v2067_v45  ;;  %v2714_v45 = vadd.f32 %v7115_v58, %v7325_v39  ;;  %v10590_v58 = vld [vmem:[#allocation14_spill] sm:$0xff] }
 0x1f1   :  { %v1431_v23 = vadd.f32 %v10577_v60, %v10576_v5  ;;  %v2965_v5 = vmax.f32 %v2320_v50, %v2709_v16  ;;  %v2966_v60 = vmax.f32 %v2321_v0, %v2710_v12  ;;  %v10581_v50 = vld [vmem:[#allocation28_spill] sm:$0xff]  ;;  %v10582_v16 = vld [vmem:[#allocation45_spill] sm:$0xff] }
 0x1f2   :  { %v734_v0 = vadd.f32 %v10581_v50, %v10580_v35  ;;  %v10583_v12 = vld [vmem:[#allocation61_spill] sm:$0xff]  ;;  %v2968_v28 = vmax.f32 %v2323_v19, %v2712_v53  ;;  %v10586_v35 = vld [vmem:[#allocation44_spill] sm:$0xff]  ;;  %v2071_v19 = vadd.f32 %v10559_v30, %v7325_v39 }
 0x1f3   :  { %v1451_v9 = vadd.f32 %v1431_v23, %v730_v59  ;;  %v1436_v3 = vadd.f32 %v10583_v12, %v10582_v16  ;;  %v2713_v23 = vadd.f32 %v7099_v63, %v7325_v39  ;;  %v10584_v59 = vld [vmem:[#allocation10_spill] sm:$0xff]  ;;  %v10587_v50 = vld [vmem:[#allocation60_spill] sm:$0xff] }
 0x1f4   :  { %3588 = vperm.xlu1 %6197, %v2963_v46   ;;  %3591 = vperm.xlu0 %6196, %v2964_v54   ;;  %v2711_v46 = vadd.f32 %v7073_v48, %v7325_v39  ;;  %v2068_v54 = vadd.f32 %v6975_v44, %v7223_v22  ;;  %v1435_v16 = vadd.f32 %v10587_v50, %v10586_v35  ;;  %v10588_v12 = vld [vmem:[#allocation46_spill] sm:$0xff] }
 0x1f5   :  { %v1437_v1 = vadd.f32 %v10589_v37, %v10588_v12  ;;  %v1681_v35 = vadd.f32 %v6908_v31, %v7223_v22  ;;  %v1682_v37 = vadd.f32 %v6910_v29, %v7223_v22 }
 0x1f6   :  { %v2967_v34 = vmax.f32 %v2322_v36, %v2711_v46  ;;  %v7437_v46 = vmul.f32 0.5, %v1451_v9  ;;  %v2324_v53 = vmax.f32 %v1679_v18, %v2068_v54  ;;  %v2325_v36 = vmax.f32 %v1680_v47, %v2069_v42 }
 0x1f7   :  { %v1455_v54 = vadd.f32 %v1435_v16, %v734_v0  ;;  %v2326_v47 = vmax.f32 %v1681_v35, %v2070_v2 }
 0x1f8   :  { %3594 = vperm.xlu1 %6197, %v2965_v5   ;;  %3597 = vperm.xlu0 %6196, %v2966_v60   ;;  %v10585_v5 = vld [vmem:[#allocation29_spill] sm:$0xff]  ;;  %v2969_v50 = vmax.f32 %v2324_v53, %v2713_v23  ;;  %v2970_v9 = vmax.f32 %v2325_v36, %v2714_v45  ;;  %v2716_v18 = vadd.f32 %v7003_v11, %v7437_v46  ;;  %v10592_v53 = vld [vmem:[#allocation47_spill] sm:$0xff] }
 0x1f9   :  { %v735_v60 = vadd.f32 %v10585_v5, %v10584_v59  ;;  %v10591_v59 = vld [vmem:[#allocation30_spill] sm:$0xff]  ;;  %v1683_v45 = vadd.f32 %v6914_v6, %v7223_v22  ;;  %v2717_v16 = vadd.f32 %v6993_v41, %v7437_v46  ;;  %v2718_v12 = vadd.f32 %v7019_v43, %v7437_v46  ;;  %v10593_v36 = vld [vmem:[#allocation63_spill] sm:$0xff] }
 0x1fa   :  { %v736_v5 = vadd.f32 %v10591_v59, %v10590_v58  ;;  %v2072_v58 = vadd.f32 %v6940_v62, %v7325_v39  ;;  %v7465_v2 = vmul.f32 0.5, %v1455_v54 }
 0x1fb   :  { %v1456_v56 = vadd.f32 %v1436_v3, %v735_v60  ;;  %v2327_v3 = vmax.f32 %v1682_v37, %v2071_v19  ;;  %v1684_v60 = vadd.f32 %v6918_v14, %v7223_v22  ;;  %v7469_v19 = vpop.permute.xlu0 %3420 }
 0x1fc   :  { %3600 = vperm.xlu1 %6197, %v2967_v34   ;;  %3603 = vperm.xlu0 %6196, %v2968_v28   ;;  %v2715_v34 = vadd.f32 %v6987_v55, %v7437_v46  ;;  %v1457_v42 = vadd.f32 %v1437_v1, %v736_v5  ;;  %v2073_v28 = vadd.f32 %v6950_v52, %v7325_v39 }
 0x1fd   :  { %v7455_v23 = vmul.f32 0.5, %v1456_v56  ;;  %v2972_v1 = vmax.f32 %v2327_v3, %v2716_v18  ;;  %v1438_v56 = vadd.f32 %v10593_v36, %v10592_v53  ;;  %10594 = vst [vmem:[#allocation38_spill] sm:$0xff] %v7469_v19  ;;  %v2328_v37 = vmax.f32 %v1683_v45, %v2072_v58  ;;  %v10597_v18 = vld [vmem:[#allocation31_spill] sm:$0xff]  ;;  %v10634_v19 = vld [vmem:[#allocation33_spill] sm:$0xff] }
 0x1fe   :  { %v2971_v0 = vmax.f32 %v2326_v47, %v2715_v34  ;;  %v7475_v35 = vmul.f32 0.5, %v1457_v42  ;;  %v10596_v34 = vld [vmem:[#allocation15_spill] sm:$0xff]  ;;  %v1685_v47 = vadd.f32 %v6912_v51, %v7223_v22  ;;  %v1745_v3 = vadd.f32 %v6908_v31, %v7465_v2 }
 0x1ff   :  { %v2134_v5 = vadd.f32 %v10558_v49, %v7455_v23  ;;  %v737_v54 = vadd.f32 %v10597_v18, %v10596_v34  ;;  %v2973_v53 = vmax.f32 %v2328_v37, %v2717_v16  ;;  %v2719_v42 = vadd.f32 %v7001_v32, %v7437_v46 }
 0x200   :  { %3606 = vperm.xlu1 %6197, %v2969_v50   ;;  %3609 = vperm.xlu0 %6196, %v2970_v9   ;;  %v2329_v50 = vmax.f32 %v1684_v60, %v2073_v28  ;;  %v2074_v9 = vadd.f32 %v6944_v27, %v7325_v39  ;;  %v2779_v58 = vadd.f32 %v6987_v55, %v7475_v35 }
 0x201   :  { %v1458_v28 = vadd.f32 %v1438_v56, %v737_v54  ;;  %v2135_v34 = vadd.f32 %v10559_v30, %v7455_v23  ;;  %v2142_v16 = vadd.f32 %v6952_v15, %v7455_v23  ;;  %v1753_v56 = vadd.f32 %v10551_v17, %v7465_v2 }
 0x202   :  { %v2974_v36 = vmax.f32 %v2329_v50, %v2718_v12  ;;  %v1746_v12 = vadd.f32 %v6910_v29, %v7465_v2 }
 0x203   :  { %v7471_v59 = vpop.permute.xlu1 %3423 }
 0x204   :  { %10595 = vst [vmem:[#allocation54_spill] sm:$0xff] %v7471_v59  ;;  %3612 = vperm.xlu1 %6197, %v2971_v0   ;;  %3615 = vperm.xlu0 %6196, %v2972_v1   ;;  %v2390_v0 = vmax.f32 %v1745_v3, %v2134_v5  ;;  %v2330_v1 = vmax.f32 %v1685_v47, %v2074_v9  ;;  %v7511_v3 = vmul.f32 0.5, %v1458_v28 }
 0x205   :  { %v2780_v5 = vadd.f32 %v7003_v11, %v7475_v35  ;;  %v2787_v9 = vadd.f32 %v10552_v4, %v7475_v35  ;;  %v2150_v47 = vadd.f32 %v10558_v49, %v7475_v35 }
 0x206   :  { %v2975_v37 = vmax.f32 %v2330_v1, %v2719_v42  ;;  %v3035_v50 = vmax.f32 %v2390_v0, %v2779_v58  ;;  %v2143_v42 = vadd.f32 %v6969_v20, %v7455_v23  ;;  %v1754_v58 = vadd.f32 %v10569_v8, %v7465_v2 }
 0x207   :  { %v7489_v45 = vpop.permute.xlu0 %3429  ;;  %v7491_v60 = vpop.permute.xlu1 %3426  ;;  %v1761_v0 = vadd.f32 %v6908_v31, %v7455_v23  ;;  %v2795_v28 = vadd.f32 %v6987_v55, %v7511_v3 }
 0x208   :  { %10598 = vst [vmem:[#allocation8_spill] sm:$0xff] %v7489_v45  ;;  %10599 = vst [vmem:[#allocation22_spill] sm:$0xff] %v7491_v60  ;;  %3618 = vperm.xlu1 %6197, %v2973_v53   ;;  %3621 = vperm.xlu0 %6196, %v2974_v36   ;;  %v2391_v53 = vmax.f32 %v1746_v12, %v2135_v34  ;;  %v2398_v36 = vmax.f32 %v1753_v56, %v2142_v16  ;;  %v10613_v45 = vld [vmem:[#allocation32_spill] sm:$0xff] }
 0x209   :  { %v2406_v16 = vmax.f32 %v1761_v0, %v2150_v47  ;;  %v2399_v12 = vmax.f32 %v1754_v58, %v2143_v42  ;;  %v2151_v56 = vadd.f32 %v10559_v30, %v7475_v35  ;;  %v2796_v47 = vadd.f32 %v7003_v11, %v7511_v3 }
 0x20a   :  { %v3036_v1 = vmax.f32 %v2391_v53, %v2780_v5  ;;  %v1762_v5 = vadd.f32 %v6910_v29, %v7455_v23  ;;  %v2159_v0 = vadd.f32 %v6969_v20, %v7475_v35 }
 0x20b   :  { %v7505_v18 = vpop.permute.xlu0 %3435  ;;  %v7507_v54 = vpop.permute.xlu1 %3432 }
 0x20c   :  { %10600 = vst [vmem:[#allocation80_spill] sm:$0xff] %v7505_v18  ;;  %10601 = vst [vmem:[#allocation85_spill] sm:$0xff] %v7507_v54  ;;  %3624 = vperm.xlu1 %6197, %v2975_v37   ;;  %3804 = vperm.xlu0 %6196, %v3035_v50   ;;  %v3043_v18 = vmax.f32 %v2398_v36, %v2787_v9  ;;  %v2788_v54 = vadd.f32 %v10570_v33, %v7475_v35 }
 0x20d   :  { %v2158_v50 = vadd.f32 %v6952_v15, %v7475_v35  ;;  %v1769_v9 = vadd.f32 %v10551_v17, %v7455_v23  ;;  %v3051_v36 = vmax.f32 %v2406_v16, %v2795_v28  ;;  %v1770_v28 = vadd.f32 %v10569_v8, %v7455_v23 }
 0x20e   :  { %v3044_v53 = vmax.f32 %v2399_v12, %v2788_v54  ;;  %v2136_v54 = vadd.f32 %v6940_v62, %v7455_v23  ;;  %v1747_v16 = vadd.f32 %v6914_v6, %v7465_v2 }
 0x20f   :  { %v7523_v37 = vpop.permute.xlu0 %3441  ;;  %v7525_v34 = vpop.permute.xlu1 %3438 }
 0x210   :  { %10602 = vst [vmem:[#allocation39_spill] sm:$0xff] %v7523_v37  ;;  %10603 = vst [vmem:[#allocation55_spill] sm:$0xff] %v7525_v34  ;;  %3807 = vperm.xlu1 %6197, %v3036_v1   ;;  %3828 = vperm.xlu0 %6196, %v3043_v18   ;;  %v2803_v18 = vadd.f32 %v10552_v4, %v7511_v3  ;;  %v2407_v1 = vmax.f32 %v1762_v5, %v2151_v56 }
 0x211   :  { %v2414_v34 = vmax.f32 %v1769_v9, %v2158_v50  ;;  %v2415_v50 = vmax.f32 %v1770_v28, %v2159_v0  ;;  %v2392_v5 = vmax.f32 %v1747_v16, %v2136_v54  ;;  %v2144_v9 = vadd.f32 %v10571_v38, %v7455_v23  ;;  %v10608_v54 = vld [vmem:[#allocation48_spill] sm:$0xff] }
 0x212   :  { %v3052_v12 = vmax.f32 %v2407_v1, %v2796_v47  ;;  %v1755_v47 = vadd.f32 %v10573_v40, %v7465_v2  ;;  %v2789_v0 = vadd.f32 %v10574_v25, %v7475_v35  ;;  %v10609_v28 = vld [vmem:[#allocation64_spill] sm:$0xff] }
 0x213   :  { %v7539_v42 = vpop.permute.xlu0 %3447  ;;  %v7541_v58 = vpop.permute.xlu1 %3444  ;;  %v3059_v37 = vmax.f32 %v2414_v34, %v2803_v18  ;;  %v2152_v34 = vadd.f32 %v6940_v62, %v7475_v35  ;;  %v1763_v18 = vadd.f32 %v6914_v6, %v7455_v23  ;;  %v1439_v16 = vadd.f32 %v10609_v28, %v10608_v54 }
 0x214   :  { %10604 = vst [vmem:[#allocation9_spill] sm:$0xff] %v7539_v42  ;;  %10605 = vst [vmem:[#allocation23_spill] sm:$0xff] %v7541_v58  ;;  %3831 = vperm.xlu1 %6197, %v3044_v53   ;;  %3852 = vperm.xlu0 %6196, %v3051_v36   ;;  %v2804_v58 = vadd.f32 %v10570_v33, %v7511_v3  ;;  %v2781_v53 = vadd.f32 %v6993_v41, %v7475_v35 }
 0x215   :  { %v2160_v42 = vadd.f32 %v10571_v38, %v7475_v35  ;;  %v1771_v54 = vadd.f32 %v10573_v40, %v7455_v23  ;;  %v1748_v28 = vadd.f32 %v6918_v14, %v7465_v2 }
 0x216   :  { %v3060_v1 = vmax.f32 %v2415_v50, %v2804_v58  ;;  %v2400_v58 = vmax.f32 %v1755_v47, %v2144_v9  ;;  %v2137_v50 = vadd.f32 %v6950_v52, %v7455_v23 }
 0x217   :  { %v7555_v36 = vpop.permute.xlu0 %3453  ;;  %v7557_v56 = vpop.permute.xlu1 %3450 }
 0x218   :  { %10606 = vst [vmem:[#allocation94_spill] sm:$0xff] %v7555_v36  ;;  %10607 = vst [vmem:[#allocation107_spill] sm:$0xff] %v7557_v56  ;;  %3855 = vperm.xlu1 %6197, %v3052_v12   ;;  %3876 = vperm.xlu0 %6196, %v3059_v37   ;;  %v3037_v36 = vmax.f32 %v2392_v5, %v2781_v53  ;;  %v2797_v37 = vadd.f32 %v6993_v41, %v7511_v3  ;;  %v10612_v5 = vld [vmem:[#allocation16_spill] sm:$0xff] }
 0x219   :  { %v2408_v53 = vmax.f32 %v1763_v18, %v2152_v34  ;;  %v738_v60 = vadd.f32 %v10613_v45, %v10612_v5  ;;  %v2416_v45 = vmax.f32 %v1771_v54, %v2160_v42  ;;  %v2393_v18 = vmax.f32 %v1748_v28, %v2137_v50 }
 0x21a   :  { %v2145_v5 = vadd.f32 %v10572_v21, %v7455_v23  ;;  %v2790_v42 = vadd.f32 %v10575_v13, %v7475_v35  ;;  %v2161_v50 = vadd.f32 %v10572_v21, %v7475_v35 }
 0x21b   :  { %v7573_v12 = vpop.permute.xlu0 %3459  ;;  %v7575_v56 = vpop.permute.xlu1 %3456  ;;  %v1459_v9 = vadd.f32 %v1439_v16, %v738_v60  ;;  %v1764_v60 = vadd.f32 %v6918_v14, %v7455_v23 }
 0x21c   :  { %10610 = vst [vmem:[#allocation40_spill] sm:$0xff] %v7573_v12  ;;  %10611 = vst [vmem:[#allocation56_spill] sm:$0xff] %v7575_v56  ;;  %3879 = vperm.xlu1 %6197, %v3060_v1   ;;  %3810 = vperm.xlu0 %6196, %v3037_v36   ;;  %v3045_v56 = vmax.f32 %v2400_v58, %v2789_v0  ;;  %v3053_v12 = vmax.f32 %v2408_v53, %v2797_v37 }
 0x21d   :  { %v2805_v1 = vadd.f32 %v10574_v25, %v7511_v3  ;;  %v2782_v36 = vadd.f32 %v7019_v43, %v7475_v35  ;;  %v2153_v0 = vadd.f32 %v6950_v52, %v7475_v35  ;;  %v1756_v37 = vadd.f32 %v6934_v57, %v7465_v2 }
 0x21e   :  { %v7613_v54 = vmul.f32 0.5, %v1459_v9 }
 0x21f   :  { %v7591_v34 = vpop.permute.xlu0 %3465  ;;  %v7593_v47 = vpop.permute.xlu1 %3462  ;;  %v3061_v16 = vmax.f32 %v2416_v45, %v2805_v1  ;;  %v3038_v58 = vmax.f32 %v2393_v18, %v2782_v36  ;;  %v2401_v28 = vmax.f32 %v1756_v37, %v2145_v5  ;;  %v2409_v1 = vmax.f32 %v1764_v60, %v2153_v0 }
 0x220   :  { %10614 = vst [vmem:[#allocation11_spill] sm:$0xff] %v7591_v34  ;;  %10615 = vst [vmem:[#allocation24_spill] sm:$0xff] %v7593_v47  ;;  %3834 = vperm.xlu1 %6197, %v3045_v56   ;;  %3858 = vperm.xlu0 %6196, %v3053_v12   ;;  %v2798_v56 = vadd.f32 %v7019_v43, %v7511_v3  ;;  %v2166_v36 = vadd.f32 %v10558_v49, %v7511_v3 }
 0x221   :  { %v1772_v45 = vadd.f32 %v6934_v57, %v7455_v23  ;;  %v1777_v18 = vadd.f32 %v6908_v31, %v7475_v35  ;;  %v3046_v47 = vmax.f32 %v2401_v28, %v2790_v42  ;;  %v2811_v9 = vadd.f32 %v6987_v55, %v7613_v54 }
 0x222   :  { %v3054_v34 = vmax.f32 %v2409_v1, %v2798_v56  ;;  %v2167_v60 = vadd.f32 %v10559_v30, %v7511_v3  ;;  %v1778_v42 = vadd.f32 %v6910_v29, %v7475_v35  ;;  %v1785_v56 = vadd.f32 %v10551_v17, %v7475_v35 }
 0x223   :  { %v7607_v12 = vpop.permute.xlu0 %3471  ;;  %v7609_v53 = vpop.permute.xlu1 %3468  ;;  %v2417_v0 = vmax.f32 %v1772_v45, %v2161_v50  ;;  %v2422_v37 = vmax.f32 %v1777_v18, %v2166_v36  ;;  %v2812_v50 = vadd.f32 %v7003_v11, %v7613_v54  ;;  %v2175_v45 = vadd.f32 %v6969_v20, %v7511_v3 }
 0x224   :  { %10616 = vst [vmem:[#allocation12_spill] sm:$0xff] %v7607_v12  ;;  %10617 = vst [vmem:[#allocation28_spill] sm:$0xff] %v7609_v53  ;;  %3882 = vperm.xlu1 %6197, %v3061_v16   ;;  %3813 = vperm.xlu0 %6196, %v3038_v58   ;;  %v2806_v53 = vadd.f32 %v10575_v13, %v7511_v3  ;;  %v2174_v58 = vadd.f32 %v6952_v15, %v7511_v3 }
 0x225   :  { %v3067_v1 = vmax.f32 %v2422_v37, %v2811_v9  ;;  %v2423_v18 = vmax.f32 %v1778_v42, %v2167_v60  ;;  %v1786_v9 = vadd.f32 %v10569_v8, %v7475_v35  ;;  %v2155_v12 = vadd.f32 %v6954_v24, %v7475_v35 }
 0x226   :  { %v3062_v28 = vmax.f32 %v2417_v0, %v2806_v53  ;;  %v2138_v53 = vadd.f32 %v6944_v27, %v7455_v23  ;;  %v1749_v0 = vadd.f32 %v6912_v51, %v7465_v2 }
 0x227   :  { %v7625_v16 = vpop.permute.xlu0 %3477  ;;  %v7627_v5 = vpop.permute.xlu1 %3474  ;;  %v3068_v37 = vmax.f32 %v2423_v18, %v2812_v50  ;;  %v1757_v50 = vadd.f32 %v6928_v7, %v7465_v2 }
 0x228   :  { %10618 = vst [vmem:[#allocation45_spill] sm:$0xff] %v7625_v16  ;;  %10619 = vst [vmem:[#allocation61_spill] sm:$0xff] %v7627_v5  ;;  %3837 = vperm.xlu1 %6197, %v3046_v47   ;;  %3861 = vperm.xlu0 %6196, %v3054_v34   ;;  %v2819_v34 = vadd.f32 %v10552_v4, %v7613_v54  ;;  %v2430_v16 = vmax.f32 %v1785_v56, %v2174_v58 }
 0x229   :  { %v2431_v58 = vmax.f32 %v1786_v9, %v2175_v45  ;;  %v2394_v42 = vmax.f32 %v1749_v0, %v2138_v53  ;;  %v2146_v56 = vadd.f32 %v6967_v10, %v7455_v23  ;;  %v2791_v45 = vadd.f32 %v7073_v48, %v7475_v35 }
 0x22a   :  { %v2162_v0 = vadd.f32 %v6967_v10, %v7475_v35 }
 0x22b   :  { %v7641_v47 = vpop.permute.xlu0 %3483  ;;  %v7643_v36 = vpop.permute.xlu1 %3480 }
 0x22c   :  { %10620 = vst [vmem:[#allocation10_spill] sm:$0xff] %v7641_v47  ;;  %10621 = vst [vmem:[#allocation29_spill] sm:$0xff] %v7643_v36  ;;  %3885 = vperm.xlu1 %6197, %v3062_v28   ;;  %3900 = vperm.xlu0 %6196, %v3067_v1   ;;  %v3075_v47 = vmax.f32 %v2430_v16, %v2819_v34  ;;  %v2820_v36 = vadd.f32 %v10570_v33, %v7613_v54 }
 0x22d   :  { %v2783_v28 = vadd.f32 %v7001_v32, %v7475_v35  ;;  %v2154_v16 = vadd.f32 %v6944_v27, %v7475_v35  ;;  %v1765_v34 = vadd.f32 %v6912_v51, %v7455_v23 }
 0x22e   :  { %v3076_v18 = vmax.f32 %v2431_v58, %v2820_v36  ;;  %v2168_v36 = vadd.f32 %v6940_v62, %v7511_v3  ;;  %v1779_v58 = vadd.f32 %v6914_v6, %v7475_v35 }
 0x22f   :  { %v7657_v1 = vpop.permute.xlu0 %3489  ;;  %v7659_v60 = vpop.permute.xlu1 %3486 }
 0x230   :  { %10622 = vst [vmem:[#allocation44_spill] sm:$0xff] %v7657_v1  ;;  %10623 = vst [vmem:[#allocation60_spill] sm:$0xff] %v7659_v60  ;;  %3903 = vperm.xlu1 %6197, %v3068_v37   ;;  %3924 = vperm.xlu0 %6196, %v3075_v47   ;;  %v3039_v1 = vmax.f32 %v2394_v42, %v2783_v28  ;;  %v2799_v47 = vadd.f32 %v7001_v32, %v7511_v3 }
 0x231   :  { %v2402_v37 = vmax.f32 %v1757_v50, %v2146_v56  ;;  %v2410_v60 = vmax.f32 %v1765_v34, %v2154_v16  ;;  %v1773_v28 = vadd.f32 %v6928_v7, %v7455_v23  ;;  %v2424_v50 = vmax.f32 %v1779_v58, %v2168_v36  ;;  %v10630_v58 = vld [vmem:[#allocation65_spill] sm:$0xff] }
 0x232   :  { %v2176_v34 = vadd.f32 %v10571_v38, %v7511_v3 }
 0x233   :  { %v7673_v53 = vpop.permute.xlu0 %3495  ;;  %v7675_v9 = vpop.permute.xlu1 %3492  ;;  %v3047_v42 = vmax.f32 %v2402_v37, %v2791_v45  ;;  %v2418_v16 = vmax.f32 %v1773_v28, %v2162_v0  ;;  %v1787_v45 = vadd.f32 %v10573_v40, %v7475_v35  ;;  %v2821_v0 = vadd.f32 %v10574_v25, %v7613_v54  ;;  %v10629_v28 = vld [vmem:[#allocation49_spill] sm:$0xff] }
 0x234   :  { %10624 = vst [vmem:[#allocation46_spill] sm:$0xff] %v7673_v53  ;;  %10625 = vst [vmem:[#allocation62_spill] sm:$0xff] %v7675_v9  ;;  %3927 = vperm.xlu1 %6197, %v3076_v18   ;;  %3816 = vperm.xlu0 %6196, %v3039_v1   ;;  %v3055_v53 = vmax.f32 %v2410_v60, %v2799_v47  ;;  %v2807_v9 = vadd.f32 %v7073_v48, %v7511_v3 }
 0x235   :  { %v2813_v18 = vadd.f32 %v6993_v41, %v7613_v54  ;;  %v2139_v60 = vadd.f32 %v6954_v24, %v7455_v23  ;;  %v1750_v47 = vadd.f32 %v6922_v61, %v7465_v2  ;;  %v10635_v24 = vld [vmem:[#allocation81_spill] sm:$0xff] }
 0x236   :  { %v3063_v37 = vmax.f32 %v2418_v16, %v2807_v9  ;;  %v2432_v9 = vmax.f32 %v1787_v45, %v2176_v34  ;;  %v2147_v16 = vadd.f32 %v6989_v26, %v7455_v23 }
 0x237   :  { %v7689_v1 = vpop.permute.xlu0 %3501  ;;  %v7691_v56 = vpop.permute.xlu1 %3498 }
 0x238   :  { %10626 = vst [vmem:[#allocation14_spill] sm:$0xff] %v7689_v1  ;;  %10627 = vst [vmem:[#allocation30_spill] sm:$0xff] %v7691_v56  ;;  %3840 = vperm.xlu1 %6197, %v3047_v42   ;;  %3864 = vperm.xlu0 %6196, %v3055_v53   ;;  %v3069_v1 = vmax.f32 %v2424_v50, %v2813_v18  ;;  %v10628_v53 = vld [vmem:[#allocation102_spill] sm:$0xff]  ;;  %v1440_v42 = vadd.f32 %v10630_v58, %v10629_v28  ;;  %v10633_v50 = vld [vmem:[#allocation17_spill] sm:$0xff] }
 0x239   :  { %v2784_v36 = vadd.f32 %v10628_v53, %v7475_v35  ;;  %v2395_v18 = vmax.f32 %v1750_v47, %v2139_v60  ;;  %v739_v59 = vadd.f32 %v10634_v19, %v10633_v50  ;;  %v1766_v28 = vadd.f32 %v6922_v61, %v7455_v23 }
 0x23a   :  { %v2800_v58 = vadd.f32 %v10628_v53, %v7511_v3  ;;  %v2169_v19 = vadd.f32 %v6950_v52, %v7511_v3 }
 0x23b   :  { %v7707_v56 = vpop.permute.xlu0 %3507  ;;  %v7709_v5 = vpop.permute.xlu1 %3504  ;;  %v2411_v47 = vmax.f32 %v1766_v28, %v2155_v12  ;;  %v1460_v50 = vadd.f32 %v1440_v42, %v739_v59  ;;  %v1774_v12 = vadd.f32 %v10635_v24, %v7455_v23 }
 0x23c   :  { %10631 = vst [vmem:[#allocation47_spill] sm:$0xff] %v7707_v56  ;;  %10632 = vst [vmem:[#allocation63_spill] sm:$0xff] %v7709_v5  ;;  %3888 = vperm.xlu1 %6197, %v3063_v37   ;;  %3906 = vperm.xlu0 %6196, %v3069_v1   ;;  %v3077_v56 = vmax.f32 %v2432_v9, %v2821_v0  ;;  %v3040_v5 = vmax.f32 %v2395_v18, %v2784_v36  ;;  %v10636_v1 = vld [vmem:[#allocation109_spill] sm:$0xff] }
 0x23d   :  { %v1758_v37 = vadd.f32 %v10635_v24, %v7465_v2  ;;  %v2792_v34 = vadd.f32 %v10636_v1, %v7475_v35  ;;  %v2163_v0 = vadd.f32 %v6989_v26, %v7475_v35  ;;  %v3056_v36 = vmax.f32 %v2411_v47, %v2800_v58 }
 0x23e   :  { %v1780_v9 = vadd.f32 %v6918_v14, %v7475_v35  ;;  %v2808_v59 = vadd.f32 %v10636_v1, %v7511_v3  ;;  %v2177_v58 = vadd.f32 %v10572_v21, %v7511_v3 }
 0x23f   :  { %v7725_v60 = vpop.permute.xlu0 %3513  ;;  %v7727_v45 = vpop.permute.xlu1 %3510  ;;  %v2403_v53 = vmax.f32 %v1758_v37, %v2147_v16  ;;  %v7745_v16 = vmul.f32 0.5, %v1460_v50  ;;  %v2419_v28 = vmax.f32 %v1774_v12, %v2163_v0  ;;  %v1793_v37 = vadd.f32 %v6908_v31, %v7511_v3 }
 0x240   :  { %10637 = vst [vmem:[#allocation15_spill] sm:$0xff] %v7725_v60  ;;  %10638 = vst [vmem:[#allocation31_spill] sm:$0xff] %v7727_v45  ;;  %3930 = vperm.xlu1 %6197, %v3077_v56   ;;  %3819 = vperm.xlu0 %6196, %v3040_v5   ;;  %v2814_v60 = vadd.f32 %v7019_v43, %v7613_v54  ;;  %v2425_v42 = vmax.f32 %v1780_v9, %v2169_v19 }
 0x241   :  { %v3048_v18 = vmax.f32 %v2403_v53, %v2792_v34  ;;  %v2182_v53 = vadd.f32 %v10558_v49, %v7613_v54  ;;  %v1788_v34 = vadd.f32 %v6934_v57, %v7475_v35  ;;  %v3064_v45 = vmax.f32 %v2419_v28, %v2808_v59 }
 0x242   :  { %v3070_v47 = vmax.f32 %v2425_v42, %v2814_v60  ;;  %v2827_v19 = vadd.f32 %v6987_v55, %v7745_v16  ;;  %v2822_v50 = vadd.f32 %v10575_v13, %v7613_v54  ;;  %v2190_v9 = vadd.f32 %v6952_v15, %v7613_v54 }
 0x243   :  { %v7741_v56 = vpop.permute.xlu0 %3519  ;;  %v7743_v5 = vpop.permute.xlu1 %3516  ;;  %v2433_v12 = vmax.f32 %v1788_v34, %v2177_v58  ;;  %v2183_v60 = vadd.f32 %v10559_v30, %v7613_v54  ;;  %v1801_v59 = vadd.f32 %v10551_v17, %v7511_v3  ;;  %v1794_v42 = vadd.f32 %v6910_v29, %v7511_v3  ;;  %v10645_v34 = vld [vmem:[#allocation86_spill] sm:$0xff] }
 0x244   :  { %10639 = vst [vmem:[#allocation48_spill] sm:$0xff] %v7741_v56  ;;  %10640 = vst [vmem:[#allocation64_spill] sm:$0xff] %v7743_v5  ;;  %3867 = vperm.xlu0 %6196, %v3056_v36   ;;  %3843 = vperm.xlu1 %6197, %v3048_v18   ;;  %v2438_v18 = vmax.f32 %v1793_v37, %v2182_v53  ;;  %v2140_v5 = vadd.f32 %v10645_v34, %v7455_v23 }
 0x245   :  { %v2446_v58 = vmax.f32 %v1801_v59, %v2190_v9  ;;  %v2439_v37 = vmax.f32 %v1794_v42, %v2183_v60  ;;  %v2156_v42 = vadd.f32 %v10645_v34, %v7475_v35 }
 0x246   :  { %v3083_v28 = vmax.f32 %v2438_v18, %v2827_v19  ;;  %v2191_v19 = vadd.f32 %v6969_v20, %v7613_v54 }
 0x247   :  { %v7759_v0 = vpop.permute.xlu0 %3525  ;;  %v7761_v36 = vpop.permute.xlu1 %3522 }
 0x248   :  { %10641 = vst [vmem:[#allocation16_spill] sm:$0xff] %v7759_v0  ;;  %10642 = vst [vmem:[#allocation32_spill] sm:$0xff] %v7761_v36  ;;  %3909 = vperm.xlu0 %6196, %v3070_v47   ;;  %3891 = vperm.xlu1 %6197, %v3064_v45   ;;  %v3078_v0 = vmax.f32 %v2433_v12, %v2822_v50  ;;  %v2835_v36 = vadd.f32 %v10552_v4, %v7745_v16  ;;  %v10646_v50 = vld [vmem:[#allocation73_spill] sm:$0xff] }
 0x249   :  { %v2828_v47 = vadd.f32 %v7003_v11, %v7745_v16  ;;  %v1751_v18 = vadd.f32 %v10646_v50, %v7465_v2  ;;  %v1802_v12 = vadd.f32 %v10569_v8, %v7511_v3 }
 0x24a   :  { %v3091_v56 = vmax.f32 %v2446_v58, %v2835_v36  ;;  %v2148_v36 = vadd.f32 %v6975_v44, %v7455_v23  ;;  %v10650_v58 = vld [vmem:[#allocation79_spill] sm:$0xff] }
 0x24b   :  { %v7775_v45 = vpop.permute.xlu0 %3531  ;;  %v7777_v53 = vpop.permute.xlu1 %3528  ;;  %v2447_v11 = vmax.f32 %v1802_v12, %v2191_v19  ;;  %v2170_v12 = vadd.f32 %v6944_v27, %v7511_v3 }
 0x24c   :  { %10643 = vst [vmem:[#allocation49_spill] sm:$0xff] %v7775_v45  ;;  %10644 = vst [vmem:[#allocation65_spill] sm:$0xff] %v7777_v53  ;;  %3948 = vperm.xlu0 %6196, %v3083_v28   ;;  %3933 = vperm.xlu1 %6197, %v3078_v0   ;;  %v3084_v45 = vmax.f32 %v2439_v37, %v2828_v47  ;;  %v10647_v53 = vld [vmem:[#allocation100_spill] sm:$0xff]  ;;  %v2836_v0 = vadd.f32 %v10570_v33, %v7745_v16 }
 0x24d   :  { %v2785_v9 = vadd.f32 %v10647_v53, %v7475_v35  ;;  %v2396_v28 = vmax.f32 %v1751_v18, %v2140_v5  ;;  %v1767_v47 = vadd.f32 %v10646_v50, %v7455_v23  ;;  %v1759_v37 = vadd.f32 %v10650_v58, %v7465_v2 }
 0x24f   :  { %v7791_v60 = vpop.permute.xlu0 %3537  ;;  %v7793_v59 = vpop.permute.xlu1 %3534  ;;  %v3041_v29 = vmax.f32 %v2396_v28, %v2785_v9  ;;  %v2412_v19 = vmax.f32 %v1767_v47, %v2156_v42  ;;  %v2404_v18 = vmax.f32 %v1759_v37, %v2148_v36  ;;  %v1781_v9 = vadd.f32 %v6912_v51, %v7475_v35 }
 0x250   :  { %10648 = vst [vmem:[#allocation17_spill] sm:$0xff] %v7791_v60  ;;  %10649 = vst [vmem:[#allocation33_spill] sm:$0xff] %v7793_v59  ;;  %3972 = vperm.xlu0 %6196, %v3091_v56   ;;  %3951 = vperm.xlu1 %6197, %v3084_v45   ;;  %v3092_v60 = vmax.f32 %v2447_v11, %v2836_v0  ;;  %v2801_v59 = vadd.f32 %v10647_v53, %v7511_v3 }
 0x251   :  { %v2793_v56 = vadd.f32 %v7099_v63, %v7475_v35  ;;  %v2164_v11 = vadd.f32 %v6975_v44, %v7475_v35  ;;  %v1775_v0 = vadd.f32 %v10650_v58, %v7455_v23  ;;  %v2815_v42 = vadd.f32 %v7001_v32, %v7613_v54 }
 0x252   :  { %v3057_v28 = vmax.f32 %v2412_v19, %v2801_v59  ;;  %v2184_v47 = vadd.f32 %v6940_v62, %v7613_v54  ;;  %v2426_v37 = vmax.f32 %v1781_v9, %v2170_v12  ;;  %v2178_v59 = vadd.f32 %v6967_v10, %v7511_v3 }
 0x253   :  { %v7807_v45 = vpop.permute.xlu0 %3543  ;;  %v7809_v5 = vpop.permute.xlu1 %3540  ;;  %v1789_v19 = vadd.f32 %v6928_v7, %v7475_v35 }
 0x254   :  { %10651 = vst [vmem:[#allocation81_spill] sm:$0xff] %v7807_v45  ;;  %10652 = vst [vmem:[#allocation109_spill] sm:$0xff] %v7809_v5  ;;  %3822 = vperm.xlu0 %6196, %v3041_v29   ;;  %3975 = vperm.xlu1 %6197, %v3092_v60   ;;  %v3049_v45 = vmax.f32 %v2404_v18, %v2793_v56  ;;  %v2809_v29 = vadd.f32 %v7099_v63, %v7511_v3 }
 0x255   :  { %v2420_v5 = vmax.f32 %v1775_v0, %v2164_v11  ;;  %v1795_v56 = vadd.f32 %v6914_v6, %v7511_v3  ;;  %v3071_v18 = vmax.f32 %v2426_v37, %v2815_v42  ;;  %v2434_v9 = vmax.f32 %v1789_v19, %v2178_v59  ;;  %v10659_v19 = vld [vmem:[#allocation90_spill] sm:$0xff] }
 0x256   :  { %v2078_v0 = vadd.f32 %v6952_v15, %v7325_v39  ;;  %v1689_v42 = vadd.f32 %v10551_v17, %v7223_v22 }
 0x257   :  { %v7823_v60 = vpop.permute.xlu0 %3549  ;;  %v7825_v36 = vpop.permute.xlu1 %3546  ;;  %v2440_v11 = vmax.f32 %v1795_v56, %v2184_v47  ;;  %v2723_v47 = vadd.f32 %v10552_v4, %v7437_v46 }
 0x258   :  { %10653 = vst [vmem:[#allocation111_spill] sm:$0xff] %v7823_v60  ;;  %10654 = vst [vmem:[#allocation112_spill] sm:$0xff] %v7825_v36  ;;  %3870 = vperm.xlu0 %6196, %v3057_v28   ;;  %3846 = vperm.xlu1 %6197, %v3049_v45   ;;  %v3065_v60 = vmax.f32 %v2420_v5, %v2809_v29  ;;  %v2829_v36 = vadd.f32 %v6993_v41, %v7745_v16 }
 0x259   :  { %v2823_v28 = vadd.f32 %v7073_v48, %v7613_v54  ;;  %v2192_v5 = vadd.f32 %v10571_v38, %v7613_v54  ;;  %v1803_v29 = vadd.f32 %v10573_v40, %v7511_v3 }
 0x25a   :  { %v3085_v37 = vmax.f32 %v2440_v11, %v2829_v36  ;;  %v2079_v36 = vadd.f32 %v6969_v20, %v7325_v39 }
 0x25b   :  { %v7839_v45 = vpop.permute.xlu0 %3555  ;;  %v7841_v12 = vpop.permute.xlu1 %3552  ;;  %v2448_v41 = vmax.f32 %v1803_v29, %v2192_v5  ;;  %v2157_v29 = vadd.f32 %v10659_v19, %v7475_v35 }
 0x25c   :  { %10655 = vst [vmem:[#allocation113_spill] sm:$0xff] %v7839_v45  ;;  %10656 = vst [vmem:[#allocation114_spill] sm:$0xff] %v7841_v12  ;;  %3912 = vperm.xlu0 %6196, %v3071_v18   ;;  %3894 = vperm.xlu1 %6197, %v3065_v60   ;;  %v3079_v45 = vmax.f32 %v2434_v9, %v2823_v28  ;;  %v2837_v60 = vadd.f32 %v10574_v25, %v7745_v16  ;;  %v10660_v28 = vld [vmem:[#allocation76_spill] sm:$0xff] }
 0x25d   :  { %v2141_v18 = vadd.f32 %v10659_v19, %v7455_v23  ;;  %v2334_v12 = vmax.f32 %v1689_v42, %v2078_v0  ;;  %v1752_v11 = vadd.f32 %v10660_v28, %v7465_v2  ;;  %v1690_v9 = vadd.f32 %v10569_v8, %v7223_v22 }
 0x25f   :  { %v7855_v59 = vpop.permute.xlu0 %3561  ;;  %v7857_v56 = vpop.permute.xlu1 %3558  ;;  %v2979_v6 = vmax.f32 %v2334_v12, %v2723_v47  ;;  %v2397_v5 = vmax.f32 %v1752_v11, %v2141_v18  ;;  %v2335_v42 = vmax.f32 %v1690_v9, %v2079_v36  ;;  %v10664_v12 = vld [vmem:[#allocation97_spill] sm:$0xff]  ;;  %v1768_v47 = vadd.f32 %v10660_v28, %v7455_v23  ;;  %v10667_v36 = vld [vmem:[#allocation50_spill] sm:$0xff]  ;;  %v10671_v28 = vld [vmem:[#allocation88_spill] sm:$0xff] }
 0x260   :  { %10657 = vst [vmem:[#allocation115_spill] sm:$0xff] %v7855_v59  ;;  %10658 = vst [vmem:[#allocation116_spill] sm:$0xff] %v7857_v56  ;;  %3954 = vperm.xlu0 %6196, %v3085_v37   ;;  %3936 = vperm.xlu1 %6197, %v3079_v45   ;;  %v3093_v59 = vmax.f32 %v2448_v41, %v2837_v60  ;;  %v10661_v56 = vld [vmem:[#allocation104_spill] sm:$0xff]  ;;  %v2724_v37 = vadd.f32 %v10570_v33, %v7437_v46  ;;  %v10668_v11 = vld [vmem:[#allocation66_spill] sm:$0xff] }
 0x261   :  { %v2786_v62 = vadd.f32 %v10661_v56, %v7475_v35  ;;  %v2149_v41 = vadd.f32 %v10664_v12, %v7455_v23  ;;  %v2802_v60 = vadd.f32 %v10661_v56, %v7511_v3  ;;  %v1441_v9 = vadd.f32 %v10668_v11, %v10667_v36  ;;  %v10674_v11 = vld [vmem:[#allocation102_spill] sm:$0xff] }
 0x262   :  { %v2171_v48 = vadd.f32 %v10671_v28, %v7511_v3  ;;  %v1782_v36 = vadd.f32 %v6922_v61, %v7475_v35 }
 0x263   :  { %v7871_v45 = vpop.permute.xlu0 %3567  ;;  %v7873_v0 = vpop.permute.xlu1 %3564  ;;  %v3042_v32 = vmax.f32 %v2397_v5, %v2786_v62  ;;  %v2413_v62 = vmax.f32 %v1768_v47, %v2157_v29  ;;  %v10672_v5 = vld [vmem:[#allocation18_spill] sm:$0xff] }
 0x264   :  { %10662 = vst [vmem:[#allocation117_spill] sm:$0xff] %v7871_v45  ;;  %10663 = vst [vmem:[#allocation118_spill] sm:$0xff] %v7873_v0  ;;  %3636 = vperm.xlu0 %6196, %v2979_v6   ;;  %3978 = vperm.xlu1 %6197, %v3093_v59   ;;  %v2980_v45 = vmax.f32 %v2335_v42, %v2724_v37  ;;  %v10665_v0 = vld [vmem:[#allocation83_spill] sm:$0xff]  ;;  %v10666_v6 = vld [vmem:[#allocation110_spill] sm:$0xff] }
 0x265   :  { %v1760_v18 = vadd.f32 %v10665_v0, %v7465_v2  ;;  %v2794_v59 = vadd.f32 %v10666_v6, %v7475_v35  ;;  %v2165_v2 = vadd.f32 %v10664_v12, %v7475_v35  ;;  %v10673_v42 = vld [vmem:[#allocation34_spill] sm:$0xff] }
 0x266   :  { %v740_v56 = vadd.f32 %v10673_v42, %v10672_v5  ;;  %v2185_v42 = vadd.f32 %v6950_v52, %v7613_v54 }
 0x267   :  { %v7889_v19 = vpop.permute.xlu0 %3573  ;;  %v7891_v51 = vpop.permute.xlu1 %3570  ;;  %v2405_v37 = vmax.f32 %v1760_v18, %v2149_v41  ;;  %v2427_v18 = vmax.f32 %v1782_v36, %v2171_v48  ;;  %v1790_v48 = vadd.f32 %v10635_v24, %v7475_v35 }
 0x268   :  { %10669 = vst [vmem:[#allocation50_spill] sm:$0xff] %v7889_v19  ;;  %10670 = vst [vmem:[#allocation66_spill] sm:$0xff] %v7891_v51  ;;  %3825 = vperm.xlu0 %6196, %v3042_v32   ;;  %3639 = vperm.xlu1 %6197, %v2980_v45   ;;  %v2816_v19 = vadd.f32 %v10674_v11, %v7613_v54  ;;  %v3058_v51 = vmax.f32 %v2413_v62, %v2802_v60 }
 0x269   :  { %v3050_v7 = vmax.f32 %v2405_v37, %v2794_v59  ;;  %v1776_v32 = vadd.f32 %v10665_v0, %v7455_v23  ;;  %v2810_v45 = vadd.f32 %v10666_v6, %v7511_v3  ;;  %v1461_v29 = vadd.f32 %v1441_v9, %v740_v56 }
 0x26a   :  { %v2179_v60 = vadd.f32 %v6989_v26, %v7511_v3  ;;  %v1796_v23 = vadd.f32 %v6918_v14, %v7511_v3  ;;  %v2830_v56 = vadd.f32 %v7019_v43, %v7745_v16  ;;  %v3072_v59 = vmax.f32 %v2427_v18, %v2816_v19 }
 0x26b   :  { %v7907_v41 = vpop.permute.xlu0 %3579  ;;  %v7909_v47 = vpop.permute.xlu1 %3576  ;;  %v2421_v5 = vmax.f32 %v1776_v32, %v2165_v2  ;;  %v2198_v2 = vadd.f32 %v10558_v49, %v7745_v16  ;;  %v2193_v32 = vadd.f32 %v10572_v21, %v7613_v54 }
 0x26c   :  { %10675 = vst [vmem:[#allocation88_spill] sm:$0xff] %v7907_v41  ;;  %10676 = vst [vmem:[#allocation18_spill] sm:$0xff] %v7909_v47  ;;  %3873 = vperm.xlu0 %6196, %v3058_v51   ;;  %3849 = vperm.xlu1 %6197, %v3050_v7   ;;  %v2824_v51 = vadd.f32 %v10636_v1, %v7613_v54  ;;  %v7923_v7 = vmul.f32 0.5, %v1461_v29  ;;  %v2441_v36 = vmax.f32 %v1796_v23, %v2185_v42  ;;  %v10681_v47 = vld [vmem:[#allocation70_spill] sm:$0xff] }
 0x26d   :  { %v3066_v9 = vmax.f32 %v2421_v5, %v2810_v45  ;;  %v2435_v19 = vmax.f32 %v1790_v48, %v2179_v60  ;;  %v1809_v45 = vadd.f32 %v6908_v31, %v7613_v54  ;;  %v2206_v23 = vadd.f32 %v6952_v15, %v7745_v16 }
 0x26e   :  { %v2843_v29 = vadd.f32 %v6987_v55, %v7923_v7  ;;  %v3086_v18 = vmax.f32 %v2441_v36, %v2830_v56  ;;  %v2199_v56 = vadd.f32 %v10559_v30, %v7745_v16  ;;  %v1817_v36 = vadd.f32 %v10551_v17, %v7613_v54 }
 0x26f   :  { %v7925_v62 = vpop.permute.xlu0 %3585  ;;  %v7927_v37 = vpop.permute.xlu1 %3582  ;;  %v3080_v5 = vmax.f32 %v2435_v19, %v2824_v51  ;;  %v2454_v60 = vmax.f32 %v1809_v45, %v2198_v2  ;;  %v1810_v2 = vadd.f32 %v10681_v47, %v7613_v54  ;;  %v10682_v45 = vld [vmem:[#allocation99_spill] sm:$0xff] }
 0x270   :  { %10677 = vst [vmem:[#allocation34_spill] sm:$0xff] %v7925_v62  ;;  %10678 = vst [vmem:[#allocation102_spill] sm:$0xff] %v7927_v37  ;;  %3915 = vperm.xlu0 %6196, %v3072_v59   ;;  %3897 = vperm.xlu1 %6197, %v3066_v9   ;;  %v1804_v37 = vadd.f32 %v6934_v57, %v7511_v3  ;;  %v2838_v59 = vadd.f32 %v10575_v13, %v7745_v16 }
 0x271   :  { %v3099_v51 = vmax.f32 %v2454_v60, %v2843_v29  ;;  %v2851_v62 = vadd.f32 %v10552_v4, %v7923_v7  ;;  %v2844_v41 = vadd.f32 %v10682_v45, %v7923_v7  ;;  %v2455_v29 = vmax.f32 %v1810_v2, %v2199_v56 }
 0x272   :  { %v2449_v48 = vmax.f32 %v1804_v37, %v2193_v32  ;;  %v2462_v32 = vmax.f32 %v1817_v36, %v2206_v23  ;;  %v1691_v60 = vadd.f32 %v10573_v40, %v7223_v22  ;;  %v1818_v23 = vadd.f32 %v10569_v8, %v7613_v54 }
 0x273   :  { %v7941_v9 = vpop.permute.xlu0 %3591  ;;  %v7943_v42 = vpop.permute.xlu1 %3588  ;;  %v2852_v56 = vadd.f32 %v10570_v33, %v7923_v7 }
 0x274   :  { %10679 = vst [vmem:[#allocation119_spill] sm:$0xff] %v7941_v9  ;;  %10680 = vst [vmem:[#allocation120_spill] sm:$0xff] %v7943_v42  ;;  %3957 = vperm.xlu0 %6196, %v3086_v18   ;;  %3939 = vperm.xlu1 %6197, %v3080_v5   ;;  %v3094_v19 = vmax.f32 %v2449_v48, %v2838_v59  ;;  %v2080_v5 = vadd.f32 %v10571_v38, %v7325_v39 }
 0x275   :  { %v2207_v59 = vadd.f32 %v6969_v20, %v7745_v16  ;;  %v2725_v48 = vadd.f32 %v10574_v25, %v7437_v46  ;;  %v3107_v42 = vmax.f32 %v2462_v32, %v2851_v62  ;;  %v1791_v62 = vadd.f32 %v10650_v58, %v7475_v35 }
 0x276   :  { %v2336_v2 = vmax.f32 %v1691_v60, %v2080_v5  ;;  %v2825_v32 = vadd.f32 %v7099_v63, %v7613_v54  ;;  %v10688_v5 = vld [vmem:[#allocation57_spill] sm:$0xff]  ;;  %v2194_v58 = vadd.f32 %v6967_v10, %v7613_v54 }
 0x277   :  { %v7957_v18 = vpop.permute.xlu0 %3597  ;;  %v7959_v37 = vpop.permute.xlu1 %3594 }
 0x278   :  { %10683 = vst [vmem:[#allocation70_spill] sm:$0xff] %v7957_v18  ;;  %10684 = vst [vmem:[#allocation99_spill] sm:$0xff] %v7959_v37  ;;  %3996 = vperm.xlu0 %6196, %v3099_v51   ;;  %3981 = vperm.xlu1 %6197, %v3094_v19   ;;  %v3100_v18 = vmax.f32 %v2455_v29, %v2844_v41  ;;  %v2180_v19 = vadd.f32 %v6975_v44, %v7511_v3 }
 0x279   :  { %v2463_v37 = vmax.f32 %v1818_v23, %v2207_v59  ;;  %v2172_v41 = vadd.f32 %v10645_v34, %v7511_v3  ;;  %v2981_v29 = vmax.f32 %v2336_v2, %v2725_v48  ;;  %v2186_v48 = vadd.f32 %v6944_v27, %v7613_v54  ;;  %v10692_v2 = vld [vmem:[#allocation25_spill] sm:$0xff]  ;;  %v10710_v34 = vld [vmem:[#allocation104_spill] sm:$0xff] }
 0x27a   :  { %v2436_v9 = vmax.f32 %v1791_v62, %v2180_v19  ;;  %v10695_v62 = vld [vmem:[#allocation71_spill] sm:$0xff]  ;;  %v2818_v44 = vadd.f32 %v10710_v34, %v7613_v54 }
 0x27b   :  { %v7973_v51 = vpop.permute.xlu0 %3603  ;;  %v7975_v36 = vpop.permute.xlu1 %3600  ;;  %v1797_v63 = vadd.f32 %v10695_v62, %v7511_v3  ;;  %v10716_v34 = vld [vmem:[#allocation35_spill] sm:$0xff] }
 0x27c   :  { %10685 = vst [vmem:[#allocation121_spill] sm:$0xff] %v7973_v51  ;;  %10686 = vst [vmem:[#allocation122_spill] sm:$0xff] %v7975_v36  ;;  %4020 = vperm.xlu0 %6196, %v3107_v42   ;;  %3999 = vperm.xlu1 %6197, %v3100_v18   ;;  %v3108_v51 = vmax.f32 %v2463_v37, %v2852_v56  ;;  %v1783_v36 = vadd.f32 %v10646_v50, %v7475_v35  ;;  %v10687_v18 = vld [vmem:[#allocation41_spill] sm:$0xff] }
 0x27d   :  { %v2817_v42 = vadd.f32 %v10647_v53, %v7613_v54  ;;  %v1432_v59 = vadd.f32 %v10688_v5, %v10687_v18  ;;  %v10691_v56 = vld [vmem:[#allocation13_spill] sm:$0xff]  ;;  %v3081_v50 = vmax.f32 %v2436_v9, %v2825_v32  ;;  %v2442_v9 = vmax.f32 %v1797_v63, %v2186_v48 }
 0x27e   :  { %v2428_v37 = vmax.f32 %v1783_v36, %v2172_v41  ;;  %v731_v53 = vadd.f32 %v10692_v2, %v10691_v56  ;;  %v10693_v18 = vld [vmem:[#allocation77_spill] sm:$0xff]  ;;  %v2208_v32 = vadd.f32 %v10571_v38, %v7745_v16  ;;  %v1819_v2 = vadd.f32 %v10573_v40, %v7613_v54 }
 0x27f   :  { %v7991_v60 = vpop.permute.xlu0 %3609  ;;  %v7993_v23 = vpop.permute.xlu1 %3606  ;;  %v1805_v5 = vadd.f32 %v10693_v18, %v7511_v3 }
 0x280   :  { %10689 = vst [vmem:[#allocation41_spill] sm:$0xff] %v7991_v60  ;;  %10690 = vst [vmem:[#allocation57_spill] sm:$0xff] %v7993_v23  ;;  %3642 = vperm.xlu0 %6196, %v2981_v29   ;;  %4023 = vperm.xlu1 %6197, %v3108_v51   ;;  %v3073_v60 = vmax.f32 %v2428_v37, %v2817_v42  ;;  %v10694_v23 = vld [vmem:[#allocation106_spill] sm:$0xff]  ;;  %v1452_v41 = vadd.f32 %v1432_v59, %v731_v53 }
 0x281   :  { %v2839_v19 = vadd.f32 %v10694_v23, %v7745_v16  ;;  %v10696_v51 = vld [vmem:[#allocation98_spill] sm:$0xff]  ;;  %v2450_v56 = vmax.f32 %v1805_v5, %v2194_v58  ;;  %v2853_v53 = vadd.f32 %v10574_v25, %v7923_v7  ;;  %v2464_v62 = vmax.f32 %v1819_v2, %v2208_v32 }
 0x282   :  { %v2831_v36 = vadd.f32 %v10696_v51, %v7745_v16  ;;  %v10699_v42 = vld [vmem:[#allocation82_spill] sm:$0xff]  ;;  %v2086_v51 = vadd.f32 %v10558_v49, %v7437_v46  ;;  %v2094_v2 = vadd.f32 %v6952_v15, %v7437_v46 }
 0x283   :  { %v8009_v29 = vpop.permute.xlu0 %3615  ;;  %v8011_v27 = vpop.permute.xlu1 %3612  ;;  %v2200_v37 = vadd.f32 %v10699_v42, %v7745_v16  ;;  %v3095_v59 = vmax.f32 %v2450_v56, %v2839_v19  ;;  %v1697_v56 = vadd.f32 %v6908_v31, %v7325_v39 }
 0x284   :  { %10697 = vst [vmem:[#allocation13_spill] sm:$0xff] %v8009_v29  ;;  %10698 = vst [vmem:[#allocation25_spill] sm:$0xff] %v8011_v27  ;;  %3942 = vperm.xlu0 %6196, %v3081_v50   ;;  %3918 = vperm.xlu1 %6197, %v3073_v60   ;;  %v3087_v29 = vmax.f32 %v2442_v9, %v2831_v36  ;;  %v10700_v27 = vld [vmem:[#allocation72_spill] sm:$0xff]  ;;  %v8025_v60 = vmul.f32 0.5, %v1452_v41  ;;  %v2081_v36 = vadd.f32 %v10572_v21, %v7325_v39 }
 0x285   :  { %v1811_v58 = vadd.f32 %v10700_v27, %v7613_v54  ;;  %v10701_v50 = vld [vmem:[#allocation96_spill] sm:$0xff]  ;;  %v3109_v9 = vmax.f32 %v2464_v62, %v2853_v53  ;;  %v2087_v62 = vadd.f32 %v10559_v30, %v7437_v46 }
 0x286   :  { %v2845_v63 = vadd.f32 %v10701_v50, %v7923_v7  ;;  %v2731_v41 = vadd.f32 %v6987_v55, %v8025_v60 }
 0x287   :  { %v8027_v48 = vpop.permute.xlu0 %3621  ;;  %v8029_v5 = vpop.permute.xlu1 %3618  ;;  %v2456_v19 = vmax.f32 %v1811_v58, %v2200_v37  ;;  %v2342_v37 = vmax.f32 %v1697_v56, %v2086_v51  ;;  %v1698_v51 = vadd.f32 %v10681_v47, %v7325_v39  ;;  %v2732_v56 = vadd.f32 %v10682_v45, %v8025_v60 }
 0x288   :  { %10702 = vst [vmem:[#allocation77_spill] sm:$0xff] %v8027_v48  ;;  %10703 = vst [vmem:[#allocation123_spill] sm:$0xff] %v8029_v5  ;;  %3984 = vperm.xlu0 %6196, %v3095_v59   ;;  %3960 = vperm.xlu1 %6197, %v3087_v29   ;;  %v1692_v5 = vadd.f32 %v6934_v57, %v7223_v22  ;;  %v2726_v59 = vadd.f32 %v10575_v13, %v7437_v46 }
 0x289   :  { %v3101_v48 = vmax.f32 %v2456_v19, %v2845_v63  ;;  %v2987_v53 = vmax.f32 %v2342_v37, %v2731_v41  ;;  %v1705_v63 = vadd.f32 %v10551_v17, %v7325_v39  ;;  %v10708_v41 = vld [vmem:[#allocation90_spill] sm:$0xff]  ;;  %v2095_v37 = vadd.f32 %v6969_v20, %v7437_v46 }
 0x28a   :  { %v2337_v58 = vmax.f32 %v1692_v5, %v2081_v36  ;;  %v2343_v36 = vmax.f32 %v1698_v51, %v2087_v62  ;;  %v2740_v62 = vadd.f32 %v10570_v33, %v8025_v60 }
 0x28b   :  { %v8043_v29 = vpop.permute.xlu0 %3804  ;;  %v8045_v32 = vpop.permute.xlu1 %3624  ;;  %v2350_v5 = vmax.f32 %v1705_v63, %v2094_v2  ;;  %v1706_v2 = vadd.f32 %v10569_v8, %v7325_v39  ;;  %v10712_v63 = vld [vmem:[#allocation67_spill] sm:$0xff] }
 0x28c   :  { %10704 = vst [vmem:[#allocation124_spill] sm:$0xff] %v8043_v29  ;;  %10705 = vst [vmem:[#allocation125_spill] sm:$0xff] %v8045_v32  ;;  %4026 = vperm.xlu0 %6196, %v3109_v9   ;;  %4002 = vperm.xlu1 %6197, %v3101_v48   ;;  %v2982_v19 = vmax.f32 %v2337_v58, %v2726_v59  ;;  %v2739_v29 = vadd.f32 %v10552_v4, %v8025_v60  ;;  %v10709_v58 = vld [vmem:[#allocation76_spill] sm:$0xff] }
 0x28d   :  { %v2173_v59 = vadd.f32 %v10708_v41, %v7511_v3  ;;  %v1784_v32 = vadd.f32 %v10709_v58, %v7475_v35  ;;  %v2187_v58 = vadd.f32 %v10671_v28, %v7613_v54 }
 0x28e   :  { %v2995_v50 = vmax.f32 %v2350_v5, %v2739_v29  ;;  %v2181_v5 = vadd.f32 %v10664_v12, %v7511_v3 }
 0x28f   :  { %v8059_v9 = vpop.permute.xlu0 %3828  ;;  %v8061_v48 = vpop.permute.xlu1 %3807  ;;  %v2429_v29 = vmax.f32 %v1784_v32, %v2173_v59  ;;  %v2826_v32 = vadd.f32 %v10666_v6, %v7613_v54 }
 0x290   :  { %10706 = vst [vmem:[#allocation126_spill] sm:$0xff] %v8059_v9  ;;  %10707 = vst [vmem:[#allocation127_spill] sm:$0xff] %v8061_v48  ;;  %3660 = vperm.xlu0 %6196, %v2987_v53   ;;  %3645 = vperm.xlu1 %6197, %v2982_v19   ;;  %v2988_v9 = vmax.f32 %v2343_v36, %v2732_v56  ;;  %v10711_v53 = vld [vmem:[#allocation51_spill] sm:$0xff]  ;;  %v2351_v56 = vmax.f32 %v1706_v2, %v2095_v37 }
 0x291   :  { %v1442_v19 = vadd.f32 %v10712_v63, %v10711_v53  ;;  %v10715_v36 = vld [vmem:[#allocation19_spill] sm:$0xff]  ;;  %v1798_v53 = vadd.f32 %v6922_v61, %v7511_v3  ;;  %v2832_v63 = vadd.f32 %v10674_v11, %v7745_v16  ;;  %v2201_v2 = vadd.f32 %v6950_v52, %v7745_v16 }
 0x292   :  { %v741_v41 = vadd.f32 %v10716_v34, %v10715_v36 }
 0x293   :  { %v8077_v51 = vpop.permute.xlu0 %3852  ;;  %v8079_v48 = vpop.permute.xlu1 %3831  ;;  %v2443_v34 = vmax.f32 %v1798_v53, %v2187_v58  ;;  %v1806_v58 = vadd.f32 %v10635_v24, %v7511_v3 }
 0x294   :  { %10713 = vst [vmem:[#allocation51_spill] sm:$0xff] %v8077_v51  ;;  %10714 = vst [vmem:[#allocation67_spill] sm:$0xff] %v8079_v48  ;;  %3684 = vperm.xlu0 %6196, %v2995_v50   ;;  %3663 = vperm.xlu1 %6197, %v2988_v9   ;;  %v3074_v51 = vmax.f32 %v2429_v29, %v2818_v44  ;;  %v2996_v48 = vmax.f32 %v2351_v56, %v2740_v62 }
 0x295   :  { %v1792_v50 = vadd.f32 %v10665_v0, %v7475_v35  ;;  %v1462_v9 = vadd.f32 %v1442_v19, %v741_v41  ;;  %v2195_v44 = vadd.f32 %v6989_v26, %v7613_v54  ;;  %v3088_v62 = vmax.f32 %v2443_v34, %v2832_v63 }
 0x296   :  { %v1812_v35 = vadd.f32 %v6918_v14, %v7613_v54  ;;  %v2846_v41 = vadd.f32 %v7019_v43, %v7923_v7  ;;  %v2840_v19 = vadd.f32 %v10636_v1, %v7745_v16  ;;  %v2214_v63 = vadd.f32 %v10558_v49, %v7923_v7 }
 0x297   :  { %v8095_v59 = vpop.permute.xlu0 %3876  ;;  %v8097_v37 = vpop.permute.xlu1 %3855  ;;  %v2437_v36 = vmax.f32 %v1792_v50, %v2181_v5  ;;  %v2451_v53 = vmax.f32 %v1806_v58, %v2195_v44  ;;  %v2209_v50 = vadd.f32 %v10572_v21, %v7745_v16  ;;  %v2854_v44 = vadd.f32 %v10575_v13, %v7923_v7 }
 0x298   :  { %10717 = vst [vmem:[#allocation19_spill] sm:$0xff] %v8095_v59  ;;  %10718 = vst [vmem:[#allocation35_spill] sm:$0xff] %v8097_v37  ;;  %3921 = vperm.xlu0 %6196, %v3074_v51   ;;  %3687 = vperm.xlu1 %6197, %v2996_v48   ;;  %v8111_v51 = vmul.f32 0.5, %v1462_v9  ;;  %v2457_v5 = vmax.f32 %v1812_v35, %v2201_v2  ;;  %v1820_v2 = vadd.f32 %v6934_v57, %v7613_v54  ;;  %v10733_v37 = vld [vmem:[#allocation108_spill] sm:$0xff] }
 0x299   :  { %v3082_v29 = vmax.f32 %v2437_v36, %v2826_v32  ;;  %v1825_v32 = vadd.f32 %v6908_v31, %v7745_v16  ;;  %v3096_v36 = vmax.f32 %v2451_v53, %v2840_v19  ;;  %v1833_v19 = vadd.f32 %v10551_v17, %v7745_v16 }
 0x29a   :  { %v2859_v9 = vadd.f32 %v6987_v55, %v8111_v51  ;;  %v3102_v34 = vmax.f32 %v2457_v5, %v2846_v41  ;;  %v2465_v59 = vmax.f32 %v1820_v2, %v2209_v50  ;;  %v2215_v41 = vadd.f32 %v10559_v30, %v7923_v7 }
 0x29b   :  { %v8113_v48 = vpop.permute.xlu0 %3810  ;;  %v8115_v56 = vpop.permute.xlu1 %3879  ;;  %v2470_v58 = vmax.f32 %v1825_v32, %v2214_v63  ;;  %v2867_v5 = vadd.f32 %v10552_v4, %v8111_v51  ;;  %v2082_v2 = vadd.f32 %v6967_v10, %v7325_v39  ;;  %v2841_v6 = vadd.f32 %v10733_v37, %v7745_v16 }
 0x29c   :  { %10719 = vst [vmem:[#allocation128_spill] sm:$0xff] %v8113_v48  ;;  %10720 = vst [vmem:[#allocation129_spill] sm:$0xff] %v8115_v56  ;;  %3963 = vperm.xlu0 %6196, %v3088_v62   ;;  %3945 = vperm.xlu1 %6197, %v3082_v29   ;;  %v2222_v29 = vadd.f32 %v6952_v15, %v7923_v7  ;;  %v10727_v56 = vld [vmem:[#allocation96_spill] sm:$0xff] }
 0x29d   :  { %v3115_v53 = vmax.f32 %v2470_v58, %v2859_v9 }
 0x29e   :  { %v2478_v50 = vmax.f32 %v1833_v19, %v2222_v29  ;;  %v1834_v29 = vadd.f32 %v10569_v8, %v7745_v16  ;;  %v2096_v19 = vadd.f32 %v10571_v38, %v7437_v46 }
 0x29f   :  { %v8129_v62 = vpop.permute.xlu0 %3858  ;;  %v8131_v35 = vpop.permute.xlu1 %3834 }
 0x2a0   :  { %10721 = vst [vmem:[#allocation130_spill] sm:$0xff] %v8129_v62  ;;  %10722 = vst [vmem:[#allocation131_spill] sm:$0xff] %v8131_v35  ;;  %4005 = vperm.xlu0 %6196, %v3102_v34   ;;  %3987 = vperm.xlu1 %6197, %v3096_v36   ;;  %v3110_v62 = vmax.f32 %v2465_v59, %v2854_v44  ;;  %v1826_v35 = vadd.f32 %v10681_v47, %v7745_v16 }
 0x2a1   :  { %v2860_v34 = vadd.f32 %v10682_v45, %v8111_v51  ;;  %v2223_v59 = vadd.f32 %v6969_v20, %v7923_v7  ;;  %v3123_v9 = vmax.f32 %v2478_v50, %v2867_v5  ;;  %v1693_v44 = vadd.f32 %v10693_v18, %v7223_v22 }
 0x2a2   :  { %v2471_v32 = vmax.f32 %v1826_v35, %v2215_v41  ;;  %v1707_v50 = vadd.f32 %v10573_v40, %v7325_v39 }
 0x2a3   :  { %v8145_v36 = vpop.permute.xlu0 %3813  ;;  %v8147_v63 = vpop.permute.xlu1 %3882  ;;  %v2338_v5 = vmax.f32 %v1693_v44, %v2082_v2 }
 0x2a4   :  { %10723 = vst [vmem:[#allocation132_spill] sm:$0xff] %v8145_v36  ;;  %10724 = vst [vmem:[#allocation133_spill] sm:$0xff] %v8147_v63  ;;  %4044 = vperm.xlu0 %6196, %v3115_v53   ;;  %4029 = vperm.xlu1 %6197, %v3110_v62   ;;  %v3116_v58 = vmax.f32 %v2471_v32, %v2860_v34  ;;  %v2727_v36 = vadd.f32 %v10694_v23, %v7437_v46 }
 0x2a5   :  { %v2868_v62 = vadd.f32 %v10570_v33, %v8111_v51  ;;  %v2479_v53 = vmax.f32 %v1834_v29, %v2223_v59  ;;  %v2088_v34 = vadd.f32 %v10699_v42, %v7437_v46  ;;  %v2741_v32 = vadd.f32 %v10574_v25, %v8025_v60  ;;  %v10730_v29 = vld [vmem:[#allocation93_spill] sm:$0xff] }
 0x2a6   :  { %v2983_v63 = vmax.f32 %v2338_v5, %v2727_v36  ;;  %v2352_v59 = vmax.f32 %v1707_v50, %v2096_v19  ;;  %v2196_v48 = vadd.f32 %v10730_v29, %v7613_v54  ;;  %v10731_v36 = vld [vmem:[#allocation86_spill] sm:$0xff]  ;;  %v10732_v5 = vld [vmem:[#allocation79_spill] sm:$0xff]  ;;  %v2210_v50 = vadd.f32 %v6967_v10, %v7745_v16 }
 0x2a7   :  { %v8161_v35 = vpop.permute.xlu0 %3861  ;;  %v8163_v41 = vpop.permute.xlu1 %3837  ;;  %v10740_v10 = vld [vmem:[#allocation98_spill] sm:$0xff] }
 0x2a8   :  { %10725 = vst [vmem:[#allocation134_spill] sm:$0xff] %v8161_v35  ;;  %10726 = vst [vmem:[#allocation135_spill] sm:$0xff] %v8163_v41  ;;  %4068 = vperm.xlu0 %6196, %v3123_v9   ;;  %4047 = vperm.xlu1 %6197, %v3116_v58   ;;  %v3124_v35 = vmax.f32 %v2479_v53, %v2868_v62  ;;  %v1699_v41 = vadd.f32 %v10700_v27, %v7325_v39 }
 0x2a9   :  { %v2733_v9 = vadd.f32 %v10727_v56, %v8025_v60  ;;  %v2188_v62 = vadd.f32 %v10731_v36, %v7613_v54  ;;  %v1807_v53 = vadd.f32 %v10732_v5, %v7511_v3  ;;  %v2997_v0 = vmax.f32 %v2352_v59, %v2741_v32  ;;  %v10738_v32 = vld [vmem:[#allocation84_spill] sm:$0xff] }
 0x2aa   :  { %v2344_v44 = vmax.f32 %v1699_v41, %v2088_v34  ;;  %v1821_v59 = vadd.f32 %v10693_v18, %v7613_v54 }
 0x2ab   :  { %v8177_v58 = vpop.permute.xlu0 %3900  ;;  %v8179_v2 = vpop.permute.xlu1 %3885  ;;  %v2452_v5 = vmax.f32 %v1807_v53, %v2196_v48 }
 0x2ac   :  { %10728 = vst [vmem:[#allocation136_spill] sm:$0xff] %v8177_v58  ;;  %10729 = vst [vmem:[#allocation137_spill] sm:$0xff] %v8179_v2  ;;  %3648 = vperm.xlu0 %6196, %v2983_v63   ;;  %4071 = vperm.xlu1 %6197, %v3124_v35   ;;  %v2989_v58 = vmax.f32 %v2344_v44, %v2733_v9  ;;  %v10734_v2 = vld [vmem:[#allocation73_spill] sm:$0xff]  ;;  %v10735_v63 = vld [vmem:[#allocation100_spill] sm:$0xff]  ;;  %v2202_v9 = vadd.f32 %v10738_v32, %v7745_v16 }
 0x2ad   :  { %v1799_v19 = vadd.f32 %v10734_v2, %v7511_v3  ;;  %v2833_v35 = vadd.f32 %v10735_v63, %v7745_v16  ;;  %v2855_v44 = vadd.f32 %v10694_v23, %v7923_v7  ;;  %v3097_v63 = vmax.f32 %v2452_v5, %v2841_v6 }
 0x2ae   :  { %v2216_v6 = vadd.f32 %v10699_v42, %v7923_v7  ;;  %v1835_v5 = vadd.f32 %v10573_v40, %v7745_v16 }
 0x2af   :  { %v8193_v41 = vpop.permute.xlu0 %3924  ;;  %v8195_v34 = vpop.permute.xlu1 %3903  ;;  %v2444_v36 = vmax.f32 %v1799_v19, %v2188_v62  ;;  %v2466_v62 = vmax.f32 %v1821_v59, %v2210_v50  ;;  %v2224_v19 = vadd.f32 %v10571_v38, %v7923_v7  ;;  %v1827_v50 = vadd.f32 %v10700_v27, %v7745_v16  ;;  %v10747_v27 = vld [vmem:[#allocation6_spill] sm:$0xff] }
 0x2b0   :  { %10736 = vst [vmem:[#allocation93_spill] sm:$0xff] %v8193_v41  ;;  %10737 = vst [vmem:[#allocation108_spill] sm:$0xff] %v8195_v34  ;;  %3690 = vperm.xlu0 %6196, %v2997_v0   ;;  %3666 = vperm.xlu1 %6197, %v2989_v58   ;;  %v10739_v34 = vld [vmem:[#allocation71_spill] sm:$0xff]  ;;  %v2847_v0 = vadd.f32 %v10740_v10, %v7923_v7 }
 0x2b1   :  { %v3089_v41 = vmax.f32 %v2444_v36, %v2833_v35  ;;  %v1813_v2 = vadd.f32 %v10739_v34, %v7613_v54  ;;  %v3111_v36 = vmax.f32 %v2466_v62, %v2855_v44  ;;  %v2083_v44 = vadd.f32 %v6989_v26, %v7325_v39 }
 0x2b2   :  { %v2472_v62 = vmax.f32 %v1827_v50, %v2216_v6  ;;  %v2097_v50 = vadd.f32 %v10572_v21, %v7437_v46 }
 0x2b3   :  { %v8209_v58 = vpop.permute.xlu0 %3816  ;;  %v8211_v48 = vpop.permute.xlu1 %3927  ;;  %v2458_v53 = vmax.f32 %v1813_v2, %v2202_v9  ;;  %v2861_v2 = vadd.f32 %v10727_v56, %v8111_v51 }
 0x2b4   :  { %10741 = vst [vmem:[#allocation84_spill] sm:$0xff] %v8209_v58  ;;  %10742 = vst [vmem:[#allocation138_spill] sm:$0xff] %v8211_v48  ;;  %3990 = vperm.xlu0 %6196, %v3097_v63   ;;  %3966 = vperm.xlu1 %6197, %v3089_v41   ;;  %v2869_v58 = vadd.f32 %v10574_v25, %v8111_v51  ;;  %v10743_v63 = vld [vmem:[#allocation42_spill] sm:$0xff] }
 0x2b5   :  { %v3103_v35 = vmax.f32 %v2458_v53, %v2847_v0  ;;  %v10744_v41 = vld [vmem:[#allocation58_spill] sm:$0xff]  ;;  %v2480_v0 = vmax.f32 %v1835_v5, %v2224_v19  ;;  %v2075_v53 = vadd.f32 %v10671_v28, %v7325_v39  ;;  %v2720_v19 = vadd.f32 %v10674_v11, %v7437_v46 }
 0x2b6   :  { %v1433_v9 = vadd.f32 %v10744_v41, %v10743_v63  ;;  %v10748_v25 = vld [vmem:[#allocation26_spill] sm:$0xff]  ;;  %v1694_v63 = vadd.f32 %v10635_v24, %v7223_v22  ;;  %v2728_v41 = vadd.f32 %v10636_v1, %v7437_v46 }
 0x2b7   :  { %v8227_v59 = vpop.permute.xlu0 %3864  ;;  %v8229_v48 = vpop.permute.xlu1 %3840  ;;  %v732_v56 = vadd.f32 %v10748_v25, %v10747_v27 }
 0x2b8   :  { %10745 = vst [vmem:[#allocation42_spill] sm:$0xff] %v8227_v59  ;;  %10746 = vst [vmem:[#allocation58_spill] sm:$0xff] %v8229_v48  ;;  %4032 = vperm.xlu0 %6196, %v3111_v36   ;;  %4008 = vperm.xlu1 %6197, %v3103_v35   ;;  %v3125_v48 = vmax.f32 %v2480_v0, %v2869_v58  ;;  %v3117_v59 = vmax.f32 %v2472_v62, %v2861_v2 }
 0x2b9   :  { %v1686_v36 = vadd.f32 %v6922_v61, %v7223_v22  ;;  %v1453_v6 = vadd.f32 %v1433_v9, %v732_v56  ;;  %v2339_v25 = vmax.f32 %v1694_v63, %v2083_v44  ;;  %v2089_v58 = vadd.f32 %v6950_v52, %v7437_v46 }
 0x2ba   :  { %v1708_v0 = vadd.f32 %v6934_v57, %v7325_v39  ;;  %v2742_v56 = vadd.f32 %v10575_v13, %v8025_v60  ;;  %v1700_v9 = vadd.f32 %v6918_v14, %v7325_v39  ;;  %v2103_v63 = vadd.f32 %v10559_v30, %v8025_v60 }
 0x2bb   :  { %v8245_v5 = vpop.permute.xlu0 %3906  ;;  %v8247_v35 = vpop.permute.xlu1 %3888  ;;  %v2331_v27 = vmax.f32 %v1686_v36, %v2075_v53  ;;  %v2984_v2 = vmax.f32 %v2339_v25, %v2728_v41  ;;  %v1714_v25 = vadd.f32 %v10681_v47, %v7437_v46 }
 0x2bc   :  { %10749 = vst [vmem:[#allocation6_spill] sm:$0xff] %v8245_v5  ;;  %10750 = vst [vmem:[#allocation26_spill] sm:$0xff] %v8247_v35  ;;  %4074 = vperm.xlu0 %6196, %v3125_v48   ;;  %4050 = vperm.xlu1 %6197, %v3117_v59   ;;  %v2734_v48 = vadd.f32 %v7019_v43, %v8025_v60  ;;  %v8261_v59 = vmul.f32 0.5, %v1453_v6  ;;  %v2353_v41 = vmax.f32 %v1708_v0, %v2097_v50  ;;  %v10760_v35 = vld [vmem:[#allocation110_spill] sm:$0xff] }
 0x2bd   :  { %v2976_v62 = vmax.f32 %v2331_v27, %v2720_v19  ;;  %v2345_v36 = vmax.f32 %v1700_v9, %v2089_v58  ;;  %v2102_v19 = vadd.f32 %v10558_v49, %v8025_v60  ;;  %v2359_v58 = vmax.f32 %v1714_v25, %v2103_v63 }
 0x2be   :  { %10751 = vst [vmem:[#allocation139_spill] sm:$0xff] %v8261_v59  ;;  %v2748_v6 = vadd.f32 %v10682_v45, %v8261_v59  ;;  %v2998_v27 = vmax.f32 %v2353_v41, %v2742_v56  ;;  %v2111_v9 = vadd.f32 %v6969_v20, %v8025_v60  ;;  %v2110_v56 = vadd.f32 %v6952_v15, %v8025_v60 }
 0x2bf   :  { %v8263_v44 = vpop.permute.xlu0 %3819  ;;  %v8265_v53 = vpop.permute.xlu1 %3930  ;;  %v1722_v41 = vadd.f32 %v10569_v8, %v7437_v46  ;;  %v1721_v63 = vadd.f32 %v10551_v17, %v7437_v46  ;;  %v2197_v25 = vadd.f32 %v10664_v12, %v7613_v54  ;;  %v2842_v5 = vadd.f32 %v10760_v35, %v7745_v16  ;;  %v10762_v12 = vld [vmem:[#allocation104_spill] sm:$0xff] }
 0x2c0   :  { %10752 = vst [vmem:[#allocation140_spill] sm:$0xff] %v8263_v44  ;;  %10753 = vst [vmem:[#allocation141_spill] sm:$0xff] %v8265_v53  ;;  %3651 = vperm.xlu0 %6196, %v2984_v2   ;;  %3627 = vperm.xlu1 %6197, %v2976_v62   ;;  %v2990_v44 = vmax.f32 %v2345_v36, %v2734_v48  ;;  %v1713_v53 = vadd.f32 %v6908_v31, %v7437_v46 }
 0x2c1   :  { %v2747_v2 = vadd.f32 %v6987_v55, %v8261_v59  ;;  %v3004_v48 = vmax.f32 %v2359_v58, %v2748_v6  ;;  %v2367_v6 = vmax.f32 %v1722_v41, %v2111_v9  ;;  %v10764_v9 = vld [vmem:[#allocation68_spill] sm:$0xff] }
 0x2c2   :  { %v2358_v0 = vmax.f32 %v1713_v53, %v2102_v19 }
 0x2c3   :  { %v8279_v62 = vpop.permute.xlu0 %3867  ;;  %v8281_v50 = vpop.permute.xlu1 %3843 }
 0x2c4   :  { %10754 = vst [vmem:[#allocation142_spill] sm:$0xff] %v8279_v62  ;;  %10755 = vst [vmem:[#allocation143_spill] sm:$0xff] %v8281_v50  ;;  %3693 = vperm.xlu0 %6196, %v2998_v27   ;;  %3669 = vperm.xlu1 %6197, %v2990_v44   ;;  %v3003_v36 = vmax.f32 %v2358_v0, %v2747_v2  ;;  %v2756_v62 = vadd.f32 %v10570_v33, %v8261_v59  ;;  %v10758_v2 = vld [vmem:[#allocation90_spill] sm:$0xff]  ;;  %v10759_v0 = vld [vmem:[#allocation83_spill] sm:$0xff] }
 0x2c5   :  { %v2755_v44 = vadd.f32 %v10552_v4, %v8261_v59  ;;  %v2366_v27 = vmax.f32 %v1721_v63, %v2110_v56  ;;  %v2189_v58 = vadd.f32 %v10758_v2, %v7613_v54  ;;  %v1808_v50 = vadd.f32 %v10759_v0, %v7511_v3 }
 0x2c6   :  { %v3012_v59 = vmax.f32 %v2367_v6, %v2756_v62  ;;  %v2211_v62 = vadd.f32 %v6989_v26, %v7745_v16  ;;  %v10768_v6 = vld [vmem:[#allocation36_spill] sm:$0xff] }
 0x2c7   :  { %v8295_v53 = vpop.permute.xlu0 %3909  ;;  %v8297_v19 = vpop.permute.xlu1 %3891  ;;  %v2453_v2 = vmax.f32 %v1808_v50, %v2197_v25  ;;  %v2856_v50 = vadd.f32 %v10636_v1, %v7923_v7 }
 0x2c8   :  { %10756 = vst [vmem:[#allocation144_spill] sm:$0xff] %v8295_v53  ;;  %10757 = vst [vmem:[#allocation145_spill] sm:$0xff] %v8297_v19  ;;  %3711 = vperm.xlu0 %6196, %v3004_v48   ;;  %3708 = vperm.xlu1 %6197, %v3003_v36   ;;  %v3011_v53 = vmax.f32 %v2366_v27, %v2755_v44  ;;  %v10761_v19 = vld [vmem:[#allocation76_spill] sm:$0xff]  ;;  %v2834_v48 = vadd.f32 %v10762_v12, %v7745_v16 }
 0x2c9   :  { %v1800_v40 = vadd.f32 %v10761_v19, %v7511_v3  ;;  %v10763_v36 = vld [vmem:[#allocation52_spill] sm:$0xff]  ;;  %v2203_v3 = vadd.f32 %v10671_v28, %v7745_v16  ;;  %v3098_v12 = vmax.f32 %v2453_v2, %v2842_v5  ;;  %v2225_v5 = vadd.f32 %v10572_v21, %v7923_v7 }
 0x2ca   :  { %v1443_v56 = vadd.f32 %v10764_v9, %v10763_v36  ;;  %v10767_v44 = vld [vmem:[#allocation20_spill] sm:$0xff]  ;;  %v1822_v36 = vadd.f32 %v10635_v24, %v7613_v54 }
 0x2cb   :  { %v8313_v41 = vpop.permute.xlu0 %3948  ;;  %v8315_v63 = vpop.permute.xlu1 %3933  ;;  %v2445_v0 = vmax.f32 %v1800_v40, %v2189_v58  ;;  %v742_v27 = vadd.f32 %v10768_v6, %v10767_v44  ;;  %v1814_v40 = vadd.f32 %v6922_v61, %v7613_v54  ;;  %v1836_v44 = vadd.f32 %v6934_v57, %v7745_v16 }
 0x2cc   :  { %10765 = vst [vmem:[#allocation110_spill] sm:$0xff] %v8313_v41  ;;  %10766 = vst [vmem:[#allocation76_spill] sm:$0xff] %v8315_v63  ;;  %3735 = vperm.xlu0 %6196, %v3012_v59   ;;  %3732 = vperm.xlu1 %6197, %v3011_v53   ;;  %v2848_v59 = vadd.f32 %v10674_v11, %v7923_v7  ;;  %v2467_v2 = vmax.f32 %v1822_v36, %v2211_v62 }
 0x2cd   :  { %v3090_v9 = vmax.f32 %v2445_v0, %v2834_v48  ;;  %v1463_v53 = vadd.f32 %v1443_v56, %v742_v27  ;;  %v2459_v0 = vmax.f32 %v1814_v40, %v2203_v3  ;;  %v2217_v48 = vadd.f32 %v6950_v52, %v7923_v7 }
 0x2ce   :  { %v2870_v56 = vadd.f32 %v10575_v13, %v8111_v51  ;;  %v3112_v6 = vmax.f32 %v2467_v2, %v2856_v50  ;;  %v2481_v3 = vmax.f32 %v1836_v44, %v2225_v5  ;;  %v2231_v50 = vadd.f32 %v10559_v30, %v8111_v51 }
 0x2cf   :  { %v8331_v25 = vpop.permute.xlu0 %3972  ;;  %v8333_v58 = vpop.permute.xlu1 %3951  ;;  %v3104_v27 = vmax.f32 %v2459_v0, %v2848_v59  ;;  %v8351_v36 = vmul.f32 0.5, %v1463_v53  ;;  %v2230_v59 = vadd.f32 %v10558_v49, %v8111_v51  ;;  %v1842_v0 = vadd.f32 %v10681_v47, %v7923_v7 }
 0x2d0   :  { %10769 = vst [vmem:[#allocation52_spill] sm:$0xff] %v8331_v25  ;;  %10770 = vst [vmem:[#allocation68_spill] sm:$0xff] %v8333_v58  ;;  %3993 = vperm.xlu0 %6196, %v3098_v12   ;;  %3969 = vperm.xlu1 %6197, %v3090_v9   ;;  %v1828_v25 = vadd.f32 %v6918_v14, %v7745_v16  ;;  %v2862_v12 = vadd.f32 %v7019_v43, %v8111_v51 }
 0x2d1   :  { %v3126_v2 = vmax.f32 %v2481_v3, %v2870_v56  ;;  %v1841_v53 = vadd.f32 %v6908_v31, %v7923_v7  ;;  %v2239_v44 = vadd.f32 %v6969_v20, %v8111_v51  ;;  %v2487_v56 = vmax.f32 %v1842_v0, %v2231_v50 }
 0x2d2   :  { %v2473_v40 = vmax.f32 %v1828_v25, %v2217_v48  ;;  %v2875_v25 = vadd.f32 %v6987_v55, %v8351_v36  ;;  %v2884_v3 = vadd.f32 %v10570_v33, %v8351_v36  ;;  %v1709_v63 = vadd.f32 %v10693_v18, %v7325_v39 }
 0x2d3   :  { %v8347_v9 = vpop.permute.xlu0 %3822  ;;  %v8349_v62 = vpop.permute.xlu1 %3975  ;;  %v2857_v20 = vadd.f32 %v10733_v37, %v7923_v7 }
 0x2d4   :  { %10771 = vst [vmem:[#allocation20_spill] sm:$0xff] %v8347_v9  ;;  %10772 = vst [vmem:[#allocation36_spill] sm:$0xff] %v8349_v62  ;;  %4035 = vperm.xlu0 %6196, %v3112_v6   ;;  %4011 = vperm.xlu1 %6197, %v3104_v27   ;;  %v3118_v41 = vmax.f32 %v2473_v40, %v2862_v12  ;;  %v2876_v9 = vadd.f32 %v10682_v45, %v8351_v36 }
 0x2d5   :  { %v2486_v6 = vmax.f32 %v1841_v53, %v2230_v59  ;;  %v2238_v27 = vadd.f32 %v6952_v15, %v8111_v51  ;;  %v1850_v12 = vadd.f32 %v10569_v8, %v7923_v7  ;;  %v2084_v53 = vadd.f32 %v10730_v29, %v7325_v39  ;;  %v10787_v8 = vld [vmem:[#allocation139_spill] sm:$0xff] }
 0x2d6   :  { %v3132_v40 = vmax.f32 %v2487_v56, %v2876_v9  ;;  %v10777_v9 = vld [vmem:[#allocation86_spill] sm:$0xff]  ;;  %v10788_v15 = vld [vmem:[#allocation103_spill] sm:$0xff] }
 0x2d7   :  { %v8365_v5 = vpop.permute.xlu0 %3870  ;;  %v8367_v48 = vpop.permute.xlu1 %3846  ;;  %v2495_v59 = vmax.f32 %v1850_v12, %v2239_v44 }
 0x2d8   :  { %10773 = vst [vmem:[#allocation146_spill] sm:$0xff] %v8365_v5  ;;  %10774 = vst [vmem:[#allocation147_spill] sm:$0xff] %v8367_v48  ;;  %4077 = vperm.xlu0 %6196, %v3126_v2   ;;  %4053 = vperm.xlu1 %6197, %v3118_v41   ;;  %v3131_v5 = vmax.f32 %v2486_v6, %v2875_v25  ;;  %v1849_v48 = vadd.f32 %v10551_v17, %v7923_v7  ;;  %v10778_v6 = vld [vmem:[#allocation79_spill] sm:$0xff] }
 0x2d9   :  { %v2883_v2 = vadd.f32 %v10552_v4, %v8351_v36  ;;  %v2076_v25 = vadd.f32 %v10777_v9, %v7325_v39  ;;  %v3140_v56 = vmax.f32 %v2495_v59, %v2884_v3  ;;  %v1695_v62 = vadd.f32 %v10778_v6, %v7223_v22 }
 0x2da   :  { %v2494_v0 = vmax.f32 %v1849_v48, %v2238_v27  ;;  %v2743_v4 = vadd.f32 %v10694_v23, %v8025_v60 }
 0x2db   :  { %v8381_v41 = vpop.permute.xlu0 %3912  ;;  %v8383_v50 = vpop.permute.xlu1 %3894  ;;  %v2340_v59 = vmax.f32 %v1695_v62, %v2084_v53 }
 0x2dc   :  { %10775 = vst [vmem:[#allocation148_spill] sm:$0xff] %v8381_v41  ;;  %10776 = vst [vmem:[#allocation149_spill] sm:$0xff] %v8383_v50  ;;  %4095 = vperm.xlu0 %6196, %v3132_v40   ;;  %4092 = vperm.xlu1 %6197, %v3131_v5   ;;  %v3139_v58 = vmax.f32 %v2494_v0, %v2883_v2  ;;  %v2729_v41 = vadd.f32 %v10733_v37, %v7437_v46  ;;  %v10779_v50 = vld [vmem:[#allocation73_spill] sm:$0xff]  ;;  %v10780_v5 = vld [vmem:[#allocation100_spill] sm:$0xff] }
 0x2dd   :  { %v1687_v44 = vadd.f32 %v10779_v50, %v7223_v22  ;;  %v2721_v48 = vadd.f32 %v10780_v5, %v7437_v46  ;;  %v10783_v40 = vld [vmem:[#allocation91_spill] sm:$0xff]  ;;  %v2090_v0 = vadd.f32 %v10738_v32, %v7437_v46 }
 0x2de   :  { %v2098_v3 = vadd.f32 %v10783_v40, %v7437_v46  ;;  %v2985_v17 = vmax.f32 %v2340_v59, %v2729_v41  ;;  %v2104_v41 = vadd.f32 %v10699_v42, %v8025_v60  ;;  %v10786_v59 = vld [vmem:[#allocation75_spill] sm:$0xff] }
 0x2df   :  { %v8397_v27 = vpop.permute.xlu0 %3954  ;;  %v8399_v12 = vpop.permute.xlu1 %3936  ;;  %v2332_v2 = vmax.f32 %v1687_v44, %v2076_v25  ;;  %v2112_v44 = vadd.f32 %v10571_v38, %v8025_v60 }
 0x2e0   :  { %10781 = vst [vmem:[#allocation86_spill] sm:$0xff] %v8397_v27  ;;  %10782 = vst [vmem:[#allocation79_spill] sm:$0xff] %v8399_v12  ;;  %4119 = vperm.xlu0 %6196, %v3140_v56   ;;  %4116 = vperm.xlu1 %6197, %v3139_v58   ;;  %v1701_v12 = vadd.f32 %v10739_v34, %v7325_v39  ;;  %v2735_v56 = vadd.f32 %v10740_v10, %v8025_v60 }
 0x2e1   :  { %v2977_v27 = vmax.f32 %v2332_v2, %v2721_v48  ;;  %v2354_v53 = vmax.f32 %v1709_v63, %v2098_v3  ;;  %v1723_v2 = vadd.f32 %v10786_v59, %v7437_v46 }
 0x2e2   :  { %v2346_v25 = vmax.f32 %v1701_v12, %v2090_v0 }
 0x2e3   :  { %v8413_v58 = vpop.permute.xlu0 %3636  ;;  %v8415_v62 = vpop.permute.xlu1 %3978  ;;  %v2999_v48 = vmax.f32 %v2354_v53, %v2743_v4  ;;  %v2212_v4 = vadd.f32 %v10730_v29, %v7745_v16  ;;  %v2368_v0 = vmax.f32 %v1723_v2, %v2112_v44  ;;  %v2204_v53 = vadd.f32 %v10777_v9, %v7745_v16 }
 0x2e4   :  { %10784 = vst [vmem:[#allocation73_spill] sm:$0xff] %v8413_v58  ;;  %10785 = vst [vmem:[#allocation100_spill] sm:$0xff] %v8415_v62  ;;  %3654 = vperm.xlu0 %6196, %v2985_v17   ;;  %3630 = vperm.xlu1 %6197, %v2977_v27   ;;  %v2991_v33 = vmax.f32 %v2346_v25, %v2735_v56  ;;  %v2757_v58 = vadd.f32 %v10788_v15, %v10787_v8  ;;  %v10789_v62 = vld [vmem:[#allocation72_spill] sm:$0xff] }
 0x2e5   :  { %v1715_v63 = vadd.f32 %v10789_v62, %v7437_v46  ;;  %v10790_v17 = vld [vmem:[#allocation96_spill] sm:$0xff]  ;;  %v1823_v25 = vadd.f32 %v10778_v6, %v7613_v54 }
 0x2e6   :  { %v2749_v27 = vadd.f32 %v10790_v17, %v10787_v8  ;;  %v3013_v55 = vmax.f32 %v2368_v0, %v2757_v58  ;;  %v2218_v58 = vadd.f32 %v10738_v32, %v7923_v7  ;;  %v1837_v0 = vadd.f32 %v10693_v18, %v7745_v16 }
 0x2e7   :  { %v8429_v12 = vpop.permute.xlu0 %3825  ;;  %v8431_v3 = vpop.permute.xlu1 %3639  ;;  %v2360_v56 = vmax.f32 %v1715_v63, %v2104_v41  ;;  %v2468_v41 = vmax.f32 %v1823_v25, %v2212_v4  ;;  %v2226_v63 = vadd.f32 %v10783_v40, %v7923_v7  ;;  %v1829_v4 = vadd.f32 %v10739_v34, %v7745_v16 }
 0x2e8   :  { %10791 = vst [vmem:[#allocation91_spill] sm:$0xff] %v8429_v12  ;;  %10792 = vst [vmem:[#allocation150_spill] sm:$0xff] %v8431_v3  ;;  %3696 = vperm.xlu0 %6196, %v2999_v48   ;;  %3672 = vperm.xlu1 %6197, %v2991_v33   ;;  %v1815_v3 = vadd.f32 %v10779_v50, %v7613_v54  ;;  %v2849_v48 = vadd.f32 %v10780_v5, %v7923_v7 }
 0x2e9   :  { %v3005_v12 = vmax.f32 %v2360_v56, %v2749_v27  ;;  %v3113_v27 = vmax.f32 %v2468_v41, %v2857_v20  ;;  %v2240_v20 = vadd.f32 %v10571_v38, %v8111_v51  ;;  %v2474_v25 = vmax.f32 %v1829_v4, %v2218_v58  ;;  %v10799_v4 = vld [vmem:[#allocation97_spill] sm:$0xff] }
 0x2ea   :  { %v2460_v2 = vmax.f32 %v1815_v3, %v2204_v53  ;;  %v2482_v53 = vmax.f32 %v1837_v0, %v2226_v63  ;;  %v1851_v41 = vadd.f32 %v10786_v59, %v7923_v7  ;;  %v2085_v59 = vadd.f32 %v10799_v4, %v7325_v39 }
 0x2eb   :  { %v8445_v33 = vpop.permute.xlu0 %3873  ;;  %v8447_v44 = vpop.permute.xlu1 %3849 }
 0x2ec   :  { %10793 = vst [vmem:[#allocation151_spill] sm:$0xff] %v8445_v33  ;;  %10794 = vst [vmem:[#allocation152_spill] sm:$0xff] %v8447_v44  ;;  %3738 = vperm.xlu0 %6196, %v3013_v55   ;;  %3714 = vperm.xlu1 %6197, %v3005_v12   ;;  %v3105_v56 = vmax.f32 %v2460_v2, %v2849_v48  ;;  %v2871_v33 = vadd.f32 %v10694_v23, %v8111_v51  ;;  %v10820_v23 = vld [vmem:[#allocation105_spill] sm:$0xff] }
 0x2ed   :  { %v2863_v55 = vadd.f32 %v10740_v10, %v8111_v51  ;;  %v2232_v48 = vadd.f32 %v10699_v42, %v8111_v51  ;;  %v2885_v2 = vadd.f32 %v10788_v15, %v8351_v36  ;;  %v2496_v58 = vmax.f32 %v1851_v41, %v2240_v20  ;;  %v10808_v42 = vld [vmem:[#allocation27_spill] sm:$0xff] }
 0x2ee   :  { %v3127_v44 = vmax.f32 %v2482_v53, %v2871_v33  ;;  %v10800_v33 = vld [vmem:[#allocation90_spill] sm:$0xff]  ;;  %v1688_v20 = vadd.f32 %v10761_v19, %v7223_v22 }
 0x2ef   :  { %v8461_v12 = vpop.permute.xlu0 %3915  ;;  %v8463_v3 = vpop.permute.xlu1 %3897  ;;  %v3141_v53 = vmax.f32 %v2496_v58, %v2885_v2  ;;  %v2099_v2 = vadd.f32 %v6989_v26, %v7437_v46 }
 0x2f0   :  { %10795 = vst [vmem:[#allocation153_spill] sm:$0xff] %v8461_v12  ;;  %10796 = vst [vmem:[#allocation154_spill] sm:$0xff] %v8463_v3  ;;  %4038 = vperm.xlu0 %6196, %v3113_v27   ;;  %4014 = vperm.xlu1 %6197, %v3105_v56   ;;  %v3119_v12 = vmax.f32 %v2474_v25, %v2863_v55  ;;  %v1843_v3 = vadd.f32 %v10789_v62, %v7923_v7  ;;  %v10801_v25 = vld [vmem:[#allocation83_spill] sm:$0xff] }
 0x2f1   :  { %v2877_v27 = vadd.f32 %v10790_v17, %v8351_v36  ;;  %v2077_v55 = vadd.f32 %v10800_v33, %v7325_v39  ;;  %v1696_v62 = vadd.f32 %v10801_v25, %v7223_v22  ;;  %v2091_v22 = vadd.f32 %v10671_v28, %v7437_v46 }
 0x2f2   :  { %v2488_v0 = vmax.f32 %v1843_v3, %v2232_v48  ;;  %v10803_v3 = vld [vmem:[#allocation43_spill] sm:$0xff] }
 0x2f3   :  { %v8477_v56 = vpop.permute.xlu0 %3957  ;;  %v8479_v63 = vpop.permute.xlu1 %3939  ;;  %v10804_v48 = vld [vmem:[#allocation59_spill] sm:$0xff]  ;;  %v2333_v58 = vmax.f32 %v1688_v20, %v2077_v55 }
 0x2f4   :  { %10797 = vst [vmem:[#allocation155_spill] sm:$0xff] %v8477_v56  ;;  %10798 = vst [vmem:[#allocation156_spill] sm:$0xff] %v8479_v63  ;;  %4080 = vperm.xlu0 %6196, %v3127_v44   ;;  %4056 = vperm.xlu1 %6197, %v3119_v12   ;;  %v3133_v15 = vmax.f32 %v2488_v0, %v2877_v27  ;;  %v2730_v56 = vadd.f32 %v10760_v35, %v7437_v46  ;;  %v10802_v44 = vld [vmem:[#allocation104_spill] sm:$0xff]  ;;  %v10807_v0 = vld [vmem:[#allocation7_spill] sm:$0xff] }
 0x2f5   :  { %v2722_v12 = vadd.f32 %v10802_v44, %v7437_v46  ;;  %v1434_v41 = vadd.f32 %v10804_v48, %v10803_v3  ;;  %v2341_v27 = vmax.f32 %v1696_v62, %v2085_v59  ;;  %v733_v38 = vadd.f32 %v10808_v42, %v10807_v0 }
 0x2f6   :  { %v1710_v3 = vadd.f32 %v10635_v24, %v7325_v39  ;;  %v2744_v48 = vadd.f32 %v10636_v1, %v8025_v60  ;;  %v2113_v0 = vadd.f32 %v10572_v21, %v8025_v60 }
 0x2f7   :  { %v8495_v63 = vpop.permute.xlu0 %3996  ;;  %v8497_v17 = vpop.permute.xlu1 %3981  ;;  %v1454_v62 = vadd.f32 %v1434_v41, %v733_v38  ;;  %v2758_v38 = vadd.f32 %v10575_v13, %v10787_v8  ;;  %v1716_v41 = vadd.f32 %v6918_v14, %v7437_v46 }
 0x2f8   :  { %10805 = vst [vmem:[#allocation97_spill] sm:$0xff] %v8495_v63  ;;  %10806 = vst [vmem:[#allocation43_spill] sm:$0xff] %v8497_v17  ;;  %4122 = vperm.xlu0 %6196, %v3141_v53   ;;  %4098 = vperm.xlu1 %6197, %v3133_v15   ;;  %v2986_v63 = vmax.f32 %v2341_v27, %v2730_v56  ;;  %v2978_v17 = vmax.f32 %v2333_v58, %v2722_v12 }
 0x2f9   :  { %v1702_v53 = vadd.f32 %v6922_v61, %v7325_v39  ;;  %v2736_v15 = vadd.f32 %v10674_v11, %v8025_v60  ;;  %v2355_v42 = vmax.f32 %v1710_v3, %v2099_v2  ;;  %v2105_v56 = vadd.f32 %v6950_v52, %v8025_v60 }
 0x2fa   :  { %v1724_v27 = vadd.f32 %v6934_v57, %v7437_v46  ;;  %v2119_v3 = vadd.f32 %v10559_v30, %v10787_v8 }
 0x2fb   :  { %v8513_v59 = vpop.permute.xlu0 %4020  ;;  %v8515_v55 = vpop.permute.xlu1 %3999  ;;  %v2347_v20 = vmax.f32 %v1702_v53, %v2091_v22  ;;  %v3000_v12 = vmax.f32 %v2355_v42, %v2744_v48  ;;  %v2361_v53 = vmax.f32 %v1716_v41, %v2105_v56  ;;  %v1730_v42 = vadd.f32 %v10681_v47, %v8025_v60  ;;  %v10817_v41 = vld [vmem:[#allocation92_spill] sm:$0xff] }
 0x2fc   :  { %10809 = vst [vmem:[#allocation59_spill] sm:$0xff] %v8513_v59  ;;  %10810 = vst [vmem:[#allocation7_spill] sm:$0xff] %v8515_v55  ;;  %3657 = vperm.xlu0 %6196, %v2986_v63   ;;  %3633 = vperm.xlu1 %6197, %v2978_v17   ;;  %v2750_v17 = vadd.f32 %v7019_v43, %v10787_v8  ;;  %v8529_v63 = vmul.f32 0.5, %v1454_v62  ;;  %v2369_v48 = vmax.f32 %v1724_v27, %v2113_v0 }
 0x2fd   :  { %v2992_v58 = vmax.f32 %v2347_v20, %v2736_v15  ;;  %v2118_v15 = vadd.f32 %v10558_v49, %v10787_v8  ;;  %v2375_v56 = vmax.f32 %v1730_v42, %v2119_v3  ;;  %v2127_v55 = vadd.f32 %v10817_v41, %v10787_v8 }
 0x2fe   :  { %10811 = vst [vmem:[#allocation27_spill] sm:$0xff] %v8529_v63  ;;  %v2764_v62 = vadd.f32 %v10682_v45, %v8529_v63  ;;  %v3014_v20 = vmax.f32 %v2369_v48, %v2758_v38  ;;  %v3006_v59 = vmax.f32 %v2361_v53, %v2750_v17  ;;  %v10818_v38 = vld [vmem:[#allocation87_spill] sm:$0xff]  ;;  %v10819_v53 = vld [vmem:[#allocation78_spill] sm:$0xff] }
 0x2ff   :  { %v8531_v2 = vpop.permute.xlu0 %3642  ;;  %v8533_v22 = vpop.permute.xlu1 %4023  ;;  %v2126_v17 = vadd.f32 %v10818_v38, %v10787_v8  ;;  %v1738_v10 = vadd.f32 %v10819_v53, %v8025_v60 }
 0x300   :  { %10812 = vst [vmem:[#allocation157_spill] sm:$0xff] %v8531_v2  ;;  %10813 = vst [vmem:[#allocation158_spill] sm:$0xff] %v8533_v22  ;;  %3699 = vperm.xlu0 %6196, %v3000_v12   ;;  %3675 = vperm.xlu1 %6197, %v2992_v58   ;;  %v1729_v22 = vadd.f32 %v6908_v31, %v8025_v60  ;;  %v10814_v2 = vld [vmem:[#allocation95_spill] sm:$0xff]  ;;  %v3020_v48 = vmax.f32 %v2375_v56, %v2764_v62 }
 0x301   :  { %v2763_v12 = vadd.f32 %v10814_v2, %v8529_v63  ;;  %v2213_v62 = vadd.f32 %v10799_v4, %v7745_v16  ;;  %v2205_v56 = vadd.f32 %v10800_v33, %v7745_v16 }
 0x302   :  { %v2374_v27 = vmax.f32 %v1729_v22, %v2118_v15 }
 0x303   :  { %v8547_v58 = vpop.permute.xlu0 %3942  ;;  %v8549_v0 = vpop.permute.xlu1 %3918 }
 0x304   :  { %10815 = vst [vmem:[#allocation95_spill] sm:$0xff] %v8547_v58  ;;  %10816 = vst [vmem:[#allocation159_spill] sm:$0xff] %v8549_v0  ;;  %3741 = vperm.xlu0 %6196, %v3014_v20   ;;  %3717 = vperm.xlu1 %6197, %v3006_v59   ;;  %v3019_v34 = vmax.f32 %v2374_v27, %v2763_v12  ;;  %v2772_v58 = vadd.f32 %v10820_v23, %v8529_v63  ;;  %v10821_v0 = vld [vmem:[#allocation74_spill] sm:$0xff]  ;;  %v10822_v59 = vld [vmem:[#allocation101_spill] sm:$0xff] }
 0x305   :  { %v1737_v3 = vadd.f32 %v10821_v0, %v8025_v60  ;;  %v2771_v22 = vadd.f32 %v10822_v59, %v8529_v63  ;;  %v2383_v20 = vmax.f32 %v1738_v10, %v2127_v55  ;;  %v1824_v27 = vadd.f32 %v10801_v25, %v7613_v54  ;;  %v10826_v10 = vld [vmem:[#allocation69_spill] sm:$0xff] }
 0x306   :  { %v2858_v63 = vadd.f32 %v10760_v35, %v7923_v7 }
 0x307   :  { %v8563_v15 = vpop.permute.xlu0 %3984  ;;  %v8565_v42 = vpop.permute.xlu1 %3960  ;;  %v2382_v12 = vmax.f32 %v1737_v3, %v2126_v17  ;;  %v3028_v8 = vmax.f32 %v2383_v20, %v2772_v58  ;;  %v2469_v33 = vmax.f32 %v1824_v27, %v2213_v62  ;;  %v2227_v58 = vadd.f32 %v6989_v26, %v7923_v7  ;;  %v10830_v20 = vld [vmem:[#allocation37_spill] sm:$0xff] }
 0x308   :  { %10823 = vst [vmem:[#allocation92_spill] sm:$0xff] %v8563_v15  ;;  %10824 = vst [vmem:[#allocation87_spill] sm:$0xff] %v8565_v42  ;;  %3759 = vperm.xlu0 %6196, %v3020_v48   ;;  %3756 = vperm.xlu1 %6197, %v3019_v34   ;;  %v1816_v42 = vadd.f32 %v10761_v19, %v7613_v54  ;;  %v2850_v48 = vadd.f32 %v10802_v44, %v7923_v7  ;;  %v10825_v34 = vld [vmem:[#allocation53_spill] sm:$0xff] }
 0x309   :  { %v3027_v15 = vmax.f32 %v2382_v12, %v2771_v22  ;;  %v1444_v55 = vadd.f32 %v10826_v10, %v10825_v34  ;;  %v2219_v54 = vadd.f32 %v10671_v28, %v7923_v7  ;;  %v10829_v22 = vld [vmem:[#allocation21_spill] sm:$0xff]  ;;  %v3114_v44 = vmax.f32 %v2469_v33, %v2858_v63 }
 0x30a   :  { %v2461_v25 = vmax.f32 %v1816_v42, %v2205_v56  ;;  %v743_v12 = vadd.f32 %v10830_v20, %v10829_v22  ;;  %v1838_v34 = vadd.f32 %v10635_v24, %v7745_v16  ;;  %v2872_v62 = vadd.f32 %v10636_v1, %v8111_v51 }
 0x30b   :  { %v8581_v17 = vpop.permute.xlu0 %4026  ;;  %v8583_v3 = vpop.permute.xlu1 %4002  ;;  %v2241_v33 = vadd.f32 %v10572_v21, %v8111_v51  ;;  %v1852_v22 = vadd.f32 %v6934_v57, %v7923_v7 }
 0x30c   :  { %10827 = vst [vmem:[#allocation78_spill] sm:$0xff] %v8581_v17  ;;  %10828 = vst [vmem:[#allocation105_spill] sm:$0xff] %v8583_v3  ;;  %3783 = vperm.xlu0 %6196, %v3028_v8   ;;  %3780 = vperm.xlu1 %6197, %v3027_v15   ;;  %v3106_v10 = vmax.f32 %v2461_v25, %v2850_v48  ;;  %v1830_v8 = vadd.f32 %v6922_v61, %v7745_v16 }
 0x30d   :  { %v2864_v15 = vadd.f32 %v10674_v11, %v8111_v51  ;;  %v1464_v42 = vadd.f32 %v1444_v55, %v743_v12  ;;  %v2483_v25 = vmax.f32 %v1838_v34, %v2227_v58  ;;  %v2233_v48 = vadd.f32 %v6950_v52, %v8111_v51 }
 0x30e   :  { %v2475_v63 = vmax.f32 %v1830_v8, %v2219_v54  ;;  %v2886_v55 = vadd.f32 %v10575_v13, %v8351_v36  ;;  %v2497_v54 = vmax.f32 %v1852_v22, %v2241_v33 }
 0x30f   :  { %v8599_v56 = vpop.permute.xlu0 %3660  ;;  %v8601_v27 = vpop.permute.xlu1 %3645  ;;  %v3128_v20 = vmax.f32 %v2483_v25, %v2872_v62  ;;  %v8619_v34 = vmul.f32 0.5, %v1464_v42  ;;  %v2247_v62 = vadd.f32 %v10559_v30, %v8351_v36  ;;  %v1857_v42 = vadd.f32 %v6908_v31, %v8111_v51 }
 0x310   :  { %10831 = vst [vmem:[#allocation74_spill] sm:$0xff] %v8599_v56  ;;  %10832 = vst [vmem:[#allocation101_spill] sm:$0xff] %v8601_v27  ;;  %4041 = vperm.xlu0 %6196, %v3114_v44   ;;  %4017 = vperm.xlu1 %6197, %v3106_v10   ;;  %v3120_v12 = vmax.f32 %v2475_v63, %v2864_v15  ;;  %v1844_v56 = vadd.f32 %v6918_v14, %v7923_v7 }
 0x311   :  { %v2878_v44 = vadd.f32 %v7019_v43, %v8351_v36  ;;  %v2246_v15 = vadd.f32 %v10558_v49, %v8351_v36  ;;  %v3142_v25 = vmax.f32 %v2497_v54, %v2886_v55  ;;  %v1858_v63 = vadd.f32 %v10681_v47, %v8111_v51 }
 0x312   :  { %v2489_v8 = vmax.f32 %v1844_v56, %v2233_v48  ;;  %v2891_v56 = vadd.f32 %v10814_v2, %v8619_v34  ;;  %v2255_v49 = vadd.f32 %v10817_v41, %v8351_v36  ;;  %v1866_v31 = vadd.f32 %v10819_v53, %v8111_v51 }
 0x313   :  { %v8615_v10 = vpop.permute.xlu0 %3684  ;;  %v8617_v58 = vpop.permute.xlu1 %3663  ;;  %v2503_v47 = vmax.f32 %v1858_v63, %v2247_v62  ;;  %v2502_v48 = vmax.f32 %v1857_v42, %v2246_v15  ;;  %v2900_v2 = vadd.f32 %v10820_v23, %v8619_v34  ;;  %v2899_v41 = vadd.f32 %v10822_v59, %v8619_v34 }
 0x314   :  { %10833 = vst [vmem:[#allocation53_spill] sm:$0xff] %v8615_v10  ;;  %10834 = vst [vmem:[#allocation69_spill] sm:$0xff] %v8617_v58  ;;  %4083 = vperm.xlu0 %6196, %v3128_v20   ;;  %4059 = vperm.xlu1 %6197, %v3120_v12   ;;  %v3134_v27 = vmax.f32 %v2489_v8, %v2878_v44  ;;  %v2892_v10 = vadd.f32 %v10682_v45, %v8619_v34 }
 0x315   :  { %v2254_v45 = vadd.f32 %v10818_v38, %v8351_v36  ;;  %v3147_v55 = vmax.f32 %v2502_v48, %v2891_v56  ;;  %v1865_v20 = vadd.f32 %v10821_v0, %v8111_v51  ;;  %v2511_v44 = vmax.f32 %v1866_v31, %v2255_v49  ;;  %v10841_v48 = vld [vmem:[#allocation139_spill] sm:$0xff] }
 0x316   :  { %v3148_v22 = vmax.f32 %v2503_v47, %v2892_v10  ;;  %v2100_v53 = vadd.f32 %v10730_v29, %v7437_v46  ;;  %v2092_v23 = vadd.f32 %v10777_v9, %v7437_v46  ;;  %v1711_v0 = vadd.f32 %v10778_v6, %v7325_v39 }
 0x317   :  { %v8633_v33 = vpop.permute.xlu0 %3921  ;;  %v8635_v30 = vpop.permute.xlu1 %3687  ;;  %v2510_v38 = vmax.f32 %v1865_v20, %v2254_v45  ;;  %v3156_v10 = vmax.f32 %v2511_v44, %v2900_v2  ;;  %v2745_v59 = vadd.f32 %v10733_v37, %v8025_v60  ;;  %v1703_v8 = vadd.f32 %v10779_v50, %v7325_v39  ;;  %v10842_v45 = vld [vmem:[#allocation106_spill] sm:$0xff] }
 0x318   :  { %10835 = vst [vmem:[#allocation21_spill] sm:$0xff] %v8633_v33  ;;  %10836 = vst [vmem:[#allocation37_spill] sm:$0xff] %v8635_v30  ;;  %4125 = vperm.xlu0 %6196, %v3142_v25   ;;  %4101 = vperm.xlu1 %6197, %v3134_v27   ;;  %v2737_v62 = vadd.f32 %v10780_v5, %v8025_v60  ;;  %v2114_v63 = vadd.f32 %v10783_v40, %v8025_v60  ;;  %v10851_v33 = vld [vmem:[#allocation103_spill] sm:$0xff] }
 0x319   :  { %v3155_v54 = vmax.f32 %v2510_v38, %v2899_v41  ;;  %v2356_v42 = vmax.f32 %v1711_v0, %v2100_v53  ;;  %v2348_v56 = vmax.f32 %v1703_v8, %v2092_v23  ;;  %v2106_v49 = vadd.f32 %v10738_v32, %v8025_v60  ;;  %v10844_v41 = vld [vmem:[#allocation98_spill] sm:$0xff]  ;;  %v10847_v0 = vld [vmem:[#allocation89_spill] sm:$0xff] }
 0x31a   :  { %v1725_v47 = vadd.f32 %v10693_v18, %v7437_v46  ;;  %v2759_v31 = vadd.f32 %v10842_v45, %v10841_v48  ;;  %v2751_v44 = vadd.f32 %v10844_v41, %v10841_v48 }
 0x31b   :  { %v8649_v27 = vpop.permute.xlu0 %3963  ;;  %v8651_v12 = vpop.permute.xlu1 %3945  ;;  %v3001_v2 = vmax.f32 %v2356_v42, %v2745_v59  ;;  %v10848_v59 = vld [vmem:[#allocation82_spill] sm:$0xff]  ;;  %v10849_v42 = vld [vmem:[#allocation75_spill] sm:$0xff] }
 0x31c   :  { %10837 = vst [vmem:[#allocation160_spill] sm:$0xff] %v8649_v27  ;;  %10838 = vst [vmem:[#allocation161_spill] sm:$0xff] %v8651_v12  ;;  %4143 = vperm.xlu0 %6196, %v3148_v22   ;;  %4140 = vperm.xlu1 %6197, %v3147_v55   ;;  %v2993_v22 = vmax.f32 %v2348_v56, %v2737_v62  ;;  %v10843_v55 = vld [vmem:[#allocation71_spill] sm:$0xff]  ;;  %v2370_v23 = vmax.f32 %v1725_v47, %v2114_v63  ;;  %v10853_v47 = vld [vmem:[#allocation96_spill] sm:$0xff] }
 0x31d   :  { %v1717_v20 = vadd.f32 %v10843_v55, %v7437_v46  ;;  %v2120_v8 = vadd.f32 %v10848_v59, %v10841_v48  ;;  %v1739_v56 = vadd.f32 %v10849_v42, %v8025_v60  ;;  %v10850_v12 = vld [vmem:[#allocation27_spill] sm:$0xff]  ;;  %v1839_v27 = vadd.f32 %v10778_v6, %v7745_v16 }
 0x31e   :  { %v3015_v62 = vmax.f32 %v2370_v23, %v2759_v31  ;;  %v2228_v31 = vadd.f32 %v10730_v29, %v7923_v7  ;;  %v2248_v3 = vadd.f32 %v10848_v59, %v8351_v36 }
 0x31f   :  { %v8665_v15 = vpop.permute.xlu0 %4005  ;;  %v8667_v25 = vpop.permute.xlu1 %3987 }
 0x320   :  { %10839 = vst [vmem:[#allocation162_spill] sm:$0xff] %v8665_v15  ;;  %10840 = vst [vmem:[#allocation163_spill] sm:$0xff] %v8667_v25  ;;  %4167 = vperm.xlu0 %6196, %v3156_v10   ;;  %4164 = vperm.xlu1 %6197, %v3155_v54   ;;  %v2362_v10 = vmax.f32 %v1717_v20, %v2106_v49  ;;  %v2128_v54 = vadd.f32 %v10847_v0, %v10841_v48 }
 0x321   :  { %v2765_v49 = vadd.f32 %v10853_v47, %v10850_v12 }
 0x322   :  { %v3007_v25 = vmax.f32 %v2362_v10, %v2751_v44  ;;  %v2384_v44 = vmax.f32 %v1739_v56, %v2128_v54  ;;  %v2220_v10 = vadd.f32 %v10777_v9, %v7923_v7 }
 0x323   :  { %v8681_v38 = vpop.permute.xlu0 %4044  ;;  %v8683_v53 = vpop.permute.xlu1 %4029 }
 0x324   :  { %10845 = vst [vmem:[#allocation139_spill] sm:$0xff] %v8681_v38  ;;  %10846 = vst [vmem:[#allocation106_spill] sm:$0xff] %v8683_v53  ;;  %3702 = vperm.xlu0 %6196, %v3001_v2   ;;  %3678 = vperm.xlu1 %6197, %v2993_v22   ;;  %v2773_v38 = vadd.f32 %v10851_v33, %v10850_v12  ;;  %v10852_v53 = vld [vmem:[#allocation72_spill] sm:$0xff]  ;;  %v10854_v2 = vlaneseq }
 0x325   :  { %v1731_v63 = vadd.f32 %v10852_v53, %v8025_v60 }
 0x326   :  { %v4188_v22 = vand.u32 127, %v10854_v2  ;;  %v2873_v2 = vadd.f32 %v10733_v37, %v8111_v51  ;;  %v3029_v30 = vmax.f32 %v2384_v44, %v2773_v38  ;;  %v2242_v38 = vadd.f32 %v10783_v40, %v8111_v51  ;;  %v10860_v44 = vld [vmem:[#allocation54_spill] sm:$0xff] }
 0x327   :  { %v8698_v20 = vpop.permute.xlu0 %4068  ;;  %v8700_v15 = vpop.permute.xlu1 %4047  ;;  %v2376_v23 = vmax.f32 %v1731_v63, %v2120_v8  ;;  %v2484_v63 = vmax.f32 %v1839_v27, %v2228_v31  ;;  %v1845_v27 = vadd.f32 %v10843_v55, %v7923_v7 }
 0x328   :  { %10855 = vst [vmem:[#allocation71_spill] sm:$0xff] %v8698_v20  ;;  %10856 = vst [vmem:[#allocation98_spill] sm:$0xff] %v8700_v15  ;;  %3744 = vperm.xlu0 %6196, %v3015_v62   ;;  %3720 = vperm.xlu1 %6197, %v3007_v25   ;;  %v1831_v15 = vadd.f32 %v10779_v50, %v7745_v16  ;;  %v2865_v62 = vadd.f32 %v10780_v5, %v8111_v51  ;;  %v10857_v25 = vld [vmem:[#allocation5_spill] sm:$0xff] }
 0x329   :  { %v3021_v20 = vmax.f32 %v2376_v23, %v2765_v49  ;;  %v8715_v54 = vsub.s32 %v4188_v22, %v10857_v25  ;;  %v2234_v49 = vadd.f32 %v10738_v32, %v8111_v51  ;;  %v3129_v22 = vmax.f32 %v2484_v63, %v2873_v2 }
 0x32a   :  { %v2476_v58 = vmax.f32 %v1831_v15, %v2220_v10  ;;  %v1853_v25 = vadd.f32 %v10693_v18, %v7923_v7  ;;  %v2879_v15 = vadd.f32 %v10844_v41, %v8351_v36  ;;  %v10862_v10 = vld [vmem:[#allocation22_spill] sm:$0xff] }
 0x32b   :  { %v8717_v8 = vpop.permute.xlu0 %3648  ;;  %v8719_v56 = vpop.permute.xlu1 %4071  ;;  %v4196_v23 = vrot.slane %v10860_v44, %v8715_v54  ;;  %v4200_v44 = vrot.slane %v10862_v10, %v8715_v54  ;;  %v1867_v10 = vadd.f32 %v10849_v42, %v8111_v51 }
 0x32c   :  { %10858 = vst [vmem:[#allocation89_spill] sm:$0xff] %v8717_v8  ;;  %10859 = vst [vmem:[#allocation82_spill] sm:$0xff] %v8719_v56  ;;  %3786 = vperm.xlu0 %6196, %v3029_v30   ;;  %3762 = vperm.xlu1 %6197, %v3021_v20   ;;  %v3121_v8 = vmax.f32 %v2476_v58, %v2865_v62  ;;  %v2887_v30 = vadd.f32 %v10842_v45, %v8351_v36  ;;  %v10861_v20 = vld [vmem:[#allocation38_spill] sm:$0xff] }
 0x32d   :  { %v4192_v31 = vrot.slane %v10861_v20, %v8715_v54  ;;  %v2256_v58 = vadd.f32 %v10847_v0, %v8351_v36  ;;  %v2498_v62 = vmax.f32 %v1853_v25, %v2242_v38  ;;  %v2490_v56 = vmax.f32 %v1845_v27, %v2234_v49  ;;  %v10865_v38 = vld [vmem:[#allocation8_spill] sm:$0xff]  ;;  %v10869_v25 = vld [vmem:[#allocation9_spill] sm:$0xff]  ;;  %v10870_v27 = vld [vmem:[#allocation23_spill] sm:$0xff] }
 0x32e   :  { %v1859_v0 = vadd.f32 %v10852_v53, %v8111_v51  ;;  %v4204_v49 = vrot.slane %v10865_v38, %v8715_v54  ;;  %v2101_v53 = vadd.f32 %v10799_v4, %v7437_v46 }
 0x32f   :  { %v8739_v2 = vpop.permute.xlu0 %3690  ;;  %v8741_v63 = vpop.permute.xlu1 %3666  ;;  %v5214_v20 = vsel %vm5213_vm1, %v4196_v23, %v4192_v31  ;;  %v3135_v17 = vmax.f32 %v2490_v56, %v2879_v15  ;;  %v2512_v42 = vmax.f32 %v1867_v10, %v2256_v58  ;;  %v10868_v56 = vld [vmem:[#allocation90_spill] sm:$0xff]  ;;  %v4224_v15 = vrot.slane %v10870_v27, %v8715_v54 }
 0x330   :  { %10863 = vst [vmem:[#allocation75_spill] sm:$0xff] %v8739_v2  ;;  %10864 = vst [vmem:[#allocation27_spill] sm:$0xff] %v8741_v63  ;;  %4086 = vperm.xlu0 %6196, %v3129_v22   ;;  %4062 = vperm.xlu1 %6197, %v3121_v8   ;;  %v2901_v2 = vadd.f32 %v10851_v33, %v8619_v34  ;;  %v3143_v63 = vmax.f32 %v2498_v62, %v2887_v30 }
 0x331   :  { %v2893_v8 = vadd.f32 %v10853_v47, %v8619_v34  ;;  %v5216_v59 = vsel %vm5215_vm2, %v4200_v44, %v5214_v20  ;;  %v2504_v33 = vmax.f32 %v1859_v0, %v2248_v3  ;;  %v2093_v47 = vadd.f32 %v10868_v56, %v7437_v46  ;;  %v10871_v44 = vld [vmem:[#allocation83_spill] sm:$0xff]  ;;  %v10873_v0 = vld [vmem:[#allocation85_spill] sm:$0xff] }
 0x332   :  { %v4228_v30 = vrot.slane %v10869_v25, %v8715_v54  ;;  %v3157_v31 = vmax.f32 %v2512_v42, %v2901_v2  ;;  %v1712_v58 = vadd.f32 %v10871_v44, %v7325_v39  ;;  %v1704_v3 = vadd.f32 %v10761_v19, %v7325_v39  ;;  %v10874_v2 = vld [vmem:[#allocation107_spill] sm:$0xff] }
 0x333   :  { %v8759_v23 = vpop.permute.xlu0 %3990  ;;  %v8761_v22 = vpop.permute.xlu1 %3966  ;;  %v3149_v62 = vmax.f32 %v2504_v33, %v2893_v8  ;;  %v5218_v10 = vsel %vm5217_vm3, %v4204_v49, %v5216_v59  ;;  %v4208_v38 = vrot.slane %v10873_v0, %v8715_v54  ;;  %v4232_v42 = vrot.slane %v10874_v2, %v8715_v54 }
 0x334   :  { %10866 = vst [vmem:[#allocation103_spill] sm:$0xff] %v8759_v23  ;;  %10867 = vst [vmem:[#allocation72_spill] sm:$0xff] %v8761_v22  ;;  %4128 = vperm.xlu0 %6196, %v3143_v63   ;;  %4104 = vperm.xlu1 %6197, %v3135_v17   ;;  %v2746_v17 = vadd.f32 %v10760_v35, %v8025_v60  ;;  %v10872_v63 = vld [vmem:[#allocation104_spill] sm:$0xff]  ;;  %v2115_v33 = vadd.f32 %v6989_v26, %v8025_v60 }
 0x335   :  { %v2738_v20 = vadd.f32 %v10872_v63, %v8025_v60  ;;  %v2357_v39 = vmax.f32 %v1712_v58, %v2101_v53  ;;  %v2349_v27 = vmax.f32 %v1704_v3, %v2093_v47  ;;  %v2107_v49 = vadd.f32 %v10671_v28, %v8025_v60  ;;  %v10878_v58 = vld [vmem:[#allocation94_spill] sm:$0xff] }
 0x336   :  { %v5227_v2 = vsel %vm5213_vm1, %v4228_v30, %v4224_v15  ;;  %v1726_v23 = vadd.f32 %v10635_v24, %v7437_v46  ;;  %v2760_v22 = vadd.f32 %v10636_v1, %v10841_v48  ;;  %v1718_v53 = vadd.f32 %v6922_v61, %v7437_v46 }
 0x337   :  { %v8784_v25 = vpop.permute.xlu0 %4032  ;;  %v8786_v8 = vpop.permute.xlu1 %4008  ;;  %v2752_v47 = vadd.f32 %v10674_v11, %v10841_v48  ;;  %v4236_v30 = vrot.slane %v10878_v58, %v8715_v54  ;;  %v5228_v15 = vsel %vm5215_vm2, %v4232_v42, %v5227_v2  ;;  %v1740_v0 = vadd.f32 %v6934_v57, %v8025_v60 }
 0x338   :  { %10875 = vst [vmem:[#allocation96_spill] sm:$0xff] %v8784_v25  ;;  %10876 = vst [vmem:[#allocation5_spill] sm:$0xff] %v8786_v8  ;;  %4170 = vperm.xlu0 %6196, %v3157_v31   ;;  %4146 = vperm.xlu1 %6197, %v3149_v62   ;;  %v3002_v8 = vmax.f32 %v2357_v39, %v2746_v17  ;;  %v2994_v25 = vmax.f32 %v2349_v27, %v2738_v20 }
 0x339   :  { %v8804_v31 = vsel %vm5219_vm4, %v4208_v38, %v5218_v10  ;;  %v2371_v17 = vmax.f32 %v1726_v23, %v2115_v33  ;;  %v2363_v20 = vmax.f32 %v1718_v53, %v2107_v49  ;;  %v2129_v39 = vadd.f32 %v10572_v21, %v10841_v48  ;;  %v10887_v53 = vld [vmem:[#allocation12_spill] sm:$0xff] }
 0x33a   :  { %v2121_v10 = vadd.f32 %v6950_v52, %v10841_v48  ;;  %v2766_v33 = vadd.f32 %v7019_v43, %v10850_v12  ;;  %v5229_v27 = vsel %vm5217_vm3, %v4236_v30, %v5228_v15  ;;  %v2221_v38 = vadd.f32 %v10868_v56, %v7923_v7  ;;  %v10888_v15 = vld [vmem:[#allocation28_spill] sm:$0xff] }
 0x33b   :  { %v8809_v62 = vpop.permute.xlu0 %4074  ;;  %v8811_v3 = vpop.permute.xlu1 %4050  ;;  %v3016_v2 = vmax.f32 %v2371_v17, %v2760_v22  ;;  %v3008_v23 = vmax.f32 %v2363_v20, %v2752_v47  ;;  %v10884_v22 = vld [vmem:[#allocation56_spill] sm:$0xff]  ;;  %v2229_v20 = vadd.f32 %v10799_v4, %v7923_v7  ;;  %v4260_v30 = vrot.slane %v10887_v53, %v8715_v54  ;;  %v10890_v53 = vld [vmem:[#allocation61_spill] sm:$0xff] }
 0x33c   :  { %10879 = vst [vmem:[#allocation54_spill] sm:$0xff] %v8809_v62  ;;  %10880 = vst [vmem:[#allocation38_spill] sm:$0xff] %v8811_v3  ;;  %3705 = vperm.xlu0 %6196, %v3002_v8   ;;  %3681 = vperm.xlu1 %6197, %v2994_v25   ;;  %v2774_v25 = vadd.f32 %v10575_v13, %v10850_v12  ;;  %v1732_v8 = vadd.f32 %v6918_v14, %v8025_v60 }
 0x33d   :  { %v4240_v17 = vrot.slane %v10884_v22, %v8715_v54  ;;  %v2385_v3 = vmax.f32 %v1740_v0, %v2129_v39  ;;  %v4256_v22 = vrot.slane %v10888_v15, %v8715_v54  ;;  %v1832_v0 = vadd.f32 %v10761_v19, %v7745_v16 }
 0x33e   :  { %v2377_v62 = vmax.f32 %v1732_v8, %v2121_v10  ;;  %v2866_v39 = vadd.f32 %v10872_v63, %v8111_v51  ;;  %v4264_v15 = vrot.slane %v10890_v53, %v8715_v54  ;;  %v1854_v8 = vadd.f32 %v10635_v24, %v7923_v7 }
 0x33f   :  { %v8834_v42 = vpop.permute.xlu0 %3651  ;;  %v8836_v47 = vpop.permute.xlu1 %3627  ;;  %v3030_v49 = vmax.f32 %v2385_v3, %v2774_v25  ;;  %v8855_v10 = vsel %vm5219_vm4, %v4240_v17, %v5229_v27  ;;  %v2243_v3 = vadd.f32 %v6989_v26, %v8111_v51  ;;  %v2235_v27 = vadd.f32 %v10671_v28, %v8111_v51  ;;  %v10893_v25 = vld [vmem:[#allocation24_spill] sm:$0xff] }
 0x340   :  { %10885 = vst [vmem:[#allocation22_spill] sm:$0xff] %v8834_v42  ;;  %10886 = vst [vmem:[#allocation8_spill] sm:$0xff] %v8836_v47  ;;  %3747 = vperm.xlu0 %6196, %v3016_v2   ;;  %3723 = vperm.xlu1 %6197, %v3008_v23   ;;  %v1840_v42 = vadd.f32 %v10871_v44, %v7745_v16  ;;  %v2874_v47 = vadd.f32 %v10760_v35, %v8111_v51  ;;  %v10889_v23 = vld [vmem:[#allocation11_spill] sm:$0xff] }
 0x341   :  { %v3022_v2 = vmax.f32 %v2377_v62, %v2766_v33  ;;  %v2477_v16 = vmax.f32 %v1832_v0, %v2221_v38  ;;  %v5234_v17 = vsel %vm5213_vm1, %v4260_v30, %v4256_v22  ;;  %v1846_v38 = vadd.f32 %v6922_v61, %v7923_v7 }
 0x342   :  { %v2485_v62 = vmax.f32 %v1840_v42, %v2229_v20  ;;  %v2888_v42 = vadd.f32 %v10636_v1, %v8351_v36  ;;  %v10894_v20 = vld [vmem:[#allocation45_spill] sm:$0xff]  ;;  %v5235_v0 = vsel %vm5215_vm2, %v4264_v15, %v5234_v17  ;;  %v10899_v17 = vld [vmem:[#allocation62_spill] sm:$0xff] }
 0x343   :  { %v8861_v58 = vpop.permute.xlu0 %3693  ;;  %v8863_v59 = vpop.permute.xlu1 %3669  ;;  %v2491_v33 = vmax.f32 %v1846_v38, %v2235_v27 }
 0x344   :  { %10891 = vst [vmem:[#allocation90_spill] sm:$0xff] %v8861_v58  ;;  %10892 = vst [vmem:[#allocation9_spill] sm:$0xff] %v8863_v59  ;;  %3789 = vperm.xlu0 %6196, %v3030_v49   ;;  %3765 = vperm.xlu1 %6197, %v3022_v2   ;;  %v3130_v53 = vmax.f32 %v2485_v62, %v2874_v47  ;;  %v3122_v59 = vmax.f32 %v2477_v16, %v2866_v39  ;;  %v10895_v47 = vld [vmem:[#allocation29_spill] sm:$0xff] }
 0x345   :  { %v2880_v49 = vadd.f32 %v10674_v11, %v8351_v36  ;;  %v4268_v2 = vrot.slane %v10894_v20, %v8715_v54  ;;  %v4272_v30 = vrot.slane %v10895_v47, %v8715_v54  ;;  %v2257_v62 = vadd.f32 %v10572_v21, %v8351_v36  ;;  %v10898_v20 = vld [vmem:[#allocation46_spill] sm:$0xff] }
 0x346   :  { %v2499_v16 = vmax.f32 %v1854_v8, %v2243_v3  ;;  %v2249_v58 = vadd.f32 %v6950_v52, %v8351_v36  ;;  %v4292_v15 = vrot.slane %v10898_v20, %v8715_v54  ;;  %v4288_v47 = vrot.slane %v10899_v17, %v8715_v54  ;;  %v10900_v3 = vld [vmem:[#allocation30_spill] sm:$0xff] }
 0x347   :  { %v8885_v22 = vpop.permute.xlu0 %3711  ;;  %v8887_v39 = vpop.permute.xlu1 %3708  ;;  %v2894_v52 = vadd.f32 %v7019_v43, %v8619_v34  ;;  %v5236_v8 = vsel %vm5217_vm3, %v4268_v2, %v5235_v0  ;;  %v4296_v27 = vrot.slane %v10900_v3, %v8715_v54  ;;  %v2108_v43 = vadd.f32 %v10777_v9, %v8025_v60 }
 0x348   :  { %10896 = vst [vmem:[#allocation23_spill] sm:$0xff] %v8885_v22  ;;  %10897 = vst [vmem:[#allocation83_spill] sm:$0xff] %v8887_v39  ;;  %4089 = vperm.xlu0 %6196, %v3130_v53   ;;  %4065 = vperm.xlu1 %6197, %v3122_v59   ;;  %v1868_v22 = vadd.f32 %v6934_v57, %v8111_v51  ;;  %v2902_v39 = vadd.f32 %v10575_v13, %v8619_v34 }
 0x349   :  { %v3144_v21 = vmax.f32 %v2499_v16, %v2888_v42  ;;  %v3136_v53 = vmax.f32 %v2491_v33, %v2880_v49  ;;  %v1860_v59 = vadd.f32 %v6918_v14, %v8111_v51  ;;  %v2116_v13 = vadd.f32 %v10730_v29, %v8025_v60  ;;  %v10903_v33 = vld [vmem:[#allocation10_spill] sm:$0xff] }
 0x34a   :  { %v2513_v57 = vmax.f32 %v1868_v22, %v2257_v62  ;;  %v8919_v49 = vsel %vm5219_vm4, %v4272_v30, %v5236_v8  ;;  %v5241_v2 = vsel %vm5213_vm1, %v4292_v15, %v4288_v47  ;;  %v1727_v22 = vadd.f32 %v10778_v6, %v7437_v46 }
 0x34b   :  { %v8908_v38 = vpop.permute.xlu0 %3735  ;;  %v8910_v20 = vpop.permute.xlu1 %3732  ;;  %v2505_v14 = vmax.f32 %v1860_v59, %v2249_v58  ;;  %v2761_v16 = vadd.f32 %v10733_v37, %v10841_v48  ;;  %v1719_v17 = vadd.f32 %v10779_v50, %v7437_v46  ;;  %v2753_v58 = vadd.f32 %v10780_v5, %v10841_v48 }
 0x34c   :  { %10901 = vst [vmem:[#allocation104_spill] sm:$0xff] %v8908_v38  ;;  %10902 = vst [vmem:[#allocation85_spill] sm:$0xff] %v8910_v20  ;;  %4131 = vperm.xlu0 %6196, %v3144_v21   ;;  %4107 = vperm.xlu1 %6197, %v3136_v53   ;;  %v3158_v0 = vmax.f32 %v2513_v57, %v2902_v39  ;;  %v10904_v21 = vld [vmem:[#allocation44_spill] sm:$0xff]  ;;  %v10905_v53 = vld [vmem:[#allocation14_spill] sm:$0xff]  ;;  %v5242_v39 = vsel %vm5215_vm2, %v4296_v27, %v5241_v2 }
 0x34d   :  { %v3150_v62 = vmax.f32 %v2505_v14, %v2894_v52  ;;  %v4300_v15 = vrot.slane %v10905_v53, %v8715_v54  ;;  %v2372_v52 = vmax.f32 %v1727_v22, %v2116_v13  ;;  %v2364_v8 = vmax.f32 %v1719_v17, %v2108_v43  ;;  %v10908_v14 = vld [vmem:[#allocation48_spill] sm:$0xff] }
 0x34e   :  { %v2130_v3 = vadd.f32 %v10783_v40, %v10841_v48  ;;  %v2122_v57 = vadd.f32 %v10738_v32, %v10841_v48  ;;  %v4324_v30 = vrot.slane %v10908_v14, %v8715_v54  ;;  %v10909_v53 = vld [vmem:[#allocation64_spill] sm:$0xff]  ;;  %v1741_v2 = vadd.f32 %v10693_v18, %v8025_v60  ;;  %v10914_v14 = vld [vmem:[#allocation63_spill] sm:$0xff] }
 0x34f   :  { %v8935_v47 = vpop.permute.xlu0 %3993  ;;  %v8937_v59 = vpop.permute.xlu1 %3969  ;;  %v4320_v27 = vrot.slane %v10909_v53, %v8715_v54  ;;  %v2775_v13 = vadd.f32 %v10842_v45, %v10850_v12  ;;  %v3009_v43 = vmax.f32 %v2364_v8, %v2753_v58  ;;  %v1733_v22 = vadd.f32 %v10843_v55, %v8025_v60  ;;  %v10910_v17 = vld [vmem:[#allocation60_spill] sm:$0xff] }
 0x350   :  { %10906 = vst [vmem:[#allocation107_spill] sm:$0xff] %v8935_v47  ;;  %10907 = vst [vmem:[#allocation94_spill] sm:$0xff] %v8937_v59  ;;  %4173 = vperm.xlu0 %6196, %v3158_v0   ;;  %4149 = vperm.xlu1 %6197, %v3150_v62   ;;  %v3017_v0 = vmax.f32 %v2372_v52, %v2761_v16  ;;  %v2767_v62 = vadd.f32 %v10844_v41, %v10850_v12  ;;  %v10911_v53 = vld [vmem:[#allocation32_spill] sm:$0xff] }
 0x351   :  { %v5243_v42 = vsel %vm5217_vm3, %v4300_v15, %v5242_v39  ;;  %v4328_v20 = vrot.slane %v10911_v53, %v8715_v54  ;;  %v2244_v16 = vadd.f32 %v10730_v29, %v8111_v51  ;;  %v2386_v58 = vmax.f32 %v1741_v2, %v2130_v3  ;;  %v10915_v2 = vld [vmem:[#allocation47_spill] sm:$0xff] }
 0x352   :  { %v2378_v52 = vmax.f32 %v1733_v22, %v2122_v57  ;;  %v2236_v8 = vadd.f32 %v10777_v9, %v8111_v51  ;;  %v4304_v15 = vrot.slane %v10914_v14, %v8715_v54  ;;  %v5248_v39 = vsel %vm5213_vm1, %v4324_v30, %v4320_v27 }
 0x353   :  { %v8960_v38 = vpop.permute.xlu0 %4035  ;;  %v8962_v47 = vpop.permute.xlu1 %4011  ;;  %v1855_v53 = vadd.f32 %v10778_v6, %v7923_v7  ;;  %v1847_v3 = vadd.f32 %v10779_v50, %v7923_v7  ;;  %v2881_v57 = vadd.f32 %v10780_v5, %v8351_v36  ;;  %v5249_v27 = vsel %vm5215_vm2, %v4328_v20, %v5248_v39 }
 0x354   :  { %10912 = vst [vmem:[#allocation56_spill] sm:$0xff] %v8960_v38  ;;  %10913 = vst [vmem:[#allocation12_spill] sm:$0xff] %v8962_v47  ;;  %3750 = vperm.xlu0 %6196, %v3017_v0   ;;  %3726 = vperm.xlu1 %6197, %v3009_v43   ;;  %v2889_v47 = vadd.f32 %v10733_v37, %v8351_v36  ;;  %v3031_v38 = vmax.f32 %v2386_v58, %v2775_v13  ;;  %v10916_v43 = vld [vmem:[#allocation16_spill] sm:$0xff] }
 0x355   :  { %v3023_v59 = vmax.f32 %v2378_v52, %v2767_v62  ;;  %v4332_v30 = vrot.slane %v10916_v43, %v8715_v54  ;;  %v2500_v13 = vmax.f32 %v1855_v53, %v2244_v16  ;;  %v2492_v62 = vmax.f32 %v1847_v3, %v2236_v8  ;;  %v10919_v43 = vld [vmem:[#allocation15_spill] sm:$0xff] }
 0x356   :  { %v2258_v58 = vadd.f32 %v10783_v40, %v8351_v36  ;;  %v2250_v52 = vadd.f32 %v10738_v32, %v8351_v36  ;;  %v8993_v0 = vsel %vm5219_vm4, %v4304_v15, %v5243_v42  ;;  %v1861_v40 = vadd.f32 %v10843_v55, %v8111_v51  ;;  %v10920_v42 = vld [vmem:[#allocation31_spill] sm:$0xff] }
 0x357   :  { %v8984_v22 = vpop.permute.xlu0 %4077  ;;  %v8986_v14 = vpop.permute.xlu1 %4053  ;;  %v3145_v39 = vmax.f32 %v2500_v13, %v2889_v47  ;;  %v3137_v16 = vmax.f32 %v2492_v62, %v2881_v57  ;;  %v2895_v32 = vadd.f32 %v10844_v41, %v8619_v34  ;;  %v5250_v8 = vsel %vm5217_vm3, %v4332_v30, %v5249_v27  ;;  %v10921_v47 = vld [vmem:[#allocation65_spill] sm:$0xff] }
 0x358   :  { %10917 = vst [vmem:[#allocation28_spill] sm:$0xff] %v8984_v22  ;;  %10918 = vst [vmem:[#allocation11_spill] sm:$0xff] %v8986_v14  ;;  %3792 = vperm.xlu0 %6196, %v3031_v38   ;;  %3768 = vperm.xlu1 %6197, %v3023_v59   ;;  %v1869_v14 = vadd.f32 %v10693_v18, %v8111_v51  ;;  %v2903_v38 = vadd.f32 %v10842_v45, %v8619_v34  ;;  %v10924_v57 = vld [vmem:[#allocation81_spill] sm:$0xff] }
 0x359   :  { %v4336_v15 = vrot.slane %v10921_v47, %v8715_v54  ;;  %v2117_v45 = vadd.f32 %v10799_v4, %v8025_v60  ;;  %v2506_v3 = vmax.f32 %v1861_v40, %v2250_v52  ;;  %v2109_v41 = vadd.f32 %v10868_v56, %v8025_v60  ;;  %v10925_v27 = vld [vmem:[#allocation109_spill] sm:$0xff] }
 0x35a   :  { %v2514_v55 = vmax.f32 %v1869_v14, %v2258_v58  ;;  %v4356_v30 = vrot.slane %v10924_v57, %v8715_v54  ;;  %v4352_v13 = vrot.slane %v10925_v27, %v8715_v54  ;;  %v1728_v62 = vadd.f32 %v10871_v44, %v7437_v46  ;;  %v10926_v52 = vld [vmem:[#allocation49_spill] sm:$0xff]  ;;  %v10927_v57 = vld [vmem:[#allocation112_spill] sm:$0xff] }
 0x35b   :  { %v9010_v53 = vpop.permute.xlu0 %4095  ;;  %v9012_v18 = vpop.permute.xlu1 %4092  ;;  %v2762_v47 = vadd.f32 %v10760_v35, %v10841_v48  ;;  %v1720_v14 = vadd.f32 %v10761_v19, %v7437_v46  ;;  %v2754_v58 = vadd.f32 %v10872_v63, %v10841_v48  ;;  %v9033_v40 = vsel %vm5219_vm4, %v4336_v15, %v5250_v8 }
 0x35c   :  { %10922 = vst [vmem:[#allocation61_spill] sm:$0xff] %v9010_v53  ;;  %10923 = vst [vmem:[#allocation24_spill] sm:$0xff] %v9012_v18  ;;  %4134 = vperm.xlu0 %6196, %v3145_v39   ;;  %4110 = vperm.xlu1 %6197, %v3137_v16   ;;  %v3159_v20 = vmax.f32 %v2514_v55, %v2903_v38  ;;  %v3151_v39 = vmax.f32 %v2506_v3, %v2895_v32 }
 0x35d   :  { %v4360_v27 = vrot.slane %v10927_v57, %v8715_v54  ;;  %v2373_v38 = vmax.f32 %v1728_v62, %v2117_v45  ;;  %v2365_v46 = vmax.f32 %v1720_v14, %v2109_v41  ;;  %v2131_v32 = vadd.f32 %v6989_v26, %v10841_v48  ;;  %v10931_v62 = vld [vmem:[#allocation33_spill] sm:$0xff]  ;;  %v10932_v14 = vld [vmem:[#allocation111_spill] sm:$0xff] }
 0x35e   :  { %v2123_v55 = vadd.f32 %v10671_v28, %v10841_v48  ;;  %v5255_v3 = vsel %vm5213_vm1, %v4356_v30, %v4352_v13  ;;  %v1742_v16 = vadd.f32 %v10635_v24, %v8025_v60  ;;  %v1734_v45 = vadd.f32 %v6922_v61, %v8025_v60 }
 0x35f   :  { %v9037_v59 = vpop.permute.xlu0 %4119  ;;  %v9039_v18 = vpop.permute.xlu1 %4116  ;;  %v3018_v57 = vmax.f32 %v2373_v38, %v2762_v47  ;;  %v2768_v41 = vadd.f32 %v10674_v11, %v10850_v12  ;;  %v4364_v30 = vrot.slane %v10932_v14, %v8715_v54  ;;  %v5256_v13 = vsel %vm5215_vm2, %v4360_v27, %v5255_v3  ;;  %v10936_v14 = vld [vmem:[#allocation118_spill] sm:$0xff] }
 0x360   :  { %10928 = vst [vmem:[#allocation45_spill] sm:$0xff] %v9037_v59  ;;  %10929 = vst [vmem:[#allocation29_spill] sm:$0xff] %v9039_v18  ;;  %4176 = vperm.xlu0 %6196, %v3159_v20   ;;  %4152 = vperm.xlu1 %6197, %v3151_v39   ;;  %v3010_v18 = vmax.f32 %v2365_v46, %v2754_v58  ;;  %v2776_v20 = vadd.f32 %v10636_v1, %v10850_v12  ;;  %v10935_v39 = vld [vmem:[#allocation117_spill] sm:$0xff] }
 0x361   :  { %v2245_v38 = vadd.f32 %v10799_v4, %v8111_v51  ;;  %v2387_v46 = vmax.f32 %v1742_v16, %v2131_v32  ;;  %v2379_v15 = vmax.f32 %v1734_v45, %v2123_v55  ;;  %v2237_v59 = vadd.f32 %v10868_v56, %v8111_v51  ;;  %v10937_v55 = vld [vmem:[#allocation114_spill] sm:$0xff] }
 0x362   :  { %v4388_v53 = vrot.slane %v10935_v39, %v8715_v54  ;;  %v4384_v27 = vrot.slane %v10936_v14, %v8715_v54  ;;  %v1856_v3 = vadd.f32 %v10871_v44, %v7923_v7  ;;  %v2890_v22 = vadd.f32 %v10760_v35, %v8351_v36  ;;  %v10938_v39 = vld [vmem:[#allocation66_spill] sm:$0xff] }
 0x363   :  { %v9061_v47 = vpop.permute.xlu0 %3654  ;;  %v9063_v58 = vpop.permute.xlu1 %3630  ;;  %v2882_v16 = vadd.f32 %v10872_v63, %v8351_v36  ;;  %v5257_v32 = vsel %vm5217_vm3, %v4364_v30, %v5256_v13  ;;  %v4368_v45 = vrot.slane %v10937_v55, %v8715_v54  ;;  %v4392_v14 = vrot.slane %v10938_v39, %v8715_v54  ;;  %v10941_v30 = vld [vmem:[#allocation113_spill] sm:$0xff] }
 0x364   :  { %10933 = vst [vmem:[#allocation46_spill] sm:$0xff] %v9061_v47  ;;  %10934 = vst [vmem:[#allocation62_spill] sm:$0xff] %v9063_v58  ;;  %3753 = vperm.xlu0 %6196, %v3018_v57   ;;  %3729 = vperm.xlu1 %6197, %v3010_v18   ;;  %v3032_v47 = vmax.f32 %v2387_v46, %v2776_v20  ;;  %v3024_v57 = vmax.f32 %v2379_v15, %v2768_v41 }
 0x365   :  { %v1848_v18 = vadd.f32 %v10761_v19, %v7923_v7  ;;  %v2501_v20 = vmax.f32 %v1856_v3, %v2245_v38  ;;  %v2259_v7 = vadd.f32 %v6989_v26, %v8351_v36  ;;  %v2251_v41 = vadd.f32 %v10671_v28, %v8351_v36  ;;  %v10942_v38 = vld [vmem:[#allocation50_spill] sm:$0xff] }
 0x366   :  { %v5262_v46 = vsel %vm5213_vm1, %v4388_v53, %v4384_v27  ;;  %v1870_v39 = vadd.f32 %v10635_v24, %v8111_v51  ;;  %v2896_v26 = vadd.f32 %v10674_v11, %v8619_v34  ;;  %v9106_v28 = vsel %vm5219_vm4, %v4368_v45, %v5257_v32 }
 0x367   :  { %v9086_v58 = vpop.permute.xlu0 %3696  ;;  %v9088_v8 = vpop.permute.xlu1 %3672  ;;  %v2493_v15 = vmax.f32 %v1848_v18, %v2237_v59  ;;  %v3146_v55 = vmax.f32 %v2501_v20, %v2890_v22  ;;  %v1862_v59 = vadd.f32 %v6922_v61, %v8111_v51  ;;  %v4396_v53 = vrot.slane %v10942_v38, %v8715_v54 }
 0x368   :  { %10939 = vst [vmem:[#allocation30_spill] sm:$0xff] %v9086_v58  ;;  %10940 = vst [vmem:[#allocation10_spill] sm:$0xff] %v9088_v8  ;;  %3795 = vperm.xlu0 %6196, %v3032_v47   ;;  %3771 = vperm.xlu1 %6197, %v3024_v57   ;;  %v2904_v47 = vadd.f32 %v10636_v1, %v8619_v34  ;;  %v5263_v22 = vsel %vm5215_vm2, %v4392_v14, %v5262_v46  ;;  %v10945_v57 = vld [vmem:[#allocation115_spill] sm:$0xff]  ;;  %v11034_v8 = vld [vmem:[#allocation156_spill] sm:$0xff] }
 0x369   :  { %v3138_v58 = vmax.f32 %v2493_v15, %v2882_v16  ;;  %v2132_v1 = vadd.f32 %v10730_v29, %v10841_v48  ;;  %v2515_v61 = vmax.f32 %v1870_v39, %v2259_v7  ;;  %v2507_v3 = vmax.f32 %v1862_v59, %v2251_v41  ;;  %v10946_v16 = vld [vmem:[#allocation116_spill] sm:$0xff]  ;;  %v10947_v46 = vld [vmem:[#allocation119_spill] sm:$0xff] }
 0x36a   :  { %v2124_v11 = vadd.f32 %v10777_v9, %v10841_v48  ;;  %v1743_v45 = vadd.f32 %v10778_v6, %v8025_v60  ;;  %v2777_v14 = vadd.f32 %v10733_v37, %v10850_v12  ;;  %v2769_v7 = vadd.f32 %v10780_v5, %v10850_v12  ;;  %v10948_v39 = vld [vmem:[#allocation120_spill] sm:$0xff] }
 0x36b   :  { %v9111_v27 = vpop.permute.xlu0 %3738  ;;  %v9113_v24 = vpop.permute.xlu1 %3714  ;;  %v3160_v20 = vmax.f32 %v2515_v61, %v2904_v47  ;;  %v3152_v15 = vmax.f32 %v2507_v3, %v2896_v26  ;;  %v5264_v41 = vsel %vm5217_vm3, %v4396_v53, %v5263_v22  ;;  %v4416_v59 = vrot.slane %v10948_v39, %v8715_v54  ;;  %v10951_v22 = vld [vmem:[#allocation88_spill] sm:$0xff] }
 0x36c   :  { %10943 = vst [vmem:[#allocation44_spill] sm:$0xff] %v9111_v27  ;;  %10944 = vst [vmem:[#allocation14_spill] sm:$0xff] %v9113_v24  ;;  %4137 = vperm.xlu0 %6196, %v3146_v55   ;;  %4113 = vperm.xlu1 %6197, %v3138_v58   ;;  %v1735_v58 = vadd.f32 %v10779_v50, %v8025_v60  ;;  %v4420_v55 = vrot.slane %v10947_v46, %v8715_v54  ;;  %v10952_v46 = vld [vmem:[#allocation18_spill] sm:$0xff] }
 0x36d   :  { %v2388_v47 = vmax.f32 %v1743_v45, %v2132_v1  ;;  %v2260_v61 = vadd.f32 %v10730_v29, %v8351_v36  ;;  %v2252_v53 = vadd.f32 %v10777_v9, %v8351_v36  ;;  %v4400_v39 = vrot.slane %v10952_v46, %v8715_v54 }
 0x36e   :  { %v2380_v26 = vmax.f32 %v1735_v58, %v2124_v11  ;;  %v1871_v13 = vadd.f32 %v10778_v6, %v8111_v51  ;;  %v2905_v11 = vadd.f32 %v10733_v37, %v8619_v34  ;;  %v1863_v29 = vadd.f32 %v10779_v50, %v8111_v51 }
 0x36f   :  { %v9136_v38 = vpop.permute.xlu0 %4038  ;;  %v9138_v18 = vpop.permute.xlu1 %4014  ;;  %v3033_v32 = vmax.f32 %v2388_v47, %v2777_v14  ;;  %v2897_v9 = vadd.f32 %v10780_v5, %v8619_v34  ;;  %v5269_v45 = vsel %vm5213_vm1, %v4420_v55, %v4416_v59  ;;  %v10954_v14 = vld [vmem:[#allocation99_spill] sm:$0xff]  ;;  %v2133_v37 = vadd.f32 %v10799_v4, %v10841_v48  ;;  %v10957_v55 = vld [vmem:[#allocation13_spill] sm:$0xff] }
 0x370   :  { %10949 = vst [vmem:[#allocation48_spill] sm:$0xff] %v9136_v38  ;;  %10950 = vst [vmem:[#allocation64_spill] sm:$0xff] %v9138_v18  ;;  %4179 = vperm.xlu0 %6196, %v3160_v20   ;;  %4155 = vperm.xlu1 %6197, %v3152_v15   ;;  %v3025_v1 = vmax.f32 %v2380_v26, %v2769_v7  ;;  %v10953_v20 = vld [vmem:[#allocation70_spill] sm:$0xff]  ;;  %v4424_v58 = vrot.slane %v10954_v14, %v8715_v54  ;;  %v10958_v26 = vld [vmem:[#allocation25_spill] sm:$0xff] }
 0x371   :  { %v4428_v15 = vrot.slane %v10953_v20, %v8715_v54  ;;  %v2516_v50 = vmax.f32 %v1871_v13, %v2260_v61  ;;  %v2508_v7 = vmax.f32 %v1863_v29, %v2252_v53  ;;  %v2125_v5 = vadd.f32 %v10868_v56, %v10841_v48  ;;  %v10959_v53 = vld [vmem:[#allocation122_spill] sm:$0xff]  ;;  %v10960_v29 = vld [vmem:[#allocation123_spill] sm:$0xff] }
 0x372   :  { %v4452_v59 = vrot.slane %v10957_v55, %v8715_v54  ;;  %v4448_v46 = vrot.slane %v10958_v26, %v8715_v54  ;;  %v1744_v20 = vadd.f32 %v10871_v44, %v8025_v60  ;;  %v2778_v14 = vadd.f32 %v10760_v35, %v10850_v12  ;;  %v11031_v38 = vld [vmem:[#allocation91_spill] sm:$0xff]  ;;  %v11049_v18 = vld [vmem:[#allocation158_spill] sm:$0xff] }
 0x373   :  { %v9161_v47 = vpop.permute.xlu0 %4080  ;;  %v9163_v6 = vpop.permute.xlu1 %4056  ;;  %v3161_v3 = vmax.f32 %v2516_v50, %v2905_v11  ;;  %v1736_v13 = vadd.f32 %v10761_v19, %v8025_v60  ;;  %v2770_v48 = vadd.f32 %v10872_v63, %v10850_v12  ;;  %v5270_v61 = vsel %vm5215_vm2, %v4424_v58, %v5269_v45  ;;  %v10963_v58 = vld [vmem:[#allocation77_spill] sm:$0xff] }
 0x374   :  { %10955 = vst [vmem:[#allocation60_spill] sm:$0xff] %v9161_v47  ;;  %10956 = vst [vmem:[#allocation32_spill] sm:$0xff] %v9163_v6  ;;  %3798 = vperm.xlu0 %6196, %v3033_v32   ;;  %3774 = vperm.xlu1 %6197, %v3025_v1   ;;  %v3153_v32 = vmax.f32 %v2508_v7, %v2897_v9  ;;  %v4432_v1 = vrot.slane %v10959_v53, %v8715_v54 }
 0x375   :  { %v4456_v55 = vrot.slane %v10960_v29, %v8715_v54  ;;  %v2389_v11 = vmax.f32 %v1744_v20, %v2133_v37  ;;  %v2381_v9 = vmax.f32 %v1736_v13, %v2125_v5  ;;  %v2261_v60 = vadd.f32 %v10799_v4, %v8351_v36  ;;  %v10970_v13 = vld [vmem:[#allocation41_spill] sm:$0xff]  ;;  %v10986_v5 = vld [vmem:[#allocation19_spill] sm:$0xff] }
 0x376   :  { %v2253_v12 = vadd.f32 %v10868_v56, %v8351_v36  ;;  %v5276_v45 = vsel %vm5213_vm1, %v4452_v59, %v4448_v46  ;;  %v4460_v50 = vrot.slane %v10963_v58, %v8715_v54  ;;  %v1872_v53 = vadd.f32 %v10871_v44, %v8111_v51  ;;  %v10964_v56 = vld [vmem:[#allocation34_spill] sm:$0xff]  ;;  %v10965_v44 = vld [vmem:[#allocation125_spill] sm:$0xff]  ;;  %v10974_v58 = vld [vmem:[#allocation127_spill] sm:$0xff] }
 0x377   :  { %v9186_v26 = vpop.permute.xlu0 %4122  ;;  %v9188_v24 = vpop.permute.xlu1 %4098  ;;  %v3034_v7 = vmax.f32 %v2389_v11, %v2778_v14  ;;  %v3026_v29 = vmax.f32 %v2381_v9, %v2770_v48  ;;  %v1864_v37 = vadd.f32 %v10761_v19, %v8111_v51  ;;  %v2898_v4 = vadd.f32 %v10872_v63, %v8619_v34  ;;  %v10968_v63 = vld [vmem:[#allocation102_spill] sm:$0xff]  ;;  %v10985_v48 = vld [vmem:[#allocation51_spill] sm:$0xff] }
 0x378   :  { %10961 = vst [vmem:[#allocation63_spill] sm:$0xff] %v9186_v26  ;;  %10962 = vst [vmem:[#allocation47_spill] sm:$0xff] %v9188_v24  ;;  %4182 = vperm.xlu0 %6196, %v3161_v3   ;;  %4158 = vperm.xlu1 %6197, %v3153_v32   ;;  %v2906_v3 = vadd.f32 %v10760_v35, %v8619_v34  ;;  %v9206_v36 = vsel %vm5219_vm4, %v4400_v39, %v5264_v41  ;;  %v10969_v39 = vld [vmem:[#allocation121_spill] sm:$0xff] }
 0x379   :  { %v5277_v59 = vsel %vm5215_vm2, %v4456_v55, %v5276_v45  ;;  %v4464_v46 = vrot.slane %v10965_v44, %v8715_v54  ;;  %v5271_v51 = vsel %vm5217_vm3, %v4428_v15, %v5270_v61  ;;  %v2517_v19 = vmax.f32 %v1872_v53, %v2261_v60  ;;  %v10971_v55 = vld [vmem:[#allocation57_spill] sm:$0xff]  ;;  %v10972_v60 = vld [vmem:[#allocation124_spill] sm:$0xff] }
 0x37a   :  { %v2509_v34 = vmax.f32 %v1864_v37, %v2253_v12  ;;  %v9223_v32 = vsel %vm5219_vm4, %v4432_v1, %v5271_v51  ;;  %v5278_v15 = vsel %vm5217_vm3, %v4460_v50, %v5277_v59  ;;  %v4704_v12 = vrot.slane %v10972_v60, %v8715_v54  ;;  %v10978_v50 = vld [vmem:[#allocation35_spill] sm:$0xff]  ;;  %v10980_v44 = vld [vmem:[#allocation129_spill] sm:$0xff]  ;;  %v10981_v51 = vld [vmem:[#allocation126_spill] sm:$0xff] }
 0x37b   :  { %v9213_v20 = vpop.permute.xlu0 %3657  ;;  %v9215_v35 = vpop.permute.xlu1 %3633  ;;  %v3162_v61 = vmax.f32 %v2517_v19, %v2906_v3  ;;  %v9233_v45 = vsel %vm5219_vm4, %v4464_v46, %v5278_v15  ;;  %v4708_v1 = vrot.slane %v10974_v58, %v8715_v54  ;;  %v4772_v3 = vrot.slane %v10978_v50, %v8715_v54  ;;  %v10983_v60 = vld [vmem:[#allocation131_spill] sm:$0xff] }
 0x37c   :  { %10966 = vst [vmem:[#allocation16_spill] sm:$0xff] %v9213_v20  ;;  %10967 = vst [vmem:[#allocation15_spill] sm:$0xff] %v9215_v35  ;;  %3801 = vperm.xlu0 %6196, %v3034_v7   ;;  %3777 = vperm.xlu1 %6197, %v3026_v29   ;;  %v3154_v9 = vmax.f32 %v2509_v34, %v2898_v4  ;;  %v10975_v7 = vld [vmem:[#allocation67_spill] sm:$0xff]  ;;  %v10979_v4 = vld [vmem:[#allocation128_spill] sm:$0xff]  ;;  %v4804_v46 = vrot.slane %v10980_v44, %v8715_v54 }
 0x37d   :  { %10973 = vst [vmem:[#allocation31_spill] sm:$0xff] %v9233_v45  ;;  %v4740_v53 = vrot.slane %v10975_v7, %v8715_v54  ;;  %v4712_v59 = vrot.slane %v10979_v4, %v8715_v54  ;;  %v4736_v19 = vrot.slane %v10981_v51, %v8715_v54  ;;  %v10982_v34 = vld [vmem:[#allocation130_spill] sm:$0xff]  ;;  %v4744_v58 = vrot.slane %v10983_v60, %v8715_v54  ;;  %v10984_v7 = vld [vmem:[#allocation132_spill] sm:$0xff]  ;;  %v10989_v60 = vld [vmem:[#allocation135_spill] sm:$0xff] }
 0x37e   :  { %v4776_v15 = vrot.slane %v10982_v34, %v8715_v54  ;;  %v4716_v50 = vrot.slane %v10984_v7, %v8715_v54  ;;  %v4768_v4 = vrot.slane %v10985_v48, %v8715_v54  ;;  %v4800_v44 = vrot.slane %v10986_v5, %v8715_v54  ;;  %v10988_v51 = vld [vmem:[#allocation134_spill] sm:$0xff]  ;;  %v10990_v7 = vld [vmem:[#allocation137_spill] sm:$0xff] }
 0x37f   :  { %v9239_v29 = vpop.permute.xlu0 %3699  ;;  %v9241_v37 = vpop.permute.xlu1 %3675  ;;  %v4780_v11 = vrot.slane %v10988_v51, %v8715_v54  ;;  %v5332_v34 = vsel %vm5213_vm1, %v4708_v1, %v4704_v12  ;;  %v5339_v14 = vsel %vm5213_vm1, %v4740_v53, %v4736_v19  ;;  %v4748_v41 = vrot.slane %v10989_v60, %v8715_v54  ;;  %v10993_v12 = vld [vmem:[#allocation108_spill] sm:$0xff] }
 0x380   :  { %10976 = vst [vmem:[#allocation65_spill] sm:$0xff] %v9239_v29  ;;  %10977 = vst [vmem:[#allocation81_spill] sm:$0xff] %v9241_v37  ;;  %4185 = vperm.xlu0 %6196, %v3162_v61   ;;  %4161 = vperm.xlu1 %6197, %v3154_v9   ;;  %v10987_v61 = vld [vmem:[#allocation133_spill] sm:$0xff]  ;;  %v4812_v24 = vrot.slane %v10990_v7, %v8715_v54  ;;  %v5346_v5 = vsel %vm5213_vm1, %v4772_v3, %v4768_v4  ;;  %v10994_v7 = vld [vmem:[#allocation84_spill] sm:$0xff] }
 0x381   :  { %v4808_v9 = vrot.slane %v10987_v61, %v8715_v54  ;;  %v5333_v61 = vsel %vm5215_vm2, %v4712_v59, %v5332_v34  ;;  %v5353_v51 = vsel %vm5213_vm1, %v4804_v46, %v4800_v44  ;;  %v4836_v1 = vrot.slane %v10993_v12, %v8715_v54  ;;  %v10995_v59 = vld [vmem:[#allocation136_spill] sm:$0xff]  ;;  %v10996_v4 = vld [vmem:[#allocation138_spill] sm:$0xff]  ;;  %v11023_v29 = vld [vmem:[#allocation149_spill] sm:$0xff] }
 0x382   :  { %v5347_v53 = vsel %vm5215_vm2, %v4776_v15, %v5346_v5  ;;  %v5340_v19 = vsel %vm5215_vm2, %v4744_v58, %v5339_v14  ;;  %v5334_v60 = vsel %vm5217_vm3, %v4716_v50, %v5333_v61  ;;  %v4832_v46 = vrot.slane %v10995_v59, %v8715_v54  ;;  %v10997_v14 = vld [vmem:[#allocation42_spill] sm:$0xff] }
 0x383   :  { %v9271_v48 = vpop.permute.xlu0 %3741  ;;  %v9273_v26 = vpop.permute.xlu1 %3717  ;;  %v5348_v3 = vsel %vm5217_vm3, %v4780_v11, %v5347_v53  ;;  %v4868_v44 = vrot.slane %v10996_v4, %v8715_v54  ;;  %v5341_v34 = vsel %vm5217_vm3, %v4748_v41, %v5340_v19  ;;  %v4784_v58 = vrot.slane %v10997_v14, %v8715_v54  ;;  %v10998_v50 = vld [vmem:[#allocation58_spill] sm:$0xff]  ;;  %v10999_v11 = vld [vmem:[#allocation93_spill] sm:$0xff]  ;;  %v11002_v4 = vld [vmem:[#allocation140_spill] sm:$0xff] }
 0x384   :  { %10991 = vst [vmem:[#allocation109_spill] sm:$0xff] %v9271_v48  ;;  %10992 = vst [vmem:[#allocation49_spill] sm:$0xff] %v9273_v26  ;;  %v4720_v48 = vrot.slane %v10994_v7, %v8715_v54  ;;  %v5354_v26 = vsel %vm5215_vm2, %v4808_v9, %v5353_v51  ;;  %v4752_v5 = vrot.slane %v10998_v50, %v8715_v54  ;;  %v11001_v19 = vld [vmem:[#allocation26_spill] sm:$0xff] }
 0x385   :  { %v5355_v15 = vsel %vm5217_vm3, %v4812_v24, %v5354_v26  ;;  %v4864_v51 = vrot.slane %v10999_v11, %v8715_v54  ;;  %v5360_v12 = vsel %vm5213_vm1, %v4836_v1, %v4832_v46  ;;  %v11000_v24 = vld [vmem:[#allocation6_spill] sm:$0xff]  ;;  %v4816_v59 = vrot.slane %v11001_v19, %v8715_v54  ;;  %v11003_v11 = vld [vmem:[#allocation141_spill] sm:$0xff] }
 0x386   :  { %v5335_v41 = vsel %vm5219_vm4, %v4720_v48, %v5334_v60  ;;  %v4840_v26 = vrot.slane %v11000_v24, %v8715_v54  ;;  %v4724_v14 = vrot.slane %v11002_v4, %v8715_v54  ;;  %v4872_v1 = vrot.slane %v11003_v11, %v8715_v54  ;;  %v11004_v46 = vld [vmem:[#allocation142_spill] sm:$0xff]  ;;  %v11005_v24 = vld [vmem:[#allocation143_spill] sm:$0xff]  ;;  %v11006_v4 = vld [vmem:[#allocation144_spill] sm:$0xff] }
 0x387   :  { %v3760_v61 = vpop.permute.xlu0 %3759  ;;  %v3757_v9 = vpop.permute.xlu1 %3756  ;;  %v5367_v50 = vsel %vm5213_vm1, %v4868_v44, %v4864_v51  ;;  %v5349_v48 = vsel %vm5219_vm4, %v4784_v58, %v5348_v3  ;;  %v5342_v60 = vsel %vm5219_vm4, %v4752_v5, %v5341_v34  ;;  %v4756_v19 = vrot.slane %v11005_v24, %v8715_v54  ;;  %v11007_v11 = vld [vmem:[#allocation145_spill] sm:$0xff] }
 0x388   :  { %v4644_v53 = vrot.slane %v3760_v61, %v8715_v54  ;;  %v4640_v7 = vrot.slane %v3757_v9, %v8715_v54  ;;  %v4788_v61 = vrot.slane %v11004_v46, %v8715_v54  ;;  %v4844_v27 = vrot.slane %v11006_v4, %v8715_v54  ;;  %v11008_v46 = vld [vmem:[#allocation76_spill] sm:$0xff] }
 0x389   :  { %v4820_v47 = vrot.slane %v11007_v11, %v8715_v54  ;;  %v4876_v6 = vrot.slane %v11008_v46, %v8715_v54  ;;  %v5361_v34 = vsel %vm5215_vm2, %v4840_v26, %v5360_v12  ;;  %v5356_v58 = vsel %vm5219_vm4, %v4816_v59, %v5355_v15  ;;  %v11010_v46 = vld [vmem:[#allocation36_spill] sm:$0xff] }
 0x38a   :  { %v9315_v9 = vsel %vm5213_vm1, %v4644_v53, %v4640_v7  ;;  %v9332_v5 = vsel %vm5221_vm5, %v4724_v14, %v5335_v41  ;;  %v11009_v7 = vld [vmem:[#allocation68_spill] sm:$0xff]  ;;  %v5368_v4 = vsel %vm5215_vm2, %v4872_v1, %v5367_v50  ;;  %v9338_v11 = vsel %vm5221_vm5, %v4788_v61, %v5349_v48  ;;  %v11011_v41 = vld [vmem:[#allocation110_spill] sm:$0xff] }
 0x38b   :  { %v3784_v44 = vpop.permute.xlu0 %3783  ;;  %v3781_v51 = vpop.permute.xlu1 %3780  ;;  %v4900_v24 = vrot.slane %v11009_v7, %v8715_v54  ;;  %v9346_v12 = vsel %vm5221_vm5, %v4756_v19, %v5342_v60  ;;  %v5362_v15 = vsel %vm5217_vm3, %v4844_v27, %v5361_v34  ;;  %v4896_v26 = vrot.slane %v11011_v41, %v8715_v54  ;;  %v11012_v59 = vld [vmem:[#allocation148_spill] sm:$0xff]  ;;  %v11016_v27 = vld [vmem:[#allocation86_spill] sm:$0xff]  ;;  %v11017_v34 = vld [vmem:[#allocation79_spill] sm:$0xff] }
 0x38c   :  { %v4676_v53 = vrot.slane %v3784_v44, %v8715_v54  ;;  %v4672_v3 = vrot.slane %v3781_v51, %v8715_v54  ;;  %v4932_v44 = vrot.slane %v11010_v46, %v8715_v54  ;;  %v4848_v14 = vrot.slane %v11012_v59, %v8715_v54  ;;  %v11015_v60 = vld [vmem:[#allocation52_spill] sm:$0xff] }
 0x38d   :  { %v9358_v61 = vsel %vm5221_vm5, %v4820_v47, %v5356_v58  ;;  %v5369_v48 = vsel %vm5217_vm3, %v4876_v6, %v5368_v4  ;;  %v4928_v19 = vrot.slane %v11015_v60, %v8715_v54  ;;  %v4880_v7 = vrot.slane %v11017_v34, %v8715_v54  ;;  %v11018_v46 = vld [vmem:[#allocation100_spill] sm:$0xff]  ;;  %v11020_v4 = vld [vmem:[#allocation146_spill] sm:$0xff]  ;;  %v11028_v58 = vld [vmem:[#allocation73_spill] sm:$0xff] }
 0x38e   :  { %v9343_v51 = vsel %vm5213_vm1, %v4676_v53, %v4672_v3  ;;  %v4904_v53 = vrot.slane %v11016_v27, %v8715_v54  ;;  %v5374_v3 = vsel %vm5213_vm1, %v4900_v24, %v4896_v26  ;;  %v4936_v41 = vrot.slane %v11018_v46, %v8715_v54  ;;  %v11019_v47 = vld [vmem:[#allocation20_spill] sm:$0xff]  ;;  %v11021_v60 = vld [vmem:[#allocation150_spill] sm:$0xff]  ;;  %v11022_v24 = vld [vmem:[#allocation147_spill] sm:$0xff] }
 0x38f   :  { %v9353_v50 = vpop.permute.xlu0 %4041  ;;  %v9355_v1 = vpop.permute.xlu1 %4017  ;;  %v5381_v6 = vsel %vm5213_vm1, %v4932_v44, %v4928_v19  ;;  %v4484_v27 = vrot.slane %v11021_v60, %v8715_v54  ;;  %v5363_v34 = vsel %vm5219_vm4, %v4848_v14, %v5362_v15  ;;  %v11026_v44 = vld [vmem:[#allocation80_spill] sm:$0xff]  ;;  %v4480_v26 = vrot.slane %v11028_v58, %v8715_v54  ;;  %v11029_v15 = vld [vmem:[#allocation55_spill] sm:$0xff] }
 0x390   :  { %11013 = vst [vmem:[#allocation112_spill] sm:$0xff] %v9353_v50  ;;  %11014 = vst [vmem:[#allocation33_spill] sm:$0xff] %v9355_v1  ;;  %v11027_v19 = vrot.slane %v11026_v44, %v8715_v54  ;;  %v5375_v60 = vsel %vm5215_vm2, %v4904_v53, %v5374_v3  ;;  %v11030_v14 = vrot.slane %v11029_v15, %v8715_v54  ;;  %v11033_v3 = vld [vmem:[#allocation155_spill] sm:$0xff] }
 0x391   :  { %v5283_v53 = vsel %vm5213_vm1, %v4484_v27, %v4480_v26  ;;  %v4908_v58 = vrot.slane %v11033_v3, %v8715_v54  ;;  %v4884_v15 = vrot.slane %v11034_v8, %v8715_v54  ;;  %v11041_v3 = vld [vmem:[#allocation39_spill] sm:$0xff] }
 0x392   :  { %v5222_v59 = vsel %vm5221_vm5, %v11027_v19, %v8804_v31  ;;  %v11032_v31 = vld [vmem:[#allocation153_spill] sm:$0xff]  ;;  %v11042_v8 = vrot.slane %v11041_v3, %v8715_v54  ;;  %v11047_v3 = vld [vmem:[#allocation154_spill] sm:$0xff] }
 0x393   :  { %v9382_v50 = vpop.permute.xlu0 %4083  ;;  %v9384_v37 = vpop.permute.xlu1 %4059  ;;  %v5224_v46 = vsel %vm5223_vm6, %v11030_v14, %v5222_v59  ;;  %v4852_v19 = vrot.slane %v11032_v31, %v8715_v54  ;;  %v11035_v59 = vld [vmem:[#allocation43_spill] sm:$0xff]  ;;  %v11039_v31 = vld [vmem:[#allocation40_spill] sm:$0xff]  ;;  %v5376_v45 = vsel %vm5217_vm3, %v4908_v58, %v5375_v60 }
 0x394   :  { %11024 = vst [vmem:[#allocation111_spill] sm:$0xff] %v9382_v50  ;;  %11025 = vst [vmem:[#allocation117_spill] sm:$0xff] %v9384_v37  ;;  %v5370_v50 = vsel %vm5219_vm4, %v4880_v7, %v5369_v48  ;;  %v5382_v37 = vsel %vm5215_vm2, %v4936_v41, %v5381_v6  ;;  %v4940_v14 = vrot.slane %v11035_v59, %v8715_v54  ;;  %v11036_v48 = vld [vmem:[#allocation7_spill] sm:$0xff] }
 0x395   :  { %v4964_v7 = vrot.slane %v11036_v48, %v8715_v54  ;;  %v11040_v27 = vrot.slane %v11039_v31, %v8715_v54  ;;  %v5226_v44 = vsel %vm5225_vm7, %v11042_v8, %v5224_v46  ;;  %v11043_v59 = vld [vmem:[#allocation151_spill] sm:$0xff]  ;;  %v11044_v48 = vld [vmem:[#allocation152_spill] sm:$0xff]  ;;  %v11046_v31 = vrot.slane %v10893_v25, %v8715_v54  ;;  %v11048_v8 = vld [vmem:[#allocation97_spill] sm:$0xff] }
 0x396   :  { %v4960_v1 = vrot.slane %v11048_v8, %v8715_v54  ;;  %v5383_v25 = vsel %vm5217_vm3, %v4940_v14, %v5382_v37  ;;  %v11051_v8 = vrot.slane %v10889_v23, %v8715_v54  ;;  %v11054_v14 = vld [vmem:[#allocation92_spill] sm:$0xff] }
 0x397   :  { %v9413_v41 = vpop.permute.xlu0 %4125  ;;  %v9415_v6 = vpop.permute.xlu1 %4101  ;;  %v5231_v26 = vsel %vm5221_vm5, %v11040_v27, %v8855_v10  ;;  %v9437_v27 = vsel %vm5221_vm5, %v4852_v19, %v5363_v34  ;;  %v11050_v34 = vld [vmem:[#allocation59_spill] sm:$0xff] }
 0x398   :  { %11037 = vst [vmem:[#allocation118_spill] sm:$0xff] %v9413_v41  ;;  %11038 = vst [vmem:[#allocation114_spill] sm:$0xff] %v9415_v6  ;;  %v11045_v6 = vld [vmem:[#allocation157_spill] sm:$0xff]  ;;  %v5232_v10 = vsel %vm5223_vm6, %v11046_v31, %v5231_v26  ;;  %v4996_v41 = vrot.slane %v11049_v18, %v8715_v54  ;;  %v5477_v26 = vsel %vm5476_vm8, %v5226_v44, 0.0  ;;  %v4992_v19 = vrot.slane %v11050_v34, %v8715_v54 }
 0x399   :  { %v4488_v20 = vrot.slane %v11045_v6, %v8715_v54  ;;  %v9447_v6 = vsel %vm5221_vm5, %v4884_v15, %v5370_v50  ;;  %v5388_v31 = vsel %vm5213_vm1, %v4964_v7, %v4960_v1  ;;  %v5233_v18 = vsel %vm5225_vm7, %v11051_v8, %v5232_v10 }
 0x39a   :  { %v11052_v50 = vrot.slane %v10903_v33, %v8715_v54  ;;  %v11053_v1 = vrot.slane %v10910_v17, %v8715_v54  ;;  %v5395_v23 = vsel %vm5213_vm1, %v4996_v41, %v4992_v19  ;;  %v4944_v7 = vrot.slane %v11054_v14, %v8715_v54  ;;  %v11055_v33 = vld [vmem:[#allocation87_spill] sm:$0xff] }
 0x39b   :  { %v4144_v46 = vpop.permute.xlu0 %4143  ;;  %v4141_v35 = vpop.permute.xlu1 %4140  ;;  %v5284_v60 = vsel %vm5215_vm2, %v4488_v20, %v5283_v53  ;;  %v4912_v10 = vrot.slane %v11055_v33, %v8715_v54  ;;  %v11057_v53 = vld [vmem:[#allocation95_spill] sm:$0xff]  ;;  %v5480_v41 = vsel %vm5476_vm8, %v5233_v18, 0.0  ;;  %v11061_v33 = vrot.slane %v10904_v21, %v8715_v54 }
 0x39c   :  { %v5238_v37 = vsel %vm5221_vm5, %v11052_v50, %v8919_v49  ;;  %v5156_v44 = vrot.slane %v4144_v46, %v8715_v54  ;;  %v5152_v58 = vrot.slane %v4141_v35, %v8715_v54  ;;  %v11056_v49 = vld [vmem:[#allocation78_spill] sm:$0xff]  ;;  %v11058_v35 = vld [vmem:[#allocation105_spill] sm:$0xff]  ;;  %v11059_v19 = vld [vmem:[#allocation159_spill] sm:$0xff] }
 0x39d   :  { %v5239_v15 = vsel %vm5223_vm6, %v11053_v1, %v5238_v37  ;;  %v5000_v20 = vrot.slane %v11056_v49, %v8715_v54  ;;  %v4968_v34 = vrot.slane %v11058_v35, %v8715_v54  ;;  %v11060_v50 = vld [vmem:[#allocation101_spill] sm:$0xff] }
 0x39e   :  { %v9482_v17 = vsel %vm5213_vm1, %v5156_v44, %v5152_v58  ;;  %v4492_v37 = vrot.slane %v11060_v50, %v8715_v54  ;;  %v5240_v49 = vsel %vm5225_vm7, %v11061_v33, %v5239_v15  ;;  %v11062_v44 = vrot.slane %v10915_v2, %v8715_v54  ;;  %v11063_v58 = vld [vmem:[#allocation69_spill] sm:$0xff] }
 0x39f   :  { %v4168_v1 = vpop.permute.xlu0 %4167  ;;  %5481 = vadd.xlane.f32.xlu0 %v5480_v41  ;;  %v4165_v14 = vpop.permute.xlu1 %4164  ;;  %v4516_v35 = vrot.slane %v11063_v58, %v8715_v54  ;;  %v11064_v41 = vrot.slane %v10920_v42, %v8715_v54  ;;  %v5384_v15 = vsel %vm5219_vm4, %v4944_v7, %v5383_v25  ;;  %v5377_v33 = vsel %vm5219_vm4, %v4912_v10, %v5376_v45  ;;  %v11067_v25 = vld [vmem:[#allocation53_spill] sm:$0xff] }
 0x3a0   :  { %v5245_v18 = vsel %vm5221_vm5, %v11062_v44, %v8993_v0  ;;  %v5188_v46 = vrot.slane %v4168_v1, %v8715_v54  ;;  %v5184_v50 = vrot.slane %v4165_v14, %v8715_v54  ;;  %v5396_v2 = vsel %vm5215_vm2, %v5000_v20, %v5395_v23  ;;  %v11065_v0 = vld [vmem:[#allocation37_spill] sm:$0xff]  ;;  %v11066_v1 = vld [vmem:[#allocation74_spill] sm:$0xff] }
 0x3a1   :  { %v5246_v21 = vsel %vm5223_vm6, %v11064_v41, %v5245_v18  ;;  %v4548_v44 = vrot.slane %v11065_v0, %v8715_v54  ;;  %v5389_v58 = vsel %vm5215_vm2, %v4968_v34, %v5388_v31  ;;  %v4512_v8 = vrot.slane %v11066_v1, %v8715_v54  ;;  %v11070_v34 = vld [vmem:[#allocation160_spill] sm:$0xff]  ;;  %v11075_v0 = vld [vmem:[#allocation163_spill] sm:$0xff] }
 0x3a2   :  { %v9515_v14 = vsel %vm5213_vm1, %v5188_v46, %v5184_v50  ;;  %v5483_v42 = vsel %vm5476_vm8, %v5240_v49, 0.0  ;;  %v5285_v18 = vsel %vm5217_vm3, %v4492_v37, %v5284_v60  ;;  %v4544_v45 = vrot.slane %v11067_v25, %v8715_v54  ;;  %v11071_v49 = vld [vmem:[#allocation162_spill] sm:$0xff] }
 0x3a3   :  { %v9521_v7 = vpop.permute.xlu0 %3702  ;;  %5484 = vadd.xlane.f32.xlu0 %v5483_v42  ;;  %v9523_v23 = vpop.permute.xlu1 %3678  ;;  %v11068_v31 = vrot.slane %v10919_v43, %v8715_v54  ;;  %v11069_v20 = vrot.slane %v11019_v47, %v8715_v54  ;;  %v9535_v60 = vsel %vm5213_vm1, %v4516_v35, %v4512_v8  ;;  %v4916_v37 = vrot.slane %v11070_v34, %v8715_v54  ;;  %v11074_v8 = vld [vmem:[#allocation161_spill] sm:$0xff]  ;;  %v11076_v42 = vld [vmem:[#allocation106_spill] sm:$0xff] }
 0x3a4   :  { %v4972_v50 = vrot.slane %v11071_v49, %v8715_v54  ;;  %5478 = vadd.xlane.f32.xlu1 %v5477_v26  ;;  %v11072_v43 = vrot.slane %v11031_v38, %v8715_v54  ;;  %v4892_v35 = vrot.slane %v11074_v8, %v8715_v54  ;;  %v4948_v1 = vrot.slane %v11075_v0, %v8715_v54  ;;  %v11077_v26 = vld [vmem:[#allocation98_spill] sm:$0xff] }
 0x3a5   :  { %v5247_v10 = vsel %vm5225_vm7, %v11068_v31, %v5246_v21  ;;  %v5337_v46 = vsel %vm5223_vm6, %v11069_v20, %v9332_v5  ;;  %v11073_v21 = vld [vmem:[#allocation21_spill] sm:$0xff]  ;;  %v5297_v5 = vsel %vm5213_vm1, %v4548_v44, %v4544_v45  ;;  %v5004_v25 = vrot.slane %v11076_v42, %v8715_v54 }
 0x3a6   :  { %v5338_v41 = vsel %vm5225_vm7, %v11072_v43, %v5337_v46  ;;  %v4860_v47 = vrot.slane %v11073_v21, %v8715_v54  ;;  %v5028_v31 = vrot.slane %v11077_v26, %v8715_v54  ;;  %v5486_v38 = vsel %vm5476_vm8, %v5247_v10, 0.0 }
 0x3a7   :  { %v11078_v20 = vrot.slane %v11022_v24, %v8715_v54  ;;  %v9562_v45 = vpop.permute.xlu0 %3744  ;;  %5487 = vadd.xlane.f32.xlu0 %v5486_v38  ;;  %v9564_v46 = vpop.permute.xlu1 %3720  ;;  %v5525_v34 = vsel %vm5476_vm8, %v5338_v41, 0.0  ;;  %v11079_v49 = vrot.slane %v11044_v48, %v8715_v54  ;;  %v11080_v10 = vrot.slane %v11020_v4, %v8715_v54 }
 0x3a8   :  { %v9582_v0 = vsel %vm5221_vm5, %v4916_v37, %v5377_v33  ;;  %v5390_v41 = vsel %vm5217_vm3, %v4972_v50, %v5389_v58  ;;  %5526 = vadd.xlane.f32.xlu1 %v5525_v34  ;;  %v11082_v48 = vrot.slane %v11043_v59, %v8715_v54  ;;  %v11085_v37 = vld [vmem:[#allocation89_spill] sm:$0xff]  ;;  %v11086_v59 = vrot.slane %v11023_v29, %v8715_v54 }
 0x3a9   :  { %v5344_v44 = vsel %vm5223_vm6, %v11078_v20, %v9346_v12  ;;  %v5351_v24 = vsel %vm5223_vm6, %v11080_v10, %v9338_v11  ;;  %v11081_v12 = vrot.slane %v10926_v52, %v8715_v54  ;;  %v11083_v11 = vrot.slane %v10931_v62, %v8715_v54  ;;  %v11087_v62 = vld [vmem:[#allocation71_spill] sm:$0xff]  ;;  %v11092_v10 = vld [vmem:[#allocation82_spill] sm:$0xff] }
 0x3aa   :  { %v5345_v43 = vsel %vm5225_vm7, %v11079_v49, %v5344_v44  ;;  %v5352_v42 = vsel %vm5225_vm7, %v11082_v48, %v5351_v24  ;;  %v9594_v52 = vsel %vm5221_vm5, %v4948_v1, %v5384_v15  ;;  %v4496_v58 = vrot.slane %v11085_v37, %v8715_v54  ;;  %v11089_v49 = vld [vmem:[#allocation17_spill] sm:$0xff] }
 0x3ab   :  { %v5252_v21 = vsel %vm5221_vm5, %v11081_v12, %v9033_v40  ;;  %v11084_v40 = vld [vmem:[#allocation139_spill] sm:$0xff]  ;;  %v5358_v50 = vsel %vm5223_vm6, %v11086_v59, %v9358_v61  ;;  %v5397_v26 = vsel %vm5217_vm3, %v5004_v25, %v5396_v2  ;;  %v5056_v38 = vrot.slane %v11087_v62, %v8715_v54  ;;  %v3787_v34 = vpop.permute.xlu0 %3786  ;;  %v3763_v29 = vpop.permute.xlu1 %3762 }
 0x3ac   :  { %v5253_v4 = vsel %vm5223_vm6, %v11083_v11, %v5252_v21  ;;  %v5024_v33 = vrot.slane %v11084_v40, %v8715_v54  ;;  %v5528_v15 = vsel %vm5476_vm8, %v5345_v43, 0.0  ;;  %v11088_v1 = vrot.slane %v11047_v3, %v8715_v54 }
 0x3ad   :  { %5529 = vadd.xlane.f32.xlu0 %v5528_v15  ;;  %v5531_v61 = vsel %vm5476_vm8, %v5352_v42, 0.0  ;;  %v11090_v2 = vrot.slane %v11089_v49, %v8715_v54  ;;  %v11091_v43 = vrot.slane %v10941_v30, %v8715_v54  ;;  %v4680_v24 = vrot.slane %v3787_v34, %v8715_v54  ;;  %v11094_v30 = vld [vmem:[#allocation75_spill] sm:$0xff] }
 0x3ae   :  { %v5359_v20 = vsel %vm5225_vm7, %v11088_v1, %v5358_v50  ;;  %v9614_v44 = vsel %vm5213_vm1, %v5028_v31, %v5024_v33  ;;  %v5060_v31 = vrot.slane %v11092_v10, %v8715_v54  ;;  %v4648_v12 = vrot.slane %v3763_v29, %v8715_v54  ;;  %5532 = vadd.xlane.f32.xlu1 %v5531_v61  ;;  %v11102_v29 = vld [vmem:[#allocation5_spill] sm:$0xff] }
 0x3af   :  { %v5254_v25 = vsel %vm5225_vm7, %v11090_v2, %v5253_v4  ;;  %v5259_v3 = vsel %vm5221_vm5, %v11091_v43, %v9106_v28  ;;  %v11093_v21 = vrot.slane %v10946_v16, %v8715_v54  ;;  %v9635_v42 = vsel %vm5219_vm4, %v4496_v58, %v5285_v18  ;;  %v11095_v28 = vld [vmem:[#allocation27_spill] sm:$0xff]  ;;  %v9656_v59 = vpop.permute.xlu0 %4086  ;;  %v9658_v50 = vpop.permute.xlu1 %4062 }
 0x3b0   :  { %v4552_v11 = vrot.slane %v11094_v30, %v8715_v54  ;;  %v4520_v4 = vrot.slane %v11095_v28, %v8715_v54  ;;  %v5534_v40 = vsel %vm5476_vm8, %v5359_v20, 0.0  ;;  %v9644_v33 = vsel %vm5215_vm2, %v4680_v24, %v9343_v51 }
 0x3b1   :  { %v5260_v48 = vsel %vm5223_vm6, %v11093_v21, %v5259_v3  ;;  %v9648_v16 = vsel %vm5215_vm2, %v4648_v12, %v9315_v9  ;;  %v5489_v37 = vsel %vm5476_vm8, %v5254_v25, 0.0  ;;  %v11096_v18 = vrot.slane %v10951_v22, %v8715_v54  ;;  %5535 = vadd.xlane.f32.xlu0 %v5534_v40 }
 0x3b2   :  { %v11097_v51 = vrot.slane %v10945_v57, %v8715_v54  ;;  %v11098_v9 = vrot.slane %v11059_v19, %v8715_v54  ;;  %v11099_v22 = vrot.slane %v10968_v63, %v8715_v54  ;;  %v11100_v1 = vrot.slane %v10969_v39, %v8715_v54  ;;  %v11101_v57 = vld [vmem:[#allocation96_spill] sm:$0xff]  ;;  %5490 = vadd.xlane.f32.xlu1 %v5489_v37  ;;  %v11113_v37 = vld [vmem:[#allocation107_spill] sm:$0xff] }
 0x3b3   :  { %v5266_v58 = vsel %vm5221_vm5, %v11096_v18, %v9206_v36  ;;  %v5008_v34 = vrot.slane %v11101_v57, %v8715_v54  ;;  %v4976_v61 = vrot.slane %v11102_v29, %v8715_v54  ;;  %v11103_v63 = vrot.slane %v10971_v55, %v8715_v54  ;;  %v9711_v24 = vpop.permute.xlu0 %4128  ;;  %v9713_v12 = vpop.permute.xlu1 %4104 }
 0x3b4   :  { %v5261_v62 = vsel %vm5225_vm7, %v11097_v51, %v5260_v48  ;;  %v5365_v15 = vsel %vm5223_vm6, %v11098_v9, %v9437_v27  ;;  %v5267_v36 = vsel %vm5223_vm6, %v11099_v22, %v5266_v58  ;;  %v5273_v20 = vsel %vm5221_vm5, %v11100_v1, %v9223_v32  ;;  %v11104_v32 = vld [vmem:[#allocation72_spill] sm:$0xff] }
 0x3b5   :  { %v5366_v27 = vsel %vm5225_vm7, %v4860_v47, %v5365_v15  ;;  %v5274_v19 = vsel %vm5223_vm6, %v11103_v63, %v5273_v20  ;;  %v5409_v49 = vsel %vm5213_vm1, %v5060_v31, %v5056_v38  ;;  %v5298_v39 = vsel %vm5215_vm2, %v4552_v11, %v5297_v5  ;;  %v11106_v47 = vld [vmem:[#allocation54_spill] sm:$0xff] }
 0x3b6   :  { %v4920_v2 = vrot.slane %v11104_v32, %v8715_v54  ;;  %v11105_v25 = vrot.slane %v11057_v53, %v8715_v54  ;;  %v5064_v3 = vrot.slane %v11106_v47, %v8715_v54  ;;  %v5492_v55 = vsel %vm5476_vm8, %v5261_v62, 0.0  ;;  %v11111_v11 = vld [vmem:[#allocation94_spill] sm:$0xff]  ;;  %v11119_v32 = vld [vmem:[#allocation31_spill] sm:$0xff]  ;;  %v11121_v47 = vld [vmem:[#allocation12_spill] sm:$0xff] }
 0x3b7   :  { %v11107_v5 = vrot.slane %v10964_v56, %v8715_v54  ;;  %v5291_v53 = vsel %vm5215_vm2, %v4520_v4, %v9535_v60  ;;  %5493 = vadd.xlane.f32.xlu0 %v5492_v55  ;;  %v5537_v8 = vsel %vm5476_vm8, %v5366_v27, 0.0  ;;  %v5398_v21 = vsel %vm5219_vm4, %v5008_v34, %v5397_v26  ;;  %v11110_v60 = vld [vmem:[#allocation38_spill] sm:$0xff]  ;;  %v11112_v4 = vld [vmem:[#allocation8_spill] sm:$0xff]  ;;  %v4171_v34 = vpop.permute.xlu0 %4170  ;;  %v4147_v29 = vpop.permute.xlu1 %4146  ;;  %v11118_v27 = vld [vmem:[#allocation15_spill] sm:$0xff] }
 0x3b8   :  { %v5372_v43 = vsel %vm5223_vm6, %v11105_v25, %v9447_v6  ;;  %v11108_v6 = vld [vmem:[#allocation103_spill] sm:$0xff]  ;;  %v5391_v48 = vsel %vm5219_vm4, %v4976_v61, %v5390_v41  ;;  %v5032_v30 = vrot.slane %v11110_v60, %v8715_v54  ;;  %v4924_v28 = vrot.slane %v11111_v11, %v8715_v54  ;;  %5538 = vadd.xlane.f32.xlu1 %v5537_v8  ;;  %v11114_v41 = vld [vmem:[#allocation22_spill] sm:$0xff]  ;;  %v11120_v25 = vld [vmem:[#allocation56_spill] sm:$0xff] }
 0x3b9   :  { %v5373_v38 = vsel %vm5225_vm7, %v4892_v35, %v5372_v43  ;;  %v5268_v10 = vsel %vm5225_vm7, %v11107_v5, %v5267_v36  ;;  %v4952_v31 = vrot.slane %v11108_v6, %v8715_v54  ;;  %v11109_v35 = vrot.slane %v10970_v13, %v8715_v54  ;;  %v11115_v15 = vld [vmem:[#allocation90_spill] sm:$0xff]  ;;  %v11116_v36 = vld [vmem:[#allocation9_spill] sm:$0xff]  ;;  %v11123_v5 = vld [vmem:[#allocation64_spill] sm:$0xff] }
 0x3ba   :  { %v4468_v40 = vrot.slane %v11112_v4, %v8715_v54  ;;  %v4956_v18 = vrot.slane %v11113_v37, %v8715_v54  ;;  %v5540_v13 = vsel %vm5476_vm8, %v5373_v38, 0.0  ;;  %v5495_v58 = vsel %vm5476_vm8, %v5268_v10, 0.0  ;;  %v11117_v20 = vld [vmem:[#allocation62_spill] sm:$0xff] }
 0x3bb   :  { %v5275_v56 = vsel %vm5225_vm7, %v11109_v35, %v5274_v19  ;;  %v9733_v26 = vsel %vm5215_vm2, %v5064_v3, %v5409_v49  ;;  %v4500_v51 = vrot.slane %v11114_v41, %v8715_v54  ;;  %v5379_v9 = vsel %vm5223_vm6, %v4920_v2, %v9582_v0  ;;  %5541 = vadd.xlane.f32.xlu0 %v5540_v13  ;;  %v11122_v55 = vld [vmem:[#allocation46_spill] sm:$0xff]  ;;  %v11124_v35 = vld [vmem:[#allocation16_spill] sm:$0xff]  ;;  %v9776_v11 = vpop.permute.xlu0 %3705 }
 0x3bc   :  { %v5498_v62 = vsel %vm5476_vm8, %v5275_v56, 0.0  ;;  %v4556_v22 = vrot.slane %v11115_v15, %v8715_v54  ;;  %v4524_v1 = vrot.slane %v11116_v36, %v8715_v54  ;;  %v4472_v57 = vrot.slane %v11117_v20, %v8715_v54  ;;  %5496 = vadd.xlane.f32.xlu1 %v5495_v58  ;;  %v11126_v58 = vld [vmem:[#allocation10_spill] sm:$0xff] }
 0x3bd   :  { %v5386_v61 = vsel %vm5223_vm6, %v4952_v31, %v9594_v52  ;;  %v4476_v63 = vrot.slane %v11118_v27, %v8715_v54  ;;  %v5192_v0 = vrot.slane %v4171_v34, %v8715_v54  ;;  %v5160_v19 = vrot.slane %v4147_v29, %v8715_v54 }
 0x3be   :  { %v5380_v49 = vsel %vm5225_vm7, %v4924_v28, %v5379_v9  ;;  %v5280_v2 = vsel %vm5221_vm5, %v4468_v40, %v11119_v32  ;;  %v5012_v43 = vrot.slane %v11120_v25, %v8715_v54  ;;  %v4980_v3 = vrot.slane %v11121_v47, %v8715_v54  ;;  %v3682_v28 = vpop.permute.xlu1 %3681  ;;  %v11133_v25 = vld [vmem:[#allocation65_spill] sm:$0xff] }
 0x3bf   :  { %v5387_v52 = vsel %vm5225_vm7, %v4956_v18, %v5386_v61  ;;  %v4504_v38 = vrot.slane %v11122_v55, %v8715_v54  ;;  %v4984_v10 = vrot.slane %v11123_v5, %v8715_v54  ;;  %v9766_v6 = vsel %vm5215_vm2, %v5192_v0, %v9515_v14  ;;  %5499 = vadd.xlane.f32.xlu0 %v5498_v62  ;;  %v11130_v61 = vld [vmem:[#allocation28_spill] sm:$0xff] }
 0x3c0   :  { %v9770_v31 = vsel %vm5215_vm2, %v5160_v19, %v9482_v17  ;;  %v5287_v8 = vsel %vm5221_vm5, %v4500_v51, %v9635_v42  ;;  %v4508_v56 = vrot.slane %v11124_v35, %v8715_v54  ;;  %v5543_v4 = vsel %vm5476_vm8, %v5380_v49, 0.0  ;;  %v11125_v17 = vld [vmem:[#allocation33_spill] sm:$0xff]  ;;  %v11127_v51 = vld [vmem:[#allocation48_spill] sm:$0xff]  ;;  %v11132_v49 = vld [vmem:[#allocation11_spill] sm:$0xff] }
 0x3c1   :  { %v5281_v40 = vsel %vm5223_vm6, %v4472_v57, %v5280_v2  ;;  %v5299_v14 = vsel %vm5217_vm3, %v4556_v22, %v5298_v39  ;;  %v5292_v37 = vsel %vm5217_vm3, %v4524_v1, %v5291_v53  ;;  %v4988_v18 = vrot.slane %v11125_v17, %v8715_v54  ;;  %5544 = vadd.xlane.f32.xlu1 %v5543_v4  ;;  %v11128_v53 = vld [vmem:[#allocation81_spill] sm:$0xff]  ;;  %v11129_v1 = vld [vmem:[#allocation112_spill] sm:$0xff]  ;;  %v9800_v57 = vpop.permute.xlu0 %3747 }
 0x3c2   :  { %v5282_v42 = vsel %vm5225_vm7, %v4476_v63, %v5281_v40  ;;  %v5392_v13 = vsel %vm5221_vm5, %v4980_v3, %v5391_v48  ;;  %v4528_v41 = vrot.slane %v11126_v58, %v8715_v54  ;;  %v5016_v62 = vrot.slane %v11127_v51, %v8715_v54  ;;  %v9802_v34 = vpop.permute.xlu1 %3723  ;;  %v11131_v63 = vld [vmem:[#allocation30_spill] sm:$0xff]  ;;  %v11134_v3 = vld [vmem:[#allocation32_spill] sm:$0xff]  ;;  %v11136_v17 = vld [vmem:[#allocation117_spill] sm:$0xff] }
 0x3c3   :  { %v5546_v9 = vsel %vm5476_vm8, %v5387_v52, 0.0  ;;  %v5399_v39 = vsel %vm5221_vm5, %v5012_v43, %v5398_v21  ;;  %v4532_v15 = vrot.slane %v11128_v53, %v8715_v54  ;;  %v5288_v22 = vsel %vm5223_vm6, %v4504_v38, %v5287_v8  ;;  %v11137_v58 = vld [vmem:[#allocation111_spill] sm:$0xff] }
 0x3c4   :  { %v5393_v36 = vsel %vm5223_vm6, %v4984_v10, %v5392_v13  ;;  %v5020_v48 = vrot.slane %v11129_v1, %v8715_v54  ;;  %v4536_v20 = vrot.slane %v9523_v23, %v8715_v54  ;;  %5547 = vadd.xlane.f32.xlu0 %v5546_v9  ;;  %v5501_v21 = vsel %vm5476_vm8, %v5282_v42, 0.0 }
 0x3c5   :  { %v5289_v29 = vsel %vm5225_vm7, %v4508_v56, %v5288_v22  ;;  %v5068_v27 = vrot.slane %v11130_v61, %v8715_v54  ;;  %v4560_v0 = vrot.slane %v11131_v63, %v8715_v54  ;;  %v4540_v19 = vrot.slane %v3682_v28, %v8715_v54  ;;  %5502 = vadd.xlane.f32.xlu1 %v5501_v21  ;;  %v9826_v8 = vpop.permute.xlu0 %3789 }
 0x3c6   :  { %v5394_v23 = vsel %vm5225_vm7, %v4988_v18, %v5393_v36  ;;  %v5036_v32 = vrot.slane %v11132_v49, %v8715_v54  ;;  %v5293_v2 = vsel %vm5219_vm4, %v4528_v41, %v5292_v37  ;;  %v4564_v43 = vrot.slane %v11133_v25, %v8715_v54  ;;  %v9828_v35 = vpop.permute.xlu1 %3765 }
 0x3c7   :  { %v5400_v47 = vsel %vm5223_vm6, %v5016_v62, %v5399_v39  ;;  %v5040_v52 = vrot.slane %v11134_v3, %v8715_v54  ;;  %v5294_v55 = vsel %vm5221_vm5, %v4532_v15, %v5293_v2  ;;  %v4568_v38 = vrot.slane %v9521_v7, %v8715_v54  ;;  %v11135_v7 = vld [vmem:[#allocation60_spill] sm:$0xff] }
 0x3c8   :  { %v5504_v5 = vsel %vm5476_vm8, %v5289_v29, 0.0  ;;  %v4572_v10 = vrot.slane %v9776_v11, %v8715_v54  ;;  %v5549_v56 = vsel %vm5476_vm8, %v5394_v23, 0.0  ;;  %v5401_v28 = vsel %vm5225_vm7, %v5020_v48, %v5400_v47 }
 0x3c9   :  { %5505 = vadd.xlane.f32.xlu0 %v5504_v5  ;;  %v5295_v4 = vsel %vm5223_vm6, %v4536_v20, %v5294_v55  ;;  %v5300_v40 = vsel %vm5219_vm4, %v4560_v0, %v5299_v14  ;;  %v5072_v37 = vrot.slane %v11135_v7, %v8715_v54  ;;  %v5044_v18 = vrot.slane %v11136_v17, %v8715_v54 }
 0x3ca   :  { %5550 = vadd.xlane.f32.xlu1 %v5549_v56  ;;  %v5296_v11 = vsel %vm5225_vm7, %v4540_v19, %v5295_v4  ;;  %v5403_v42 = vsel %vm5215_vm2, %v5032_v30, %v9614_v44  ;;  %v5301_v13 = vsel %vm5221_vm5, %v4564_v43, %v5300_v40  ;;  %v5076_v14 = vrot.slane %v11137_v58, %v8715_v54  ;;  %v4090_v30 = vpop.permute.xlu0 %4089  ;;  %v4066_v53 = vpop.permute.xlu1 %4065  ;;  %v11142_v40 = vld [vmem:[#allocation44_spill] sm:$0xff]  ;;  %v11146_v58 = vld [vmem:[#allocation109_spill] sm:$0xff] }
 0x3cb   :  { %v5048_v41 = vrot.slane %v9658_v50, %v8715_v54  ;;  %v5404_v51 = vsel %vm5217_vm3, %v5036_v32, %v5403_v42  ;;  %v5080_v62 = vrot.slane %v9656_v59, %v8715_v54  ;;  %v5552_v9 = vsel %vm5476_vm8, %v5401_v28, 0.0  ;;  %v11141_v28 = vld [vmem:[#allocation85_spill] sm:$0xff]  ;;  %v11145_v42 = vld [vmem:[#allocation24_spill] sm:$0xff] }
 0x3cc   :  { %v5302_v39 = vsel %vm5223_vm6, %v4568_v38, %v5301_v13  ;;  %v5411_v44 = vsel %vm5217_vm3, %v5068_v27, %v9733_v26  ;;  %v5405_v60 = vsel %vm5219_vm4, %v5040_v52, %v5404_v51  ;;  %v5507_v15 = vsel %vm5476_vm8, %v5296_v11, 0.0  ;;  %v11138_v52 = vld [vmem:[#allocation23_spill] sm:$0xff] }
 0x3cd   :  { %5553 = vadd.xlane.f32.xlu0 %v5552_v9  ;;  %v5303_v50 = vsel %vm5225_vm7, %v4572_v10, %v5302_v39  ;;  %v5412_v22 = vsel %vm5219_vm4, %v5072_v37, %v5411_v44  ;;  %v5406_v59 = vsel %vm5221_vm5, %v5044_v18, %v5405_v60  ;;  %v5084_v36 = vrot.slane %v4090_v30, %v8715_v54  ;;  %v11139_v38 = vld [vmem:[#allocation83_spill] sm:$0xff]  ;;  %v11140_v10 = vld [vmem:[#allocation104_spill] sm:$0xff]  ;;  %v11143_v37 = vld [vmem:[#allocation14_spill] sm:$0xff] }
 0x3ce   :  { %v5052_v1 = vrot.slane %v4066_v53, %v8715_v54  ;;  %5508 = vadd.xlane.f32.xlu1 %v5507_v15  ;;  %v5413_v26 = vsel %vm5221_vm5, %v5076_v14, %v5412_v22  ;;  %v5407_v48 = vsel %vm5223_vm6, %v5048_v41, %v5406_v59  ;;  %v5510_v20 = vsel %vm5476_vm8, %v5303_v50, 0.0  ;;  %v9868_v61 = vpop.permute.xlu0 %4131  ;;  %v9870_v27 = vpop.permute.xlu1 %4107  ;;  %v11144_v18 = vld [vmem:[#allocation61_spill] sm:$0xff] }
 0x3cf   :  { %v5414_v29 = vsel %vm5223_vm6, %v5080_v62, %v5413_v26  ;;  %v4580_v55 = vrot.slane %v11138_v52, %v8715_v54  ;;  %v4576_v5 = vrot.slane %v11139_v38, %v8715_v54  ;;  %v4612_v56 = vrot.slane %v11140_v10, %v8715_v54  ;;  %v11147_v41 = vld [vmem:[#allocation49_spill] sm:$0xff]  ;;  %v11150_v52 = vld [vmem:[#allocation63_spill] sm:$0xff] }
 0x3d0   :  { %v5408_v21 = vsel %vm5225_vm7, %v5052_v1, %v5407_v48  ;;  %v5415_v0 = vsel %vm5225_vm7, %v5084_v36, %v5414_v29  ;;  %v4608_v4 = vrot.slane %v11141_v28, %v8715_v54  ;;  %v4616_v7 = vrot.slane %v11142_v40, %v8715_v54  ;;  %v11148_v26 = vld [vmem:[#allocation45_spill] sm:$0xff]  ;;  %v11151_v38 = vld [vmem:[#allocation47_spill] sm:$0xff]  ;;  %v11152_v28 = vld [vmem:[#allocation118_spill] sm:$0xff] }
 0x3d1   :  { %5511 = vadd.xlane.f32.xlu0 %v5510_v20  ;;  %v5555_v63 = vsel %vm5476_vm8, %v5408_v21, 0.0  ;;  %v5558_v19 = vsel %vm5476_vm8, %v5415_v0, 0.0  ;;  %v4584_v17 = vrot.slane %v11143_v37, %v8715_v54  ;;  %v5092_v11 = vrot.slane %v11144_v18, %v8715_v54  ;;  %v11149_v48 = vld [vmem:[#allocation29_spill] sm:$0xff]  ;;  %v11153_v40 = vld [vmem:[#allocation114_spill] sm:$0xff] }
 0x3d2   :  { %5556 = vadd.xlane.f32.xlu1 %v5555_v63  ;;  %v9875_v23 = vpop.permute.xlu0 %4173  ;;  %v9877_v49 = vpop.permute.xlu1 %4149  ;;  %v5088_v13 = vrot.slane %v11145_v42, %v8715_v54  ;;  %v4620_v14 = vrot.slane %v11146_v58, %v8715_v54  ;;  %v4588_v51 = vrot.slane %v11147_v41, %v8715_v54  ;;  %v4624_v62 = vrot.slane %v9562_v45, %v8715_v54 }
 0x3d3   :  { %v4592_v9 = vrot.slane %v9564_v46, %v8715_v54  ;;  %v5304_v60 = vsel %vm5213_vm1, %v4580_v55, %v4576_v5  ;;  %v5311_v30 = vsel %vm5213_vm1, %v4612_v56, %v4608_v4  ;;  %v4628_v53 = vrot.slane %v9800_v57, %v8715_v54 }
 0x3d4   :  { %v4596_v15 = vrot.slane %v9802_v34, %v8715_v54  ;;  %v5312_v50 = vsel %vm5215_vm2, %v4616_v7, %v5311_v30  ;;  %v5305_v45 = vsel %vm5215_vm2, %v4584_v17, %v5304_v60  ;;  %v5416_v59 = vsel %vm5213_vm1, %v5092_v11, %v5088_v13 }
 0x3d5   :  { %5559 = vadd.xlane.f32.xlu0 %v5558_v19  ;;  %v5313_v36 = vsel %vm5217_vm3, %v4620_v14, %v5312_v50  ;;  %v5306_v1 = vsel %vm5217_vm3, %v4588_v51, %v5305_v45  ;;  %v5124_v57 = vrot.slane %v11148_v26, %v8715_v54  ;;  %v5120_v34 = vrot.slane %v11149_v48, %v8715_v54 }
 0x3d6   :  { %v3751_v32 = vpop.permute.xlu0 %3750  ;;  %v3727_v2 = vpop.permute.xlu1 %3726  ;;  %v5314_v20 = vsel %vm5219_vm4, %v4624_v62, %v5313_v36  ;;  %v5307_v21 = vsel %vm5219_vm4, %v4592_v9, %v5306_v1  ;;  %v5128_v55 = vrot.slane %v11150_v52, %v8715_v54  ;;  %v5096_v5 = vrot.slane %v11151_v38, %v8715_v54 }
 0x3d7   :  { %v4632_v46 = vrot.slane %v3751_v32, %v8715_v54  ;;  %v4600_v22 = vrot.slane %v3727_v2, %v8715_v54  ;;  %v5315_v0 = vsel %vm5221_vm5, %v4628_v53, %v5314_v20  ;;  %v5308_v19 = vsel %vm5221_vm5, %v4596_v15, %v5307_v21 }
 0x3d8   :  { %v5132_v4 = vrot.slane %v11152_v28, %v8715_v54  ;;  %v5100_v7 = vrot.slane %v11153_v40, %v8715_v54  ;;  %v5136_v18 = vrot.slane %v9711_v24, %v8715_v54  ;;  %v5104_v11 = vrot.slane %v9713_v12, %v8715_v54 }
 0x3d9   :  { %v5316_v10 = vsel %vm5223_vm6, %v4632_v46, %v5315_v0  ;;  %v5309_v56 = vsel %vm5223_vm6, %v4600_v22, %v5308_v19  ;;  %v5423_v41 = vsel %vm5213_vm1, %v5124_v57, %v5120_v34  ;;  %v5140_v51 = vrot.slane %v9868_v61, %v8715_v54 }
 0x3da   :  { %v9879_v25 = vpop.permute.xlu0 %3792  ;;  %v9881_v43 = vpop.permute.xlu1 %3768  ;;  %v5108_v62 = vrot.slane %v9870_v27, %v8715_v54  ;;  %v5424_v24 = vsel %vm5215_vm2, %v5128_v55, %v5423_v41  ;;  %v5417_v12 = vsel %vm5215_vm2, %v5096_v5, %v5416_v59  ;;  %v5196_v0 = vrot.slane %v9875_v23, %v8715_v54 }
 0x3db   :  { %v5425_v30 = vsel %vm5217_vm3, %v5132_v4, %v5424_v24  ;;  %v5418_v53 = vsel %vm5217_vm3, %v5100_v7, %v5417_v12  ;;  %v4688_v19 = vrot.slane %v9879_v25, %v8715_v54 }
 0x3dc   :  { %v5426_v61 = vsel %vm5219_vm4, %v5136_v18, %v5425_v30  ;;  %v5419_v27 = vsel %vm5219_vm4, %v5104_v11, %v5418_v53  ;;  %v5439_v25 = vsel %vm5217_vm3, %v5196_v0, %v9766_v6 }
 0x3dd   :  { %v5427_v45 = vsel %vm5221_vm5, %v5140_v51, %v5426_v61  ;;  %v5420_v46 = vsel %vm5221_vm5, %v5108_v62, %v5419_v27 }
 0x3de   :  { %v9883_v47 = vpop.permute.xlu0 %4134  ;;  %v9885_v3 = vpop.permute.xlu1 %4110 }
 0x3df   :  { %v5144_v9 = vrot.slane %v9883_v47, %v8715_v54  ;;  %v5112_v60 = vrot.slane %v9885_v3, %v8715_v54 }
 0x3e1   :  { %v5428_v3 = vsel %vm5223_vm6, %v5144_v9, %v5427_v45  ;;  %v5421_v59 = vsel %vm5223_vm6, %v5112_v60, %v5420_v46  ;;  %v5701_v46 = vld [vmem:[%s10281_s5 + $0x8] sm:$0xff] }
 0x3e2   :  { %v9911_v39 = vpop.permute.xlu0 %4176  ;;  %v9913_v44 = vpop.permute.xlu1 %4152 }
 0x3e6   :  { %v3754_v29 = vpop.permute.xlu0 %3753  ;;  %v3730_v63 = vpop.permute.xlu1 %3729 }
 0x3e7   :  { %v4636_v32 = vrot.slane %v3754_v29, %v8715_v54  ;;  %v4604_v2 = vrot.slane %v3730_v63, %v8715_v54  ;;  %v4684_v29 = vrot.slane %v9826_v8, %v8715_v54  ;;  %v4652_v63 = vrot.slane %v9828_v35, %v8715_v54 }
 0x3e9   :  { %v5317_v37 = vsel %vm5225_vm7, %v4636_v32, %v5316_v10  ;;  %v5310_v17 = vsel %vm5225_vm7, %v4604_v2, %v5309_v56  ;;  %v4656_v32 = vrot.slane %v9881_v43, %v8715_v54  ;;  %v5327_v8 = vsel %vm5217_vm3, %v4684_v29, %v9644_v33  ;;  %v5792_v29 = vld [vmem:[%s10283_s7 + $0x8] sm:$0xff] }
 0x3ea   :  { %v3796_v42 = vpop.permute.xlu0 %3795  ;;  %v3772_v13 = vpop.permute.xlu1 %3771  ;;  %v5516_v58 = vsel %vm5476_vm8, %v5317_v37, 0.0  ;;  %v5513_v14 = vsel %vm5476_vm8, %v5310_v17, 0.0  ;;  %v5320_v35 = vsel %vm5217_vm3, %v4652_v63, %v9648_v16  ;;  %v5164_v43 = vrot.slane %v9877_v49, %v8715_v54  ;;  %v5793_v63 = vld [vmem:[%s10283_s7 + $0x10] sm:$0xff] }
 0x3eb   :  { %5517 = vadd.xlane.f32.xlu0 %v5516_v58  ;;  %5514 = vadd.xlane.f32.xlu1 %v5513_v14  ;;  %v4692_v2 = vrot.slane %v3796_v42, %v8715_v54  ;;  %v4660_v38 = vrot.slane %v3772_v13, %v8715_v54  ;;  %v5328_v10 = vsel %vm5219_vm4, %v4688_v19, %v5327_v8  ;;  %v5794_v19 = vld [vmem:[%s10283_s7 + $0x18] sm:$0xff]  ;;  %v5797_v8 = vld [vmem:[%s10283_s7 + $0x30] sm:$0xff] }
 0x3ec   :  { %v5200_v56 = vrot.slane %v9911_v39, %v8715_v54  ;;  %v5321_v33 = vsel %vm5219_vm4, %v4656_v32, %v5320_v35  ;;  %v5168_v16 = vrot.slane %v9913_v44, %v8715_v54  ;;  %v5432_v42 = vsel %vm5217_vm3, %v5164_v43, %v9770_v31  ;;  %v5798_v35 = vld [vmem:[%s10283_s7 + $0x38] sm:$0xff] }
 0x3ed   :  { %v5329_v28 = vsel %vm5221_vm5, %v4692_v2, %v5328_v10  ;;  %v5322_v6 = vsel %vm5221_vm5, %v4660_v38, %v5321_v33  ;;  %v6158_v2 = vpack.c.bf16 %v5794_v19, %v5793_v63  ;;  %v5801_v10 = vld [vmem:[%s10283_s7 + $0x50] sm:$0xff] }
 0x3ee   :  { %v4138_v15 = vpop.permute.xlu0 %4137  ;;  %v4114_v50 = vpop.permute.xlu1 %4113  ;;  %v5440_v13 = vsel %vm5219_vm4, %v5200_v56, %v5439_v25  ;;  %v5433_v41 = vsel %vm5219_vm4, %v5168_v16, %v5432_v42  ;;  %v5800_v25 = vld [vmem:[%s10283_s7 + $0x48] sm:$0xff]  ;;  %v5802_v56 = vld [vmem:[%s10283_s7 + $0x58] sm:$0xff] }
 0x3ef   :  { %v5148_v22 = vrot.slane %v4138_v15, %v8715_v54  ;;  %v5116_v47 = vrot.slane %v4114_v50, %v8715_v54  ;;  %v6170_v16 = vpack.c.bf16 %v5802_v56, %v5801_v10 }
 0x3f1   :  { %v5429_v36 = vsel %vm5225_vm7, %v5148_v22, %v5428_v3  ;;  %v5422_v1 = vsel %vm5225_vm7, %v5116_v47, %v5421_v59  ;;  %v5702_v22 = vld [vmem:[%s10281_s5 + $0x10] sm:$0xff]  ;;  %v6232_v47 = vmov 0.0|0.0   ;;  %v5703_v59 = vld [vmem:[%s10281_s5 + $0x18] sm:$0xff] }
 0x3f2   :  { %v4180_v26 = vpop.permute.xlu0 %4179  ;;  %v4156_v57 = vpop.permute.xlu1 %4155  ;;  %v5564_v48 = vsel %vm5476_vm8, %v5429_v36, 0.0  ;;  %v5561_v34 = vsel %vm5476_vm8, %v5422_v1, 0.0  ;;  %6142 = vmatprep.subr.bf16.mxu0 %v6232_v47  ;;  %v6234_v36 = vmov 0.0   ;;  %6154 = vmatprep.subr.bf16.mxu1 %v6232_v47  ;;  %v6146_v1 = vpack.c.bf16 %v5703_v59, %v5702_v22 }
 0x3f3   :  { %5565 = vadd.xlane.f32.xlu0 %v5564_v48  ;;  %5562 = vadd.xlane.f32.xlu1 %v5561_v34  ;;  %v5204_v4 = vrot.slane %v4180_v26, %v8715_v54  ;;  %v5172_v49 = vrot.slane %v4156_v57, %v8715_v54  ;;  %v5704_v26 = vld [vmem:[%s10281_s5 + $0x20] sm:$0xff]  ;;  %v5705_v57 = vld [vmem:[%s10281_s5 + $0x28] sm:$0xff]  ;;  %v5706_v34 = vld [vmem:[%s10281_s5 + $0x30] sm:$0xff] }
 0x3f4   :  { %6081 = vmatprep.mubr.msk.f32.mxu0 %vm6233_vm9, %v6234_v36  ;;  %6114 = vmatprep.mubr.msk.f32.mxu1 %vm6233_vm9, %v6234_v36  ;;  %v6149_v48 = vpack.c.bf16 %v5705_v57, %v5704_v26 }
 0x3f5   :  { %v5441_v51 = vsel %vm5221_vm5, %v5204_v4, %v5440_v13  ;;  %v5434_v60 = vsel %vm5221_vm5, %v5172_v49, %v5433_v41 }
 0x3f6   :  { %v3799_v20 = vpop.permute.xlu0 %3798  ;;  %v3775_v21 = vpop.permute.xlu1 %3774 }
 0x3f7   :  { %v4696_v23 = vrot.slane %v3799_v20, %v8715_v54  ;;  %v4664_v5 = vrot.slane %v3775_v21, %v8715_v54  ;;  %v5707_v20 = vld [vmem:[%s10281_s5 + $0x38] sm:$0xff]  ;;  %v5791_v21 = vld [vmem:[%s10283_s7] sm:$0xff] }
 0x3f8   :  { %v6155_v0 = vpack.c.bf16 %v5792_v29, %v5791_v21  ;;  %v6152_v32 = vpack.c.bf16 %v5707_v20, %v5706_v34  ;;  %v5579_v34 = vld [vmem:[%s10280_s4 + $0x30] sm:$0xff]  ;;  %v5580_v20 = vld [vmem:[%s10280_s4 + $0x38] sm:$0xff] }
 0x3f9   :  { %v5330_v44 = vsel %vm5223_vm6, %v4696_v23, %v5329_v28  ;;  %v5323_v11 = vsel %vm5223_vm6, %v4664_v5, %v5322_v6  ;;  %v6164_v23 = vpack.c.bf16 %v5798_v35, %v5797_v8  ;;  %v5799_v5 = vld [vmem:[%s10283_s7 + $0x40] sm:$0xff] }
 0x3fa   :  { %v4183_v52 = vpop.permute.xlu0 %4182  ;;  %v4159_v55 = vpop.permute.xlu1 %4158  ;;  %6156 = vmatpush3.bf16.msra.mxu1 %v6155_v0  ;;  %v6167_v43 = vpack.c.bf16 %v5800_v25, %v5799_v5 }
 0x3fb   :  { %v5208_v39 = vrot.slane %v4183_v52, %v8715_v54  ;;  %v5176_v18 = vrot.slane %v4159_v55, %v8715_v54  ;;  %6157 = vmatprep.subr.bf16.mxu1 %v6232_v47  ;;  %v5795_v52 = vld [vmem:[%s10283_s7 + $0x20] sm:$0xff]  ;;  %v5796_v55 = vld [vmem:[%s10283_s7 + $0x28] sm:$0xff] }
 0x3fc   :  { %v6161_v38 = vpack.c.bf16 %v5796_v55, %v5795_v52  ;;  %v5581_v52 = vld [vmem:[%s10280_s4 + $0x40] sm:$0xff]  ;;  %v5582_v55 = vld [vmem:[%s10280_s4 + $0x48] sm:$0xff] }
 0x3fd   :  { %v5442_v53 = vsel %vm5223_vm6, %v5208_v39, %v5441_v51  ;;  %v5435_v61 = vsel %vm5223_vm6, %v5176_v18, %v5434_v60  ;;  %v5574_v60 = vld [vmem:[%s10280_s4 + $0x8] sm:$0xff] }
 0x3fe   :  { %v3802_v40 = vpop.permute.xlu0 %3801  ;;  %v3778_v7 = vpop.permute.xlu1 %3777  ;;  %6159 = vmatpush3.bf16.msra.mxu1 %v6158_v2 }
 0x3ff   :  { %v4700_v37 = vrot.slane %v3802_v40, %v8715_v54  ;;  %v4668_v17 = vrot.slane %v3778_v7, %v8715_v54  ;;  %6160 = vmatprep.subr.bf16.mxu1 %v6232_v47 }
 0x401   :  { %v5331_v58 = vsel %vm5225_vm7, %v4700_v37, %v5330_v44  ;;  %v5324_v14 = vsel %vm5225_vm7, %v4668_v17, %v5323_v11 }
 0x402   :  { %v4186_v62 = vpop.permute.xlu0 %4185  ;;  %v4162_v24 = vpop.permute.xlu1 %4161  ;;  %v5522_v12 = vsel %vm5476_vm8, %v5331_v58, 0.0  ;;  %v5519_v9 = vsel %vm5476_vm8, %v5324_v14, 0.0  ;;  %6162 = vmatpush3.bf16.msra.mxu1 %v6161_v38 }
 0x403   :  { %v5212_v31 = vrot.slane %v4186_v62, %v8715_v54  ;;  %v5180_v30 = vrot.slane %v4162_v24, %v8715_v54  ;;  %5523 = vadd.xlane.f32.xlu0 %v5522_v12  ;;  %5520 = vadd.xlane.f32.xlu1 %v5519_v9  ;;  %v5700_v54 = vld [vmem:[%s10281_s5] sm:$0xff]  ;;  %v5575_v24 = vld [vmem:[%s10280_s4 + $0x10] sm:$0xff]  ;;  %v5576_v9 = vld [vmem:[%s10280_s4 + $0x18] sm:$0xff] }
 0x404   :  { %v6143_v3 = vpack.c.bf16 %v5701_v46, %v5700_v54  ;;  %6163 = vmatprep.subr.bf16.mxu1 %v6232_v47  ;;  %v5573_v12 = vld [vmem:[%s10280_s4] sm:$0xff] }
 0x405   :  { %v5443_v27 = vsel %vm5225_vm7, %v5212_v31, %v5442_v53  ;;  %v5436_v15 = vsel %vm5225_vm7, %v5180_v30, %v5435_v61  ;;  %v5577_v61 = vld [vmem:[%s10280_s4 + $0x20] sm:$0xff] }
 0x406   :  { %v5570_v50 = vsel %vm5476_vm8, %v5443_v27, 0.0  ;;  %v5567_v45 = vsel %vm5476_vm8, %v5436_v15, 0.0  ;;  %6144 = vmatpush3.bf16.msra.mxu0 %v6143_v3  ;;  %6165 = vmatpush3.bf16.msra.mxu1 %v6164_v23  ;;  %v5578_v27 = vld [vmem:[%s10280_s4 + $0x28] sm:$0xff] }
 0x407   :  { %5571 = vadd.xlane.f32.xlu0 %v5570_v50  ;;  %5568 = vadd.xlane.f32.xlu1 %v5567_v45 }
 0x408   :  { %6145 = vmatprep.subr.bf16.mxu0 %v6232_v47  ;;  %6166 = vmatprep.subr.bf16.mxu1 %v6232_v47 }
 0x40a   :  { %6147 = vmatpush3.bf16.msra.mxu0 %v6146_v1  ;;  %6168 = vmatpush3.bf16.msra.mxu1 %v6167_v43 }
 0x40b   :  { %6148 = vmatprep.subr.bf16.mxu0 %v6232_v47  ;;  %6169 = vmatprep.subr.bf16.mxu1 %v6232_v47 }
 0x40e   :  { %6150 = vmatpush3.bf16.msra.mxu0 %v6149_v48  ;;  %6171 = vmatpush3.bf16.msra.mxu1 %v6170_v16  ;;  %v5583_v16 = vld [vmem:[%s10280_s4 + $0x50] sm:$0xff] }
 0x40f   :  { %6151 = vmatprep.subr.bf16.mxu0 %v6232_v47  ;;  %6172 = vmatprep.subr.bf16.mxu1 %v6232_v47 }
 0x412   :  { %6153 = vmatpush3.bf16.msra.mxu0 %v6152_v32 }
 0x413   :  { %6175 = vmatprep.subr.bf16.mxu0 %v6232_v47 }
 0x42c   :  { %v5482_v33 = vpop.xlane.xlu0 %5481 }
 0x42d   :  { %v5590_v46 = vmul.f32 %v5574_v60, %v5482_v33 }
 0x42f   :  { %v5637_v19 = vsel %vm5621_vm10, %v5590_v46, 0.0 }
 0x430   :  { %v5485_v28 = vpop.xlane.xlu0 %5484 }
 0x431   :  { %v5479_v4 = vpop.xlane.xlu1 %5478  ;;  %v5591_v31 = vmul.f32 %v5575_v24, %v5485_v28  ;;  %v5584_v28 = vld [vmem:[%s10280_s4 + $0x58] sm:$0xff] }
 0x432   :  { %v5589_v30 = vmul.f32 %v5573_v12, %v5479_v4 }
 0x433   :  { %v5623_v26 = vsel %vm5621_vm10, %v5591_v31, 0.0 }
 0x434   :  { %v5488_v40 = vpop.xlane.xlu0 %5487  ;;  %v5622_v57 = vsel %vm5621_vm10, %v5589_v30, 0.0 }
 0x435   :  { %v5527_v7 = vpop.xlane.xlu1 %5526  ;;  %v5592_v53 = vmul.f32 %v5576_v9, %v5488_v40  ;;  %v5624_v43 = vadd.f32 %v5623_v26, %v5622_v57 }
 0x436   :  { %v5605_v22 = vmul.f32 %v5573_v12, %v5527_v7 }
 0x437   :  { %v5638_v48 = vsel %vm5621_vm10, %v5592_v53, 0.0 }
 0x438   :  { %v5652_v32 = vsel %vm5621_vm10, %v5605_v22, 0.0  ;;  %v5639_v10 = vadd.f32 %v5638_v48, %v5637_v19  ;;  %v5588_v48 = vld [vmem:[%s10280_s4 + $0x78] sm:$0xff] }
 0x43a   :  { %v5530_v6 = vpop.xlane.xlu0 %5529 }
 0x43b   :  { %v5533_v49 = vpop.xlane.xlu1 %5532  ;;  %v5606_v3 = vmul.f32 %v5574_v60, %v5530_v6 }
 0x43c   :  { %v5607_v45 = vmul.f32 %v5575_v24, %v5533_v49 }
 0x43d   :  { %v5667_v2 = vsel %vm5621_vm10, %v5606_v3, 0.0 }
 0x43e   :  { %v5536_v37 = vpop.xlane.xlu0 %5535  ;;  %v5653_v21 = vsel %vm5621_vm10, %v5607_v45, 0.0 }
 0x43f   :  { %v5491_v17 = vpop.xlane.xlu1 %5490  ;;  %v5608_v54 = vmul.f32 %v5576_v9, %v5536_v37  ;;  %v5654_v56 = vadd.f32 %v5653_v21, %v5652_v32 }
 0x440   :  { %v5593_v59 = vmul.f32 %v5577_v61, %v5491_v17 }
 0x441   :  { %v5668_v29 = vsel %vm5621_vm10, %v5608_v54, 0.0 }
 0x442   :  { %v5625_v35 = vsel %vm5621_vm10, %v5593_v59, 0.0  ;;  %v5669_v33 = vadd.f32 %v5668_v29, %v5667_v2 }
 0x443   :  { %v5626_v49 = vadd.f32 %v5625_v35, %v5624_v43 }
 0x444   :  { %v5494_v39 = vpop.xlane.xlu0 %5493 }
 0x445   :  { %v5539_v18 = vpop.xlane.xlu1 %5538  ;;  %v5594_v1 = vmul.f32 %v5578_v27, %v5494_v39 }
 0x446   :  { %v5609_v63 = vmul.f32 %v5577_v61, %v5539_v18  ;;  %v5586_v18 = vld [vmem:[%s10280_s4 + $0x68] sm:$0xff] }
 0x447   :  { %v5640_v23 = vsel %vm5621_vm10, %v5594_v1, 0.0 }
 0x448   :  { %v5542_v44 = vpop.xlane.xlu0 %5541  ;;  %v5655_v4 = vsel %vm5621_vm10, %v5609_v63, 0.0  ;;  %v5641_v37 = vadd.f32 %v5640_v23, %v5639_v10 }
 0x449   :  { %v5497_v11 = vpop.xlane.xlu1 %5496  ;;  %v5610_v0 = vmul.f32 %v5578_v27, %v5542_v44  ;;  %v5656_v9 = vadd.f32 %v5655_v4, %v5654_v56 }
 0x44a   :  { %v5595_v5 = vmul.f32 %v5579_v34, %v5497_v11  ;;  %v5585_v11 = vld [vmem:[%s10280_s4 + $0x60] sm:$0xff] }
 0x44b   :  { %v5670_v40 = vsel %vm5621_vm10, %v5610_v0, 0.0 }
 0x44c   :  { %v5500_v42 = vpop.xlane.xlu0 %5499  ;;  %v5627_v24 = vsel %vm5621_vm10, %v5595_v5, 0.0  ;;  %v5671_v60 = vadd.f32 %v5670_v40, %v5669_v33 }
 0x44d   :  { %v5596_v25 = vmul.f32 %v5580_v20, %v5500_v42  ;;  %v5628_v27 = vadd.f32 %v5627_v24, %v5626_v49 }
 0x44e   :  { %v5545_v13 = vpop.xlane.xlu1 %5544 }
 0x44f   :  { %v5611_v17 = vmul.f32 %v5579_v34, %v5545_v13  ;;  %v5642_v12 = vsel %vm5621_vm10, %v5596_v25, 0.0  ;;  %v5587_v34 = vld [vmem:[%s10280_s4 + $0x70] sm:$0xff] }
 0x450   :  { %v5643_v45 = vadd.f32 %v5642_v12, %v5641_v37 }
 0x451   :  { %v5548_v58 = vpop.xlane.xlu0 %5547  ;;  %v5657_v54 = vsel %vm5621_vm10, %v5611_v17, 0.0 }
 0x452   :  { %v5503_v14 = vpop.xlane.xlu1 %5502  ;;  %v5612_v39 = vmul.f32 %v5580_v20, %v5548_v58  ;;  %v5658_v0 = vadd.f32 %v5657_v54, %v5656_v9 }
 0x453   :  { %v5597_v7 = vmul.f32 %v5581_v52, %v5503_v14 }
 0x454   :  { %v5672_v46 = vsel %vm5621_vm10, %v5612_v39, 0.0 }
 0x455   :  { %v5629_v31 = vsel %vm5621_vm10, %v5597_v7, 0.0  ;;  %v5673_v19 = vadd.f32 %v5672_v46, %v5671_v60 }
 0x456   :  { %v5506_v41 = vpop.xlane.xlu0 %5505  ;;  %v5630_v59 = vadd.f32 %v5629_v31, %v5628_v27 }
 0x457   :  { %v10113_v51 = vpop.xlane.xlu1 %5550  ;;  %v5598_v6 = vmul.f32 %v5582_v55, %v5506_v41 }
 0x458   :  { %v5613_v13 = vmul.f32 %v5581_v52, %v10113_v51 }
 0x459   :  { %v5644_v30 = vsel %vm5621_vm10, %v5598_v6, 0.0 }
 0x45a   :  { %v10115_v62 = vpop.xlane.xlu0 %5553  ;;  %v5645_v1 = vadd.f32 %v5644_v30, %v5643_v45  ;;  %v5659_v26 = vsel %vm5621_vm10, %v5613_v13, 0.0 }
 0x45b   :  { %v5509_v15 = vpop.xlane.xlu1 %5508  ;;  %v5614_v58 = vmul.f32 %v5582_v55, %v10115_v62  ;;  %v5660_v5 = vadd.f32 %v5659_v26, %v5658_v0  ;;  %v5888_v26 = vld [vmem:[%s10285_s9] sm:$0xff]  ;;  %v5893_v0 = vld [vmem:[%s10285_s9 + $0x28] sm:$0xff] }
 0x45c   :  { %v5599_v14 = vmul.f32 %v5583_v16, %v5509_v15 }
 0x45d   :  { %v5674_v57 = vsel %vm5621_vm10, %v5614_v58, 0.0 }
 0x45e   :  { %v5512_v50 = vpop.xlane.xlu0 %5511  ;;  %v5631_v22 = vsel %vm5621_vm10, %v5599_v14, 0.0  ;;  %v5675_v25 = vadd.f32 %v5674_v57, %v5673_v19  ;;  %v5889_v57 = vld [vmem:[%s10285_s9 + $0x8] sm:$0xff] }
 0x45f   :  { %v5557_v38 = vpop.xlane.xlu1 %5556  ;;  %v5600_v41 = vmul.f32 %v5584_v28, %v5512_v50  ;;  %v5632_v32 = vadd.f32 %v5631_v22, %v5630_v59  ;;  %v5804_v59 = vld [vmem:[%s10283_s7 + $0x68] sm:$0xff] }
 0x460   :  { %v5615_v3 = vmul.f32 %v5583_v16, %v5557_v38 }
 0x461   :  { %v5646_v51 = vsel %vm5621_vm10, %v5600_v41, 0.0 }
 0x462   :  { %v5560_v8 = vpop.xlane.xlu0 %5559  ;;  %v5647_v2 = vadd.f32 %v5646_v51, %v5645_v1  ;;  %v5661_v38 = vsel %vm5621_vm10, %v5615_v3, 0.0 }
 0x463   :  { %v5616_v62 = vmul.f32 %v5584_v28, %v5560_v8  ;;  %v5662_v4 = vadd.f32 %v5661_v38, %v5660_v5  ;;  %v5896_v5 = vld [vmem:[%s10285_s9 + $0x40] sm:$0xff] }
 0x465   :  { %v5676_v8 = vsel %vm5621_vm10, %v5616_v62, 0.0  ;;  %v5803_v62 = vld [vmem:[%s10283_s7 + $0x60] sm:$0xff] }
 0x466   :  { %v5677_v40 = vadd.f32 %v5676_v8, %v5675_v25  ;;  %v6173_v1 = vpack.c.bf16 %v5804_v59, %v5803_v62  ;;  %v5897_v25 = vld [vmem:[%s10285_s9 + $0x48] sm:$0xff] }
 0x468   :  { %6174 = vmatpush3.bf16.msra.mxu1 %v6173_v1 }
 0x469   :  { %6112 = vmatprep.subr.mxu1 %v6234_v36 }
 0x478   :  { %v5518_v44 = vpop.xlane.xlu0 %5517  ;;  %v5515_v42 = vpop.xlane.xlu1 %5514 }
 0x479   :  { %v5602_v53 = vmul.f32 %v5586_v18, %v5518_v44  ;;  %v5601_v61 = vmul.f32 %v5585_v11, %v5515_v42 }
 0x47b   :  { %v5648_v20 = vsel %vm5621_vm10, %v5602_v53, 0.0  ;;  %v5633_v21 = vsel %vm5621_vm10, %v5601_v61, 0.0 }
 0x47c   :  { %v5649_v43 = vadd.f32 %v5648_v20, %v5647_v2  ;;  %v5634_v10 = vadd.f32 %v5633_v21, %v5632_v32  ;;  %v5891_v20 = vld [vmem:[%s10285_s9 + $0x18] sm:$0xff]  ;;  %v5805_v21 = vld [vmem:[%s10283_s7 + $0x70] sm:$0xff] }
 0x47d   :  { %6113 = vmatpush3.msra.mxu1 %v5805_v21  ;;  %v5894_v32 = vld [vmem:[%s10285_s9 + $0x30] sm:$0xff]  ;;  %v5895_v2 = vld [vmem:[%s10285_s9 + $0x38] sm:$0xff] }
 0x480   :  { %v5566_v15 = vpop.xlane.xlu0 %5565  ;;  %v5563_v50 = vpop.xlane.xlu1 %5562 }
 0x481   :  { %v5618_v29 = vmul.f32 %v5586_v18, %v5566_v15  ;;  %v5617_v63 = vmul.f32 %v5585_v11, %v5563_v50 }
 0x483   :  { %v5678_v56 = vsel %vm5621_vm10, %v5618_v29, 0.0  ;;  %v5663_v33 = vsel %vm5621_vm10, %v5617_v63, 0.0  ;;  %v5892_v63 = vld [vmem:[%s10285_s9 + $0x20] sm:$0xff] }
 0x484   :  { %v5679_v18 = vadd.f32 %v5678_v56, %v5677_v40  ;;  %v5664_v44 = vadd.f32 %v5663_v33, %v5662_v4  ;;  %v6182_v19 = vpack.c.bf16 %v5893_v0, %v5892_v63 }
 0x490   :  { %v5524_v52 = vpop.xlane.xlu0 %5523  ;;  %v5521_v55 = vpop.xlane.xlu1 %5520 }
 0x491   :  { %v5604_v35 = vmul.f32 %v5588_v48, %v5524_v52  ;;  %v5603_v23 = vmul.f32 %v5587_v34, %v5521_v55  ;;  %v6185_v52 = vpack.c.bf16 %v5895_v2, %v5894_v32  ;;  %v6021_v55 = vld [vmem:[%s10282_s6] ss:$0 sm:$0xff] }
 0x493   :  { %v5650_v16 = vsel %vm5621_vm10, %v5604_v35, 0.0  ;;  %v5635_v28 = vsel %vm5621_vm10, %v5603_v23, 0.0 }
 0x494   :  { %v5651_v7 = vadd.f32 %v5650_v16, %v5649_v43  ;;  %v5636_v6 = vadd.f32 %v5635_v28, %v5634_v10  ;;  %v5572_v49 = vpop.xlane.xlu0 %5571  ;;  %v5569_v37 = vpop.xlane.xlu1 %5568  ;;  %v6188_v43 = vpack.c.bf16 %v5897_v25, %v5896_v5  ;;  %v6023_v10 = vld [vmem:[%s10284_s8] ss:$0 sm:$0xff] }
 0x495   :  { %v5620_v17 = vmul.f32 %v5588_v48, %v5572_v49  ;;  %v5619_v39 = vmul.f32 %v5587_v34, %v5569_v37  ;;  %v5890_v48 = vld [vmem:[%s10285_s9 + $0x10] sm:$0xff]  ;;  %v6176_v34 = vpack.c.bf16 %v5889_v57, %v5888_v26 }
 0x496   :  { %v5683_v11 = vsel %vm5621_vm10, %v5651_v7, 0.0  ;;  %v5682_v42 = vsel %vm5621_vm10, %v5636_v6, 0.0  ;;  %v6179_v29 = vpack.c.bf16 %v5891_v20, %v5890_v48 }
 0x497   :  { %v5684_v24 = vadd.f32 %v5683_v11, %v5682_v42  ;;  %v5680_v12 = vsel %vm5621_vm10, %v5620_v17, 0.0  ;;  %v5665_v14 = vsel %vm5621_vm10, %v5619_v39, 0.0 }
 0x498   :  { %v5681_v41 = vadd.f32 %v5680_v12, %v5679_v18  ;;  %v5666_v9 = vadd.f32 %v5665_v14, %v5664_v44 }
 0x499   :  { %v5685_v60 = vrot.slane %v5684_v24, 4 }
 0x49a   :  { %v5692_v13 = vsel %vm5621_vm10, %v5681_v41, 0.0  ;;  %v5691_v58 = vsel %vm5621_vm10, %v5666_v9, 0.0 }
 0x49b   :  { %v5686_v31 = vadd.f32 %v5685_v60, %v5684_v24  ;;  %v5693_v30 = vadd.f32 %v5692_v13, %v5691_v58 }
 0x49d   :  { %v5687_v53 = vrot.slane %v5686_v31, 2  ;;  %v5694_v61 = vrot.slane %v5693_v30, 4 }
 0x49f   :  { %v5695_v27 = vadd.f32 %v5694_v61, %v5693_v30  ;;  %v5688_v45 = vadd.f32 %v5687_v53, %v5686_v31 }
 0x4a1   :  { %v5696_v54 = vrot.slane %v5695_v27, 2  ;;  %v5689_v46 = vrot.slane %v5688_v45, 1 }
 0x4a3   :  { %v5697_v15 = vadd.f32 %v5696_v54, %v5695_v27  ;;  %v5690_v22 = vadd.f32 %v5689_v46, %v5688_v45 }
 0x4a5   :  { %v5698_v50 = vrot.slane %v5697_v15, 1 }
 0x4a7   :  { %v5699_v51 = vadd.f32 %v5698_v50, %v5697_v15 }
 0x4a9   :  { %v5717_v3 = vsel %vm5213_vm1, %v5699_v51, %v5690_v22 }
 0x4aa   :  { %6082 = vmatmul.mubr.msk.f32.vlgmr.msra.gmra.mrb[0].mxu0 %vm5621_vm10, %v5717_v3 }
 0x4ab   :  { %6139 = vmatprep.mubr.msk.f32.mxu0 %vm6233_vm9, %v6234_v36  ;;  %6177 = vmatpush3.bf16.msra.mxu0 %v6176_v34 }
 0x4ac   :  { %6178 = vmatprep.subr.bf16.mxu0 %v6232_v47 }
 0x4af   :  { %6180 = vmatpush3.bf16.msra.mxu0 %v6179_v29 }
 0x4b0   :  { %6181 = vmatprep.subr.bf16.mxu0 %v6232_v47 }
 0x4b3   :  { %6183 = vmatpush3.bf16.msra.mxu0 %v6182_v19 }
 0x4b4   :  { %6184 = vmatprep.subr.bf16.mxu0 %v6232_v47 }
 0x4b7   :  { %6186 = vmatpush3.bf16.msra.mxu0 %v6185_v52 }
 0x4b8   :  { %6187 = vmatprep.subr.bf16.mxu0 %v6232_v47  ;;  %v5898_v47 = vld [vmem:[%s10285_s9 + $0x50] sm:$0xf]  ;;  %s6206_s9 = scalar_lea.vmem %s5993_s28, 32 }
 0x4b9   :  { %p6207_p0 = scmp.ne.s32.totalorder %s5993_s28, %s6206_s9  ;;  %p6212_p2 = scmp.lt.s32.totalorder %s6206_s9, %s6206_s9 }
 0x4bb   :  { %6189 = vmatpush3.bf16.msra.mxu0 %v6188_v43  ;;  %p6213_p3 = por %p6212_p2, %p6211_p1 }
 0x4bc   :  { %6137 = vmatprep.subr.mxu0 %v6234_v36  ;;  %v6025_v36 = vld [vmem:[%s10286_s10] ss:$0 sm:$0xff] }
 0x4bd   :  { %p6214_p4 = pnand %p6213_p3, %p6207_p0 }
 0x4bf   :  { %6138 = vmatpush3.msk.msra.mxu0 %vm5910_vm12, %v5898_v47 }
 0x57d   :  { %v5786_v38 = vpop.f32.mrb[0].mxu0 }
 0x57e   :  { %v5787_v8 = vadd.f32 %v6021_v55, %v5786_v38  ;;  %v6083_v35 = vpop.f32.mrb[1].mxu0 }
 0x580   :  { %v5790_v23 = vmax.f32 %v5787_v8, 0.0 }
 0x582   :  { %6115 = vmatmul.mubr.msk.f32.vlgmr.msra.gmra.mrb[0].mxu1 %vm5813_vm11, %v5790_v23 }
 0x655   :  { %v5883_v56 = vpop.f32.mrb[0].mxu1 }
 0x656   :  { %v5884_v33 = vadd.f32 %v6023_v10, %v5883_v56  ;;  %v6116_v16 = vpop.f32.mrb[1].mxu1 }
 0x658   :  { %v5887_v28 = vmax.f32 %v5884_v33, 0.0 }
 0x65a   :  { %6140 = vmatmul.mubr.msk.f32.vlgmr.msra.gmra.mrb[2].mxu0 %vm5906_vm13, %v5887_v28 }
 0x72d   :  { %v5980_v4 = vpop.f32.mrb[2].mxu0 }
 0x72e   :  { %v5981_v40 = vadd.f32 %v6025_v36, %v5980_v4  ;;  %v6141_v7 = vpop.f32.mrb[3].mxu0 }
 0x730   :  { %5985 = vst.msk [vmem:[#allocation2] sm:$0x3] %vm5984_vm14, %v5981_v40 }
 0x731   :  { %6217 = shalt.err (!%p6214_p4)
}
 0x732   :  { %s6218_s30 = scalar_lea.hbm %s10287_s11, 32 }
 0x733   :  { %p6219_p5 = scmp.ne.s32.totalorder %s10287_s11, %s6218_s30  ;;  %p6222_p6 = scmp.lt.u32.totalorder %s6218_s30, %s10287_s11 }
 0x735   :  { %p6224_p7 = pnand %p6222_p6, %p6219_p5 }
 0x737   :  { %6227 = shalt.err (!%p6224_p7)
}
 0x738   :  { %5995 = dma.vmem_to_hbm [thread:$0]  %s5993_s28, 32, %s10287_s11, [#allocation3]  }
 0x739   :  { %6228 = dma.done.wait [#allocation3], 32  }
 0x73a   :  { %6229 = vsyncadd [#allocation3], 4294967264 }
 0x73b   :  { %5999 = vsyncpa [#allocation3], 1 }

</bundles_post_ra>
